<compile_context>
chip_gen: v5e
topology: v5e:2x2
jax: 0.10.0
libtpu: 0.0.40
codegen_flags: <defaults>
</compile_context>

<pallas_src>
import functools

import numpy as np

import jax
import jax.numpy as jnp
from jax import lax
from jax.experimental import pallas as pl
from jax.experimental.pallas import tpu as pltpu


# ----------------------------------------------------------------------------- #
# Helpers (host-side structural constants)
# ----------------------------------------------------------------------------- #
def _hardswish(x):
    # x * relu6(x + 3) / 6
    return x * jnp.clip(x + 3.0, 0.0, 6.0) * (1.0 / 6.0)


def _dw_tap_select(h_in, w_in, h_out, w_out, stride):
    """One-hot tap gather, shape (h_in*w_in, 9*h_out*w_out).

    Column (di*3+dj)*So + io*w_out + jo reads input pixel
    (stride*io + di - 1, stride*jo + dj - 1).  Out-of-range taps (the padding=1
    halo) are all-zero columns, so zero padding is implicit and no padded copy
    of the activation is ever materialized.
    """
    so = h_out * w_out
    sel = np.zeros((h_in * w_in, 9 * so), np.float32)
    for di in range(3):
        for dj in range(3):
            k = di * 3 + dj
            for io in range(h_out):
                hi = stride * io + di - 1
                if not (0 <= hi < h_in):
                    continue
                for jo in range(w_out):
                    wi = stride * jo + dj - 1
                    if 0 <= wi < w_in:
                        sel[hi * w_in + wi, k * so + io * w_out + jo] = 1.0
    return sel


def _tap_sum(so):
    """(9*so, so) matrix that sums the 9 tap slabs of the gathered activation."""
    return np.tile(np.eye(so, dtype=np.float32), (9, 1))


def _group_norm_matrix(num_ch, num_groups, so, bt):
    """(bt*C, bt*C) block-diagonal 'same (sample, group)' map pre-scaled by 1/n.

    Folds mcg @ mgc and the 1/n normalizer into a single host constant so each
    GroupNorm needs only 2 matmuls per sample (mean path, variance path).
    """
    cg = num_ch // num_groups
    m = np.zeros((num_ch, num_ch), np.float32)
    for g in range(num_groups):
        m[g * cg:(g + 1) * cg, g * cg:(g + 1) * cg] = 1.0
    m *= 1.0 / float(cg * so)
    return np.kron(np.eye(bt, dtype=np.float32), m)


# ----------------------------------------------------------------------------- #
# Fused DownBlock kernel (one grid step = Bt batch samples; all ops in VMEM)
# ----------------------------------------------------------------------------- #
def _down_block_kernel(
    x_ref,                        # (1, Bt*Cin, H*W)   channels on sublanes
    selT0_ref, selT1_ref,         # (H*W, 9*So), (So, 9*So)  one-hot tap gathers
    red_ref,                      # (9*So, So)         tap-sum matrix
    gnm_ref,                      # (Bt*Chid, Bt*Chid) group map * 1/n (block-diag)
    dw0w_ref, dw0b_ref,           # (Bt*Cin, 9*So), (Bt*Cin, 1)
    pw0w_ref, pw0b_ref,           # (Bt*Cout, Bt*Cin), (Bt*Cout, 1)
    ew_ref, eb_ref,               # (2, Bt*Chid, Bt*Cout), (2, Bt*Chid, 1)
    g1g_ref, g1b_ref,             # (2, Bt*Chid, 1)
    dww_ref, dwb_ref,             # (2, Bt*Chid, 9*So), (2, Bt*Chid, 1)
    g2g_ref, g2b_ref,             # (2, Bt*Chid, 1)
    pww_ref, pwb_ref,             # (2, Bt*Cout, Bt*Chid), (2, Bt*Cout, 1)
    o_ref,                        # (1, Bt*Cout, So)
    *, eps, mm_dtype,
):
    f32 = jnp.float32

    def mm(a, b):
        # Conv matmuls; mm_dtype=bf16 on v6e/v7x halves operand traffic, f32 acc.
        return jnp.dot(a.astype(mm_dtype), b.astype(mm_dtype),
                       preferred_element_type=f32)

    red = red_ref[...]            # shared by all three depthwise convs

    def dw3x3(t, selT, w_taps, bias):
        # Depthwise 3x3 conv, padding=1 (zero pad implicit in selT's zero cols).
        # t: (R, S_in) -> (R, So).  Exactly two matmuls, no per-row loop/concat.
        g = mm(t, selT)                        # (R, 9*So): tap k at lanes [k*So,(k+1)*So)
        return mm(g * w_taps, red) + bias      # weighted tap sum -> (R, So)

    gnm = gnm_ref[...]

    def group_norm_hswish(t, gamma, beta):
        # Per-(sample, group) statistics via ONE pre-scaled map; stats stay f32.
        mean = jnp.sum(jnp.dot(gnm, t, preferred_element_type=f32),
                       axis=1, keepdims=True)                       # (R, 1)
        xc = t - mean
        var = jnp.sum(jnp.dot(gnm, xc * xc, preferred_element_type=f32),
                      axis=1, keepdims=True)
        return _hardswish(xc * lax.rsqrt(var + eps) * gamma + beta)

    # --- Conv2d(Cin, Cin, 3, stride=2, padding=1, groups=Cin) + hardswish ------
    x = x_ref[0]                                                    # (Bt*Cin, H*W)
    h = _hardswish(dw3x3(x, selT0_ref[...], dw0w_ref[...], dw0b_ref[...]))

    # --- Conv2d(Cin, Cout, 1) + hardswish ---------------------------------------
    h = _hardswish(mm(pw0w_ref[...], h) + pw0b_ref[...])            # (Bt*Cout, So)

    # --- SeparableInvertResidual x 2 ---------------------------------------------
    selT1 = selT1_ref[...]
    for s in range(2):
        r = h
        t = mm(ew_ref[s], h) + eb_ref[s]                  # 1x1 expand -> (Bt*Chid, So)
        t = group_norm_hswish(t, g1g_ref[s], g1b_ref[s])
        t = dw3x3(t, selT1, dww_ref[s], dwb_ref[s])       # dw 3x3, stride 1
        t = group_norm_hswish(t, g2g_ref[s], g2b_ref[s])
        h = mm(pww_ref[s], t) + pwb_ref[s] + r            # 1x1 project + residual

    o_ref[0] = h


# ----------------------------------------------------------------------------- #
# Wrapper
# ----------------------------------------------------------------------------- #
def down_block_forward(x_nchw, params, *, num_groups=4, bt=1,
                       matmul_dtype=jnp.float32):
    N, Cin, H, W = x_nchw.shape
    assert N % bt == 0, "batch must be divisible by the per-step batch tile"
    Cout = params["pw0_w"].shape[0]
    Chid = params["sir_ew"].shape[1]
    Ho = (H + 2 - 3) // 2 + 1
    Wo = (W + 2 - 3) // 2 + 1
    S, So = H * W, Ho * Wo

    # Input stays NCHW: this reshape is metadata-only (no transpose pass).
    x_rows = x_nchw.reshape(N // bt, bt * Cin, S)

    # Host-precomputed structural constants.
    selT0 = jnp.asarray(_dw_tap_select(H, W, Ho, Wo, 2))     # (S, 9*So)
    selT1 = jnp.asarray(_dw_tap_select(Ho, Wo, Ho, Wo, 1))   # (So, 9*So)
    red = jnp.asarray(_tap_sum(So))                          # (9*So, So)
    gnm = jnp.asarray(_group_norm_matrix(Chid, num_groups, So, bt))

    # Fold parameters into the batched channels-on-sublanes layout.
    eye_bt = jnp.eye(bt, dtype=jnp.float32)

    def kron2(w):   # (R, C)    -> (bt*R, bt*C) block-diagonal (shared weights)
        return jnp.kron(eye_bt, w)

    def kron3(w):   # (2, R, C) -> (2, bt*R, bt*C)
        return jnp.stack([jnp.kron(eye_bt, w[i]) for i in range(w.shape[0])])

    def vec2(v):    # (C,)      -> (bt*C, 1)
        return jnp.tile(v, (bt,))[:, None]

    def vec3(v):    # (2, C)    -> (2, bt*C, 1)
        return jnp.tile(v, (1, bt))[..., None]

    def taps2(w):   # (C, 9)    -> (bt*C, 9*So): tap k broadcast over So lanes
        return jnp.tile(jnp.repeat(w, So, axis=-1), (bt, 1))

    def taps3(w):   # (2, C, 9) -> (2, bt*C, 9*So)
        return jnp.tile(jnp.repeat(w, So, axis=-1), (1, bt, 1))

    weights = (
        selT0, selT1, red, gnm,
        taps2(params["dw0_w"]), vec2(params["dw0_b"]),
        kron2(params["pw0_w"]), vec2(params["pw0_b"]),
        kron3(params["sir_ew"]), vec3(params["sir_eb"]),
        vec3(params["sir_g1g"]), vec3(params["sir_g1b"]),
        taps3(params["sir_dww"]), vec3(params["sir_dwb"]),
        vec3(params["sir_g2g"]), vec3(params["sir_g2b"]),
        kron3(params["sir_pww"]), vec3(params["sir_pwb"]),
    )

    def _const_spec(a):
        return pl.BlockSpec(a.shape, lambda n: (0,) * a.ndim)

    y = pl.pallas_call(
        functools.partial(_down_block_kernel, eps=1e-5, mm_dtype=matmul_dtype),
        out_shape=jax.ShapeDtypeStruct((N // bt, bt * Cout, So), jnp.float32),
        grid=(N // bt,),
        in_specs=[pl.BlockSpec((1, bt * Cin, S), lambda n: (n, 0, 0))]
                 + [_const_spec(a) for a in weights],
        out_specs=pl.BlockSpec((1, bt * Cout, So), lambda n: (n, 0, 0)),
        compiler_params=pltpu.CompilerParams(dimension_semantics=("parallel",)),
    )(x_rows, *weights)

    return y.reshape(N, Cout, Ho, Wo)      # metadata-only; already NCHW order


# ----------------------------------------------------------------------------- #
# Deterministic parameter init (synthetic; no checkpoint)
# ----------------------------------------------------------------------------- #
def init_params(key, cin, cout, expand_factor=3):
    keys = iter(jax.random.split(key, 16))

    def nrm(shape, s=0.1):
        return s * jax.random.normal(next(keys), shape, jnp.float32)

    hidden = cout * expand_factor
    # TODO(synk): when loading real PyTorch weights, (C,1,3,3) dw kernels map to
    #             (C, 9) with k = kh*3 + kw, and 1x1 convs map to (Cout, Cin).
    return {
        "dw0_w": nrm((cin, 9)),             # depthwise 3x3 taps, k = di*3 + dj
        "dw0_b": nrm((cin,), 0.05),
        "pw0_w": nrm((cout, cin)),          # 1x1 conv weight (Cout, Cin)
        "pw0_b": nrm((cout,), 0.05),
        # two SeparableInvertResidual blocks, stacked on a leading axis
        "sir_ew": nrm((2, hidden, cout)),
        "sir_eb": nrm((2, hidden), 0.05),
        "sir_g1g": jnp.ones((2, hidden), jnp.float32),
        "sir_g1b": jnp.zeros((2, hidden), jnp.float32),
        "sir_dww": nrm((2, hidden, 9)),
        "sir_dwb": nrm((2, hidden), 0.05),
        "sir_g2g": jnp.ones((2, hidden), jnp.float32),
        "sir_g2b": jnp.zeros((2, hidden), jnp.float32),
        "sir_pww": nrm((2, cout, hidden)),
        "sir_pwb": nrm((2, cout), 0.05),
    }


# ----------------------------------------------------------------------------- #
# Pure-JAX reference (lax.conv) for correctness checking
# ----------------------------------------------------------------------------- #
def _reference_forward(x, params, *, num_groups=4, eps=1e-5):
    hp = lax.Precision.HIGHEST

    def hswish(t):
        return t * jnp.clip(t + 3.0, 0.0, 6.0) / 6.0

    def dw_conv(t, w9, b, stride):
        c = t.shape[1]
        w = w9.reshape(c, 1, 3, 3)
        y = lax.conv_general_dilated(
            t, w, (stride, stride), ((1, 1), (1, 1)),
            dimension_numbers=("NCHW", "OIHW", "NCHW"),
            feature_group_count=c, precision=hp)
        return y + b[None, :, None, None]

    def pw_conv(t, w, b):
        y = lax.conv_general_dilated(
            t, w[:, :, None, None], (1, 1), "VALID",
            dimension_numbers=("NCHW", "OIHW", "NCHW"), precision=hp)
        return y + b[None, :, None, None]

    def gn(t, gamma, beta):
        n, c, h, w = t.shape
        g = num_groups
        tg = t.reshape(n, g, c // g, h, w)
        mean = tg.mean(axis=(2, 3, 4), keepdims=True)
        var = ((tg - mean) ** 2).mean(axis=(2, 3, 4), keepdims=True)
        tn = ((tg - mean) / jnp.sqrt(var + eps)).reshape(n, c, h, w)
        return tn * gamma[None, :, None, None] + beta[None, :, None, None]

    h = hswish(dw_conv(x, params["dw0_w"], params["dw0_b"], 2))
    h = hswish(pw_conv(h, params["pw0_w"], params["pw0_b"]))
    for s in range(2):
        r = h
        t = pw_conv(h, params["sir_ew"][s], params["sir_eb"][s])
        t = hswish(gn(t, params["sir_g1g"][s], params["sir_g1b"][s]))
        t = dw_conv(t, params["sir_dww"][s], params["sir_dwb"][s], 1)
        t = hswish(gn(t, params["sir_g2g"][s], params["sir_g2b"][s]))
        h = pw_conv(t, params["sir_pww"][s], params["sir_pwb"][s]) + r
    return h


if __name__ == "__main__":
    N, Cin, H, W = 2, 4, 16, 16
    Cout = 8

    key = jax.random.PRNGKey(0)
    kx, kp = jax.random.split(key)
    x = jax.random.normal(kx, (N, Cin, H, W), jnp.float32)   # NCHW, like PyTorch
    params = init_params(kp, Cin, Cout, expand_factor=3)

    # bt=1 keeps grid=(2,) "parallel" (even extent -> both v7x TCs busy);
    # use bt=2 (v5e) / bt=4 (v6e/v7x, + matmul_dtype=jnp.bfloat16) at larger N.
    fwd = jax.jit(functools.partial(down_block_forward, num_groups=4, bt=1))
    y = fwd(x, params)
    jax.block_until_ready(y)

    assert y.shape == (N, Cout, H // 2, W // 2), y.shape
    assert y.dtype == jnp.float32
    assert bool(jnp.isfinite(y).all())

    y_ref = jax.jit(functools.partial(_reference_forward, num_groups=4))(x, params)
    err = float(jnp.max(jnp.abs(y - y_ref)))
    assert err < 3e-2, f"max |pallas - reference| = {err}"

    print("KERNEL_OK")
</pallas_src>

<mosaic_0001>
module attributes {stable_mosaic.version = 11 : i64} {
  func.func @_down_block_kernel(%arg0: i32, %arg1: memref<1x4x256xf32, #tpu.memory_space<vmem>>, %arg2: memref<256x576xf32, #tpu.memory_space<vmem>>, %arg3: memref<64x576xf32, #tpu.memory_space<vmem>>, %arg4: memref<576x64xf32, #tpu.memory_space<vmem>>, %arg5: memref<24x24xf32, #tpu.memory_space<vmem>>, %arg6: memref<4x576xf32, #tpu.memory_space<vmem>>, %arg7: memref<4x1xf32, #tpu.memory_space<vmem>>, %arg8: memref<8x4xf32, #tpu.memory_space<vmem>>, %arg9: memref<8x1xf32, #tpu.memory_space<vmem>>, %arg10: memref<2x24x8xf32, #tpu.memory_space<vmem>>, %arg11: memref<2x24x1xf32, #tpu.memory_space<vmem>>, %arg12: memref<2x24x1xf32, #tpu.memory_space<vmem>>, %arg13: memref<2x24x1xf32, #tpu.memory_space<vmem>>, %arg14: memref<2x24x576xf32, #tpu.memory_space<vmem>>, %arg15: memref<2x24x1xf32, #tpu.memory_space<vmem>>, %arg16: memref<2x24x1xf32, #tpu.memory_space<vmem>>, %arg17: memref<2x24x1xf32, #tpu.memory_space<vmem>>, %arg18: memref<2x8x24xf32, #tpu.memory_space<vmem>>, %arg19: memref<2x8x1xf32, #tpu.memory_space<vmem>>, %arg20: memref<1x8x64xf32, #tpu.memory_space<vmem>>) attributes {dimension_semantics = [#tpu.dimension_semantics<parallel>], iteration_bounds = array<i64: 2>, scalar_prefetch = 0 : i64, scratch_operands = 0 : i64, tpu.core_type = #tpu.core_type<tc>, window_params = [{transform_indices = @transform_0, window_bounds = array<i64: 1, 4, 256>}, {pipeline_mode = #tpu.pipeline_mode<synchronous>, transform_indices = @transform_1, window_bounds = array<i64: 256, 576>}, {pipeline_mode = #tpu.pipeline_mode<synchronous>, transform_indices = @transform_2, window_bounds = array<i64: 64, 576>}, {pipeline_mode = #tpu.pipeline_mode<synchronous>, transform_indices = @transform_3, window_bounds = array<i64: 576, 64>}, {pipeline_mode = #tpu.pipeline_mode<synchronous>, transform_indices = @transform_4, window_bounds = array<i64: 24, 24>}, {pipeline_mode = #tpu.pipeline_mode<synchronous>, transform_indices = @transform_5, window_bounds = array<i64: 4, 576>}, {pipeline_mode = #tpu.pipeline_mode<synchronous>, transform_indices = @transform_6, window_bounds = array<i64: 4, 1>}, {pipeline_mode = #tpu.pipeline_mode<synchronous>, transform_indices = @transform_7, window_bounds = array<i64: 8, 4>}, {pipeline_mode = #tpu.pipeline_mode<synchronous>, transform_indices = @transform_8, window_bounds = array<i64: 8, 1>}, {pipeline_mode = #tpu.pipeline_mode<synchronous>, transform_indices = @transform_9, window_bounds = array<i64: 2, 24, 8>}, {pipeline_mode = #tpu.pipeline_mode<synchronous>, transform_indices = @transform_10, window_bounds = array<i64: 2, 24, 1>}, {pipeline_mode = #tpu.pipeline_mode<synchronous>, transform_indices = @transform_11, window_bounds = array<i64: 2, 24, 1>}, {pipeline_mode = #tpu.pipeline_mode<synchronous>, transform_indices = @transform_12, window_bounds = array<i64: 2, 24, 1>}, {pipeline_mode = #tpu.pipeline_mode<synchronous>, transform_indices = @transform_13, window_bounds = array<i64: 2, 24, 576>}, {pipeline_mode = #tpu.pipeline_mode<synchronous>, transform_indices = @transform_14, window_bounds = array<i64: 2, 24, 1>}, {pipeline_mode = #tpu.pipeline_mode<synchronous>, transform_indices = @transform_15, window_bounds = array<i64: 2, 24, 1>}, {pipeline_mode = #tpu.pipeline_mode<synchronous>, transform_indices = @transform_16, window_bounds = array<i64: 2, 24, 1>}, {pipeline_mode = #tpu.pipeline_mode<synchronous>, transform_indices = @transform_17, window_bounds = array<i64: 2, 8, 24>}, {pipeline_mode = #tpu.pipeline_mode<synchronous>, transform_indices = @transform_18, window_bounds = array<i64: 2, 8, 1>}, {transform_indices = @transform_19, window_bounds = array<i64: 1, 8, 64>}]} {
    %c0 = arith.constant 0 : index
    %c0_0 = arith.constant 0 : index
    %0 = vector.load %arg4[%c0, %c0_0] : memref<576x64xf32, #tpu.memory_space<vmem>>, vector<576x64xf32>
    %c0_1 = arith.constant 0 : index
    %c0_2 = arith.constant 0 : index
    %1 = vector.load %arg5[%c0_1, %c0_2] : memref<24x24xf32, #tpu.memory_space<vmem>>, vector<24x24xf32>
    %c0_3 = arith.constant 0 : index
    %c0_4 = arith.constant 0 : index
    %c0_5 = arith.constant 0 : index
    %2 = vector.load %arg1[%c0_3, %c0_4, %c0_5] : memref<1x4x256xf32, #tpu.memory_space<vmem>>, vector<1x4x256xf32>
    %3 = vector.shape_cast %2 : vector<1x4x256xf32> to vector<4x256xf32>
    %c0_6 = arith.constant 0 : index
    %c0_7 = arith.constant 0 : index
    %4 = vector.load %arg2[%c0_6, %c0_7] : memref<256x576xf32, #tpu.memory_space<vmem>>, vector<256x576xf32>
    %c0_8 = arith.constant 0 : index
    %c0_9 = arith.constant 0 : index
    %5 = vector.load %arg6[%c0_8, %c0_9] : memref<4x576xf32, #tpu.memory_space<vmem>>, vector<4x576xf32>
    %c0_10 = arith.constant 0 : index
    %c0_11 = arith.constant 0 : index
    %6 = vector.load %arg7[%c0_10, %c0_11] : memref<4x1xf32, #tpu.memory_space<vmem>>, vector<4x1xf32>
    %cst = arith.constant dense<0.000000e+00> : vector<4x576xf32>
    %7 = tpu.matmul %3, %4, %cst {dimension_numbers = #tpu.dot_dimension_numbers<[1], [0], [0], [1], [0, 0, 1, 1], [], []>} : vector<4x256xf32>, vector<256x576xf32>, vector<4x576xf32> -> vector<4x576xf32>
    %8 = arith.mulf %7, %5 : vector<4x576xf32>
    %cst_12 = arith.constant dense<0.000000e+00> : vector<4x64xf32>
    %9 = tpu.matmul %8, %0, %cst_12 {dimension_numbers = #tpu.dot_dimension_numbers<[1], [0], [0], [1], [0, 0, 1, 1], [], []>} : vector<4x576xf32>, vector<576x64xf32>, vector<4x64xf32> -> vector<4x64xf32>
    %10 = vector.broadcast %6 : vector<4x1xf32> to vector<4x64xf32>
    %11 = arith.addf %9, %10 : vector<4x64xf32>
    %cst_13 = arith.constant 3.000000e+00 : f32
    %12 = vector.broadcast %cst_13 : f32 to vector<4x64xf32>
    %13 = arith.addf %11, %12 : vector<4x64xf32>
    %cst_14 = arith.constant 0.000000e+00 : f32
    %cst_15 = arith.constant 6.000000e+00 : f32
    %14 = vector.broadcast %cst_14 : f32 to vector<4x64xf32>
    %15 = arith.maximumf %14, %13 : vector<4x64xf32>
    %16 = vector.broadcast %cst_15 : f32 to vector<4x64xf32>
    %17 = arith.minimumf %16, %15 : vector<4x64xf32>
    %18 = arith.mulf %11, %17 : vector<4x64xf32>
    %cst_16 = arith.constant 0.166666672 : f32
    %19 = vector.broadcast %cst_16 : f32 to vector<4x64xf32>
    %20 = arith.mulf %18, %19 : vector<4x64xf32>
    %c0_17 = arith.constant 0 : index
    %c0_18 = arith.constant 0 : index
    %21 = vector.load %arg8[%c0_17, %c0_18] : memref<8x4xf32, #tpu.memory_space<vmem>>, vector<8x4xf32>
    %cst_19 = arith.constant dense<0.000000e+00> : vector<8x64xf32>
    %22 = tpu.matmul %21, %20, %cst_19 {dimension_numbers = #tpu.dot_dimension_numbers<[1], [0], [0], [1], [0, 0, 1, 1], [], []>} : vector<8x4xf32>, vector<4x64xf32>, vector<8x64xf32> -> vector<8x64xf32>
    %c0_20 = arith.constant 0 : index
    %c0_21 = arith.constant 0 : index
    %23 = vector.load %arg9[%c0_20, %c0_21] : memref<8x1xf32, #tpu.memory_space<vmem>>, vector<8x1xf32>
    %24 = vector.broadcast %23 : vector<8x1xf32> to vector<8x64xf32>
    %25 = arith.addf %22, %24 : vector<8x64xf32>
    %cst_22 = arith.constant 3.000000e+00 : f32
    %26 = vector.broadcast %cst_22 : f32 to vector<8x64xf32>
    %27 = arith.addf %25, %26 : vector<8x64xf32>
    %cst_23 = arith.constant 0.000000e+00 : f32
    %cst_24 = arith.constant 6.000000e+00 : f32
    %28 = vector.broadcast %cst_23 : f32 to vector<8x64xf32>
    %29 = arith.maximumf %28, %27 : vector<8x64xf32>
    %30 = vector.broadcast %cst_24 : f32 to vector<8x64xf32>
    %31 = arith.minimumf %30, %29 : vector<8x64xf32>
    %32 = arith.mulf %25, %31 : vector<8x64xf32>
    %cst_25 = arith.constant 0.166666672 : f32
    %33 = vector.broadcast %cst_25 : f32 to vector<8x64xf32>
    %34 = arith.mulf %32, %33 : vector<8x64xf32>
    %c0_26 = arith.constant 0 : index
    %c0_27 = arith.constant 0 : index
    %35 = vector.load %arg3[%c0_26, %c0_27] : memref<64x576xf32, #tpu.memory_space<vmem>>, vector<64x576xf32>
    %c0_28 = arith.constant 0 : index
    %c0_29 = arith.constant 0 : index
    %c0_30 = arith.constant 0 : index
    %36 = vector.load %arg10[%c0_28, %c0_29, %c0_30] : memref<2x24x8xf32, #tpu.memory_space<vmem>>, vector<1x24x8xf32>
    %37 = vector.shape_cast %36 : vector<1x24x8xf32> to vector<24x8xf32>
    %cst_31 = arith.constant dense<0.000000e+00> : vector<24x64xf32>
    %38 = tpu.matmul %37, %34, %cst_31 {dimension_numbers = #tpu.dot_dimension_numbers<[1], [0], [0], [1], [0, 0, 1, 1], [], []>} : vector<24x8xf32>, vector<8x64xf32>, vector<24x64xf32> -> vector<24x64xf32>
    %c0_32 = arith.constant 0 : index
    %c0_33 = arith.constant 0 : index
    %c0_34 = arith.constant 0 : index
    %39 = vector.load %arg11[%c0_32, %c0_33, %c0_34] : memref<2x24x1xf32, #tpu.memory_space<vmem>>, vector<1x24x1xf32>
    %40 = vector.shape_cast %39 : vector<1x24x1xf32> to vector<24x1xf32>
    %41 = vector.broadcast %40 : vector<24x1xf32> to vector<24x64xf32>
    %42 = arith.addf %38, %41 : vector<24x64xf32>
    %c0_35 = arith.constant 0 : index
    %c0_36 = arith.constant 0 : index
    %c0_37 = arith.constant 0 : index
    %43 = vector.load %arg12[%c0_35, %c0_36, %c0_37] : memref<2x24x1xf32, #tpu.memory_space<vmem>>, vector<1x24x1xf32>
    %44 = vector.shape_cast %43 : vector<1x24x1xf32> to vector<24x1xf32>
    %c0_38 = arith.constant 0 : index
    %c0_39 = arith.constant 0 : index
    %c0_40 = arith.constant 0 : index
    %45 = vector.load %arg13[%c0_38, %c0_39, %c0_40] : memref<2x24x1xf32, #tpu.memory_space<vmem>>, vector<1x24x1xf32>
    %46 = vector.shape_cast %45 : vector<1x24x1xf32> to vector<24x1xf32>
    %cst_41 = arith.constant dense<0.000000e+00> : vector<24x64xf32>
    %47 = tpu.matmul %1, %42, %cst_41 {dimension_numbers = #tpu.dot_dimension_numbers<[1], [0], [0], [1], [0, 0, 1, 1], [], []>} : vector<24x24xf32>, vector<24x64xf32>, vector<24x64xf32> -> vector<24x64xf32>
    %cst_42 = arith.constant dense<0.000000e+00> : vector<24xf32>
    %48 = vector.multi_reduction <add>, %47, %cst_42 [1] : vector<24x64xf32> to vector<24xf32>
    %49 = vector.shape_cast %48 : vector<24xf32> to vector<24x1xf32>
    %50 = vector.broadcast %49 : vector<24x1xf32> to vector<24x64xf32>
    %51 = arith.subf %42, %50 : vector<24x64xf32>
    %52 = arith.mulf %51, %51 : vector<24x64xf32>
    %cst_43 = arith.constant dense<0.000000e+00> : vector<24x64xf32>
    %53 = tpu.matmul %1, %52, %cst_43 {dimension_numbers = #tpu.dot_dimension_numbers<[1], [0], [0], [1], [0, 0, 1, 1], [], []>} : vector<24x24xf32>, vector<24x64xf32>, vector<24x64xf32> -> vector<24x64xf32>
    %cst_44 = arith.constant dense<0.000000e+00> : vector<24xf32>
    %54 = vector.multi_reduction <add>, %53, %cst_44 [1] : vector<24x64xf32> to vector<24xf32>
    %55 = vector.shape_cast %54 : vector<24xf32> to vector<24x1xf32>
    %cst_45 = arith.constant 9.99999974E-6 : f32
    %56 = vector.broadcast %cst_45 : f32 to vector<24x1xf32>
    %57 = arith.addf %55, %56 : vector<24x1xf32>
    %58 = math.rsqrt %57 : vector<24x1xf32>
    %59 = vector.broadcast %58 : vector<24x1xf32> to vector<24x64xf32>
    %60 = arith.mulf %51, %59 : vector<24x64xf32>
    %61 = vector.broadcast %44 : vector<24x1xf32> to vector<24x64xf32>
    %62 = arith.mulf %60, %61 : vector<24x64xf32>
    %63 = vector.broadcast %46 : vector<24x1xf32> to vector<24x64xf32>
    %64 = arith.addf %62, %63 : vector<24x64xf32>
    %cst_46 = arith.constant 3.000000e+00 : f32
    %65 = vector.broadcast %cst_46 : f32 to vector<24x64xf32>
    %66 = arith.addf %64, %65 : vector<24x64xf32>
    %cst_47 = arith.constant 0.000000e+00 : f32
    %cst_48 = arith.constant 6.000000e+00 : f32
    %67 = vector.broadcast %cst_47 : f32 to vector<24x64xf32>
    %68 = arith.maximumf %67, %66 : vector<24x64xf32>
    %69 = vector.broadcast %cst_48 : f32 to vector<24x64xf32>
    %70 = arith.minimumf %69, %68 : vector<24x64xf32>
    %71 = arith.mulf %64, %70 : vector<24x64xf32>
    %cst_49 = arith.constant 0.166666672 : f32
    %72 = vector.broadcast %cst_49 : f32 to vector<24x64xf32>
    %73 = arith.mulf %71, %72 : vector<24x64xf32>
    %c0_50 = arith.constant 0 : index
    %c0_51 = arith.constant 0 : index
    %c0_52 = arith.constant 0 : index
    %74 = vector.load %arg14[%c0_50, %c0_51, %c0_52] : memref<2x24x576xf32, #tpu.memory_space<vmem>>, vector<1x24x576xf32>
    %75 = vector.shape_cast %74 : vector<1x24x576xf32> to vector<24x576xf32>
    %c0_53 = arith.constant 0 : index
    %c0_54 = arith.constant 0 : index
    %c0_55 = arith.constant 0 : index
    %76 = vector.load %arg15[%c0_53, %c0_54, %c0_55] : memref<2x24x1xf32, #tpu.memory_space<vmem>>, vector<1x24x1xf32>
    %77 = vector.shape_cast %76 : vector<1x24x1xf32> to vector<24x1xf32>
    %cst_56 = arith.constant dense<0.000000e+00> : vector<24x576xf32>
    %78 = tpu.matmul %73, %35, %cst_56 {dimension_numbers = #tpu.dot_dimension_numbers<[1], [0], [0], [1], [0, 0, 1, 1], [], []>} : vector<24x64xf32>, vector<64x576xf32>, vector<24x576xf32> -> vector<24x576xf32>
    %79 = arith.mulf %78, %75 : vector<24x576xf32>
    %cst_57 = arith.constant dense<0.000000e+00> : vector<24x64xf32>
    %80 = tpu.matmul %79, %0, %cst_57 {dimension_numbers = #tpu.dot_dimension_numbers<[1], [0], [0], [1], [0, 0, 1, 1], [], []>} : vector<24x576xf32>, vector<576x64xf32>, vector<24x64xf32> -> vector<24x64xf32>
    %81 = vector.broadcast %77 : vector<24x1xf32> to vector<24x64xf32>
    %82 = arith.addf %80, %81 : vector<24x64xf32>
    %c0_58 = arith.constant 0 : index
    %c0_59 = arith.constant 0 : index
    %c0_60 = arith.constant 0 : index
    %83 = vector.load %arg16[%c0_58, %c0_59, %c0_60] : memref<2x24x1xf32, #tpu.memory_space<vmem>>, vector<1x24x1xf32>
    %84 = vector.shape_cast %83 : vector<1x24x1xf32> to vector<24x1xf32>
    %c0_61 = arith.constant 0 : index
    %c0_62 = arith.constant 0 : index
    %c0_63 = arith.constant 0 : index
    %85 = vector.load %arg17[%c0_61, %c0_62, %c0_63] : memref<2x24x1xf32, #tpu.memory_space<vmem>>, vector<1x24x1xf32>
    %86 = vector.shape_cast %85 : vector<1x24x1xf32> to vector<24x1xf32>
    %cst_64 = arith.constant dense<0.000000e+00> : vector<24x64xf32>
    %87 = tpu.matmul %1, %82, %cst_64 {dimension_numbers = #tpu.dot_dimension_numbers<[1], [0], [0], [1], [0, 0, 1, 1], [], []>} : vector<24x24xf32>, vector<24x64xf32>, vector<24x64xf32> -> vector<24x64xf32>
    %cst_65 = arith.constant dense<0.000000e+00> : vector<24xf32>
    %88 = vector.multi_reduction <add>, %87, %cst_65 [1] : vector<24x64xf32> to vector<24xf32>
    %89 = vector.shape_cast %88 : vector<24xf32> to vector<24x1xf32>
    %90 = vector.broadcast %89 : vector<24x1xf32> to vector<24x64xf32>
    %91 = arith.subf %82, %90 : vector<24x64xf32>
    %92 = arith.mulf %91, %91 : vector<24x64xf32>
    %cst_66 = arith.constant dense<0.000000e+00> : vector<24x64xf32>
    %93 = tpu.matmul %1, %92, %cst_66 {dimension_numbers = #tpu.dot_dimension_numbers<[1], [0], [0], [1], [0, 0, 1, 1], [], []>} : vector<24x24xf32>, vector<24x64xf32>, vector<24x64xf32> -> vector<24x64xf32>
    %cst_67 = arith.constant dense<0.000000e+00> : vector<24xf32>
    %94 = vector.multi_reduction <add>, %93, %cst_67 [1] : vector<24x64xf32> to vector<24xf32>
    %95 = vector.shape_cast %94 : vector<24xf32> to vector<24x1xf32>
    %cst_68 = arith.constant 9.99999974E-6 : f32
    %96 = vector.broadcast %cst_68 : f32 to vector<24x1xf32>
    %97 = arith.addf %95, %96 : vector<24x1xf32>
    %98 = math.rsqrt %97 : vector<24x1xf32>
    %99 = vector.broadcast %98 : vector<24x1xf32> to vector<24x64xf32>
    %100 = arith.mulf %91, %99 : vector<24x64xf32>
    %101 = vector.broadcast %84 : vector<24x1xf32> to vector<24x64xf32>
    %102 = arith.mulf %100, %101 : vector<24x64xf32>
    %103 = vector.broadcast %86 : vector<24x1xf32> to vector<24x64xf32>
    %104 = arith.addf %102, %103 : vector<24x64xf32>
    %cst_69 = arith.constant 3.000000e+00 : f32
    %105 = vector.broadcast %cst_69 : f32 to vector<24x64xf32>
    %106 = arith.addf %104, %105 : vector<24x64xf32>
    %cst_70 = arith.constant 0.000000e+00 : f32
    %cst_71 = arith.constant 6.000000e+00 : f32
    %107 = vector.broadcast %cst_70 : f32 to vector<24x64xf32>
    %108 = arith.maximumf %107, %106 : vector<24x64xf32>
    %109 = vector.broadcast %cst_71 : f32 to vector<24x64xf32>
    %110 = arith.minimumf %109, %108 : vector<24x64xf32>
    %111 = arith.mulf %104, %110 : vector<24x64xf32>
    %cst_72 = arith.constant 0.166666672 : f32
    %112 = vector.broadcast %cst_72 : f32 to vector<24x64xf32>
    %113 = arith.mulf %111, %112 : vector<24x64xf32>
    %c0_73 = arith.constant 0 : index
    %c0_74 = arith.constant 0 : index
    %c0_75 = arith.constant 0 : index
    %114 = vector.load %arg18[%c0_73, %c0_74, %c0_75] : memref<2x8x24xf32, #tpu.memory_space<vmem>>, vector<1x8x24xf32>
    %115 = vector.shape_cast %114 : vector<1x8x24xf32> to vector<8x24xf32>
    %cst_76 = arith.constant dense<0.000000e+00> : vector<8x64xf32>
    %116 = tpu.matmul %115, %113, %cst_76 {dimension_numbers = #tpu.dot_dimension_numbers<[1], [0], [0], [1], [0, 0, 1, 1], [], []>} : vector<8x24xf32>, vector<24x64xf32>, vector<8x64xf32> -> vector<8x64xf32>
    %c0_77 = arith.constant 0 : index
    %c0_78 = arith.constant 0 : index
    %c0_79 = arith.constant 0 : index
    %117 = vector.load %arg19[%c0_77, %c0_78, %c0_79] : memref<2x8x1xf32, #tpu.memory_space<vmem>>, vector<1x8x1xf32>
    %118 = vector.shape_cast %117 : vector<1x8x1xf32> to vector<8x1xf32>
    %119 = vector.broadcast %118 : vector<8x1xf32> to vector<8x64xf32>
    %120 = arith.addf %116, %119 : vector<8x64xf32>
    %121 = arith.addf %120, %34 : vector<8x64xf32>
    %c1 = arith.constant 1 : index
    %c0_80 = arith.constant 0 : index
    %c0_81 = arith.constant 0 : index
    %122 = vector.load %arg10[%c1, %c0_80, %c0_81] : memref<2x24x8xf32, #tpu.memory_space<vmem>>, vector<1x24x8xf32>
    %123 = vector.shape_cast %122 : vector<1x24x8xf32> to vector<24x8xf32>
    %cst_82 = arith.constant dense<0.000000e+00> : vector<24x64xf32>
    %124 = tpu.matmul %123, %121, %cst_82 {dimension_numbers = #tpu.dot_dimension_numbers<[1], [0], [0], [1], [0, 0, 1, 1], [], []>} : vector<24x8xf32>, vector<8x64xf32>, vector<24x64xf32> -> vector<24x64xf32>
    %c1_83 = arith.constant 1 : index
    %c0_84 = arith.constant 0 : index
    %c0_85 = arith.constant 0 : index
    %125 = vector.load %arg11[%c1_83, %c0_84, %c0_85] : memref<2x24x1xf32, #tpu.memory_space<vmem>>, vector<1x24x1xf32>
    %126 = vector.shape_cast %125 : vector<1x24x1xf32> to vector<24x1xf32>
    %127 = vector.broadcast %126 : vector<24x1xf32> to vector<24x64xf32>
    %128 = arith.addf %124, %127 : vector<24x64xf32>
    %c1_86 = arith.constant 1 : index
    %c0_87 = arith.constant 0 : index
    %c0_88 = arith.constant 0 : index
    %129 = vector.load %arg12[%c1_86, %c0_87, %c0_88] : memref<2x24x1xf32, #tpu.memory_space<vmem>>, vector<1x24x1xf32>
    %130 = vector.shape_cast %129 : vector<1x24x1xf32> to vector<24x1xf32>
    %c1_89 = arith.constant 1 : index
    %c0_90 = arith.constant 0 : index
    %c0_91 = arith.constant 0 : index
    %131 = vector.load %arg13[%c1_89, %c0_90, %c0_91] : memref<2x24x1xf32, #tpu.memory_space<vmem>>, vector<1x24x1xf32>
    %132 = vector.shape_cast %131 : vector<1x24x1xf32> to vector<24x1xf32>
    %cst_92 = arith.constant dense<0.000000e+00> : vector<24x64xf32>
    %133 = tpu.matmul %1, %128, %cst_92 {dimension_numbers = #tpu.dot_dimension_numbers<[1], [0], [0], [1], [0, 0, 1, 1], [], []>} : vector<24x24xf32>, vector<24x64xf32>, vector<24x64xf32> -> vector<24x64xf32>
    %cst_93 = arith.constant dense<0.000000e+00> : vector<24xf32>
    %134 = vector.multi_reduction <add>, %133, %cst_93 [1] : vector<24x64xf32> to vector<24xf32>
    %135 = vector.shape_cast %134 : vector<24xf32> to vector<24x1xf32>
    %136 = vector.broadcast %135 : vector<24x1xf32> to vector<24x64xf32>
    %137 = arith.subf %128, %136 : vector<24x64xf32>
    %138 = arith.mulf %137, %137 : vector<24x64xf32>
    %cst_94 = arith.constant dense<0.000000e+00> : vector<24x64xf32>
    %139 = tpu.matmul %1, %138, %cst_94 {dimension_numbers = #tpu.dot_dimension_numbers<[1], [0], [0], [1], [0, 0, 1, 1], [], []>} : vector<24x24xf32>, vector<24x64xf32>, vector<24x64xf32> -> vector<24x64xf32>
    %cst_95 = arith.constant dense<0.000000e+00> : vector<24xf32>
    %140 = vector.multi_reduction <add>, %139, %cst_95 [1] : vector<24x64xf32> to vector<24xf32>
    %141 = vector.shape_cast %140 : vector<24xf32> to vector<24x1xf32>
    %cst_96 = arith.constant 9.99999974E-6 : f32
    %142 = vector.broadcast %cst_96 : f32 to vector<24x1xf32>
    %143 = arith.addf %141, %142 : vector<24x1xf32>
    %144 = math.rsqrt %143 : vector<24x1xf32>
    %145 = vector.broadcast %144 : vector<24x1xf32> to vector<24x64xf32>
    %146 = arith.mulf %137, %145 : vector<24x64xf32>
    %147 = vector.broadcast %130 : vector<24x1xf32> to vector<24x64xf32>
    %148 = arith.mulf %146, %147 : vector<24x64xf32>
    %149 = vector.broadcast %132 : vector<24x1xf32> to vector<24x64xf32>
    %150 = arith.addf %148, %149 : vector<24x64xf32>
    %cst_97 = arith.constant 3.000000e+00 : f32
    %151 = vector.broadcast %cst_97 : f32 to vector<24x64xf32>
    %152 = arith.addf %150, %151 : vector<24x64xf32>
    %cst_98 = arith.constant 0.000000e+00 : f32
    %cst_99 = arith.constant 6.000000e+00 : f32
    %153 = vector.broadcast %cst_98 : f32 to vector<24x64xf32>
    %154 = arith.maximumf %153, %152 : vector<24x64xf32>
    %155 = vector.broadcast %cst_99 : f32 to vector<24x64xf32>
    %156 = arith.minimumf %155, %154 : vector<24x64xf32>
    %157 = arith.mulf %150, %156 : vector<24x64xf32>
    %cst_100 = arith.constant 0.166666672 : f32
    %158 = vector.broadcast %cst_100 : f32 to vector<24x64xf32>
    %159 = arith.mulf %157, %158 : vector<24x64xf32>
    %c1_101 = arith.constant 1 : index
    %c0_102 = arith.constant 0 : index
    %c0_103 = arith.constant 0 : index
    %160 = vector.load %arg14[%c1_101, %c0_102, %c0_103] : memref<2x24x576xf32, #tpu.memory_space<vmem>>, vector<1x24x576xf32>
    %161 = vector.shape_cast %160 : vector<1x24x576xf32> to vector<24x576xf32>
    %c1_104 = arith.constant 1 : index
    %c0_105 = arith.constant 0 : index
    %c0_106 = arith.constant 0 : index
    %162 = vector.load %arg15[%c1_104, %c0_105, %c0_106] : memref<2x24x1xf32, #tpu.memory_space<vmem>>, vector<1x24x1xf32>
    %163 = vector.shape_cast %162 : vector<1x24x1xf32> to vector<24x1xf32>
    %cst_107 = arith.constant dense<0.000000e+00> : vector<24x576xf32>
    %164 = tpu.matmul %159, %35, %cst_107 {dimension_numbers = #tpu.dot_dimension_numbers<[1], [0], [0], [1], [0, 0, 1, 1], [], []>} : vector<24x64xf32>, vector<64x576xf32>, vector<24x576xf32> -> vector<24x576xf32>
    %165 = arith.mulf %164, %161 : vector<24x576xf32>
    %cst_108 = arith.constant dense<0.000000e+00> : vector<24x64xf32>
    %166 = tpu.matmul %165, %0, %cst_108 {dimension_numbers = #tpu.dot_dimension_numbers<[1], [0], [0], [1], [0, 0, 1, 1], [], []>} : vector<24x576xf32>, vector<576x64xf32>, vector<24x64xf32> -> vector<24x64xf32>
    %167 = vector.broadcast %163 : vector<24x1xf32> to vector<24x64xf32>
    %168 = arith.addf %166, %167 : vector<24x64xf32>
    %c1_109 = arith.constant 1 : index
    %c0_110 = arith.constant 0 : index
    %c0_111 = arith.constant 0 : index
    %169 = vector.load %arg16[%c1_109, %c0_110, %c0_111] : memref<2x24x1xf32, #tpu.memory_space<vmem>>, vector<1x24x1xf32>
    %170 = vector.shape_cast %169 : vector<1x24x1xf32> to vector<24x1xf32>
    %c1_112 = arith.constant 1 : index
    %c0_113 = arith.constant 0 : index
    %c0_114 = arith.constant 0 : index
    %171 = vector.load %arg17[%c1_112, %c0_113, %c0_114] : memref<2x24x1xf32, #tpu.memory_space<vmem>>, vector<1x24x1xf32>
    %172 = vector.shape_cast %171 : vector<1x24x1xf32> to vector<24x1xf32>
    %cst_115 = arith.constant dense<0.000000e+00> : vector<24x64xf32>
    %173 = tpu.matmul %1, %168, %cst_115 {dimension_numbers = #tpu.dot_dimension_numbers<[1], [0], [0], [1], [0, 0, 1, 1], [], []>} : vector<24x24xf32>, vector<24x64xf32>, vector<24x64xf32> -> vector<24x64xf32>
    %cst_116 = arith.constant dense<0.000000e+00> : vector<24xf32>
    %174 = vector.multi_reduction <add>, %173, %cst_116 [1] : vector<24x64xf32> to vector<24xf32>
    %175 = vector.shape_cast %174 : vector<24xf32> to vector<24x1xf32>
    %176 = vector.broadcast %175 : vector<24x1xf32> to vector<24x64xf32>
    %177 = arith.subf %168, %176 : vector<24x64xf32>
    %178 = arith.mulf %177, %177 : vector<24x64xf32>
    %cst_117 = arith.constant dense<0.000000e+00> : vector<24x64xf32>
    %179 = tpu.matmul %1, %178, %cst_117 {dimension_numbers = #tpu.dot_dimension_numbers<[1], [0], [0], [1], [0, 0, 1, 1], [], []>} : vector<24x24xf32>, vector<24x64xf32>, vector<24x64xf32> -> vector<24x64xf32>
    %cst_118 = arith.constant dense<0.000000e+00> : vector<24xf32>
    %180 = vector.multi_reduction <add>, %179, %cst_118 [1] : vector<24x64xf32> to vector<24xf32>
    %181 = vector.shape_cast %180 : vector<24xf32> to vector<24x1xf32>
    %cst_119 = arith.constant 9.99999974E-6 : f32
    %182 = vector.broadcast %cst_119 : f32 to vector<24x1xf32>
    %183 = arith.addf %181, %182 : vector<24x1xf32>
    %184 = math.rsqrt %183 : vector<24x1xf32>
    %185 = vector.broadcast %184 : vector<24x1xf32> to vector<24x64xf32>
    %186 = arith.mulf %177, %185 : vector<24x64xf32>
    %187 = vector.broadcast %170 : vector<24x1xf32> to vector<24x64xf32>
    %188 = arith.mulf %186, %187 : vector<24x64xf32>
    %189 = vector.broadcast %172 : vector<24x1xf32> to vector<24x64xf32>
    %190 = arith.addf %188, %189 : vector<24x64xf32>
    %cst_120 = arith.constant 3.000000e+00 : f32
    %191 = vector.broadcast %cst_120 : f32 to vector<24x64xf32>
    %192 = arith.addf %190, %191 : vector<24x64xf32>
    %cst_121 = arith.constant 0.000000e+00 : f32
    %cst_122 = arith.constant 6.000000e+00 : f32
    %193 = vector.broadcast %cst_121 : f32 to vector<24x64xf32>
    %194 = arith.maximumf %193, %192 : vector<24x64xf32>
    %195 = vector.broadcast %cst_122 : f32 to vector<24x64xf32>
    %196 = arith.minimumf %195, %194 : vector<24x64xf32>
    %197 = arith.mulf %190, %196 : vector<24x64xf32>
    %cst_123 = arith.constant 0.166666672 : f32
    %198 = vector.broadcast %cst_123 : f32 to vector<24x64xf32>
    %199 = arith.mulf %197, %198 : vector<24x64xf32>
    %c1_124 = arith.constant 1 : index
    %c0_125 = arith.constant 0 : index
    %c0_126 = arith.constant 0 : index
    %200 = vector.load %arg18[%c1_124, %c0_125, %c0_126] : memref<2x8x24xf32, #tpu.memory_space<vmem>>, vector<1x8x24xf32>
    %201 = vector.shape_cast %200 : vector<1x8x24xf32> to vector<8x24xf32>
    %cst_127 = arith.constant dense<0.000000e+00> : vector<8x64xf32>
    %202 = tpu.matmul %201, %199, %cst_127 {dimension_numbers = #tpu.dot_dimension_numbers<[1], [0], [0], [1], [0, 0, 1, 1], [], []>} : vector<8x24xf32>, vector<24x64xf32>, vector<8x64xf32> -> vector<8x64xf32>
    %c1_128 = arith.constant 1 : index
    %c0_129 = arith.constant 0 : index
    %c0_130 = arith.constant 0 : index
    %203 = vector.load %arg19[%c1_128, %c0_129, %c0_130] : memref<2x8x1xf32, #tpu.memory_space<vmem>>, vector<1x8x1xf32>
    %204 = vector.shape_cast %203 : vector<1x8x1xf32> to vector<8x1xf32>
    %205 = vector.broadcast %204 : vector<8x1xf32> to vector<8x64xf32>
    %206 = arith.addf %202, %205 : vector<8x64xf32>
    %207 = arith.addf %206, %121 : vector<8x64xf32>
    %c0_131 = arith.constant 0 : index
    %c0_132 = arith.constant 0 : index
    %c0_133 = arith.constant 0 : index
    %208 = vector.load %arg20[%c0_131, %c0_132, %c0_133] : memref<1x8x64xf32, #tpu.memory_space<vmem>>, vector<1x8x64xf32>
    %209 = vector.shape_cast %208 : vector<1x8x64xf32> to vector<8x64xf32>
    %210 = vector.shape_cast %207 : vector<8x64xf32> to vector<1x8x64xf32>
    tpu.vector_store %arg20[%c0_131, %c0_132, %c0_133], %210 {strides = array<i32>} : memref<1x8x64xf32, #tpu.memory_space<vmem>>, vector<1x8x64xf32>,
    return
  }
  func.func @transform_0(%arg0: i32) -> (i32, i32, i32) {
    %c0_i32 = arith.constant 0 : i32
    %c0_i32_0 = arith.constant 0 : i32
    %c0_i32_1 = arith.constant 0 : i32
    return %arg0, %c0_i32, %c0_i32_0 : i32, i32, i32
  }
  func.func @transform_1(%arg0: i32) -> (i32, i32) {
    %c0_i32 = arith.constant 0 : i32
    %c0_i32_0 = arith.constant 0 : i32
    %c0_i32_1 = arith.constant 0 : i32
    return %c0_i32, %c0_i32_0 : i32, i32
  }
  func.func @transform_2(%arg0: i32) -> (i32, i32) {
    %c0_i32 = arith.constant 0 : i32
    %c0_i32_0 = arith.constant 0 : i32
    %c0_i32_1 = arith.constant 0 : i32
    return %c0_i32, %c0_i32_0 : i32, i32
  }
  func.func @transform_3(%arg0: i32) -> (i32, i32) {
    %c0_i32 = arith.constant 0 : i32
    %c0_i32_0 = arith.constant 0 : i32
    %c0_i32_1 = arith.constant 0 : i32
    return %c0_i32, %c0_i32_0 : i32, i32
  }
  func.func @transform_4(%arg0: i32) -> (i32, i32) {
    %c0_i32 = arith.constant 0 : i32
    %c0_i32_0 = arith.constant 0 : i32
    %c0_i32_1 = arith.constant 0 : i32
    return %c0_i32, %c0_i32_0 : i32, i32
  }
  func.func @transform_5(%arg0: i32) -> (i32, i32) {
    %c0_i32 = arith.constant 0 : i32
    %c0_i32_0 = arith.constant 0 : i32
    %c0_i32_1 = arith.constant 0 : i32
    return %c0_i32, %c0_i32_0 : i32, i32
  }
  func.func @transform_6(%arg0: i32) -> (i32, i32) {
    %c0_i32 = arith.constant 0 : i32
    %c0_i32_0 = arith.constant 0 : i32
    %c0_i32_1 = arith.constant 0 : i32
    return %c0_i32, %c0_i32_0 : i32, i32
  }
  func.func @transform_7(%arg0: i32) -> (i32, i32) {
    %c0_i32 = arith.constant 0 : i32
    %c0_i32_0 = arith.constant 0 : i32
    %c0_i32_1 = arith.constant 0 : i32
    return %c0_i32, %c0_i32_0 : i32, i32
  }
  func.func @transform_8(%arg0: i32) -> (i32, i32) {
    %c0_i32 = arith.constant 0 : i32
    %c0_i32_0 = arith.constant 0 : i32
    %c0_i32_1 = arith.constant 0 : i32
    return %c0_i32, %c0_i32_0 : i32, i32
  }
  func.func @transform_9(%arg0: i32) -> (i32, i32, i32) {
    %c0_i32 = arith.constant 0 : i32
    %c0_i32_0 = arith.constant 0 : i32
    %c0_i32_1 = arith.constant 0 : i32
    %c0_i32_2 = arith.constant 0 : i32
    return %c0_i32, %c0_i32_0, %c0_i32_1 : i32, i32, i32
  }
  func.func @transform_10(%arg0: i32) -> (i32, i32, i32) {
    %c0_i32 = arith.constant 0 : i32
    %c0_i32_0 = arith.constant 0 : i32
    %c0_i32_1 = arith.constant 0 : i32
    %c0_i32_2 = arith.constant 0 : i32
    return %c0_i32, %c0_i32_0, %c0_i32_1 : i32, i32, i32
  }
  func.func @transform_11(%arg0: i32) -> (i32, i32, i32) {
    %c0_i32 = arith.constant 0 : i32
    %c0_i32_0 = arith.constant 0 : i32
    %c0_i32_1 = arith.constant 0 : i32
    %c0_i32_2 = arith.constant 0 : i32
    return %c0_i32, %c0_i32_0, %c0_i32_1 : i32, i32, i32
  }
  func.func @transform_12(%arg0: i32) -> (i32, i32, i32) {
    %c0_i32 = arith.constant 0 : i32
    %c0_i32_0 = arith.constant 0 : i32
    %c0_i32_1 = arith.constant 0 : i32
    %c0_i32_2 = arith.constant 0 : i32
    return %c0_i32, %c0_i32_0, %c0_i32_1 : i32, i32, i32
  }
  func.func @transform_13(%arg0: i32) -> (i32, i32, i32) {
    %c0_i32 = arith.constant 0 : i32
    %c0_i32_0 = arith.constant 0 : i32
    %c0_i32_1 = arith.constant 0 : i32
    %c0_i32_2 = arith.constant 0 : i32
    return %c0_i32, %c0_i32_0, %c0_i32_1 : i32, i32, i32
  }
  func.func @transform_14(%arg0: i32) -> (i32, i32, i32) {
    %c0_i32 = arith.constant 0 : i32
    %c0_i32_0 = arith.constant 0 : i32
    %c0_i32_1 = arith.constant 0 : i32
    %c0_i32_2 = arith.constant 0 : i32
    return %c0_i32, %c0_i32_0, %c0_i32_1 : i32, i32, i32
  }
  func.func @transform_15(%arg0: i32) -> (i32, i32, i32) {
    %c0_i32 = arith.constant 0 : i32
    %c0_i32_0 = arith.constant 0 : i32
    %c0_i32_1 = arith.constant 0 : i32
    %c0_i32_2 = arith.constant 0 : i32
    return %c0_i32, %c0_i32_0, %c0_i32_1 : i32, i32, i32
  }
  func.func @transform_16(%arg0: i32) -> (i32, i32, i32) {
    %c0_i32 = arith.constant 0 : i32
    %c0_i32_0 = arith.constant 0 : i32
    %c0_i32_1 = arith.constant 0 : i32
    %c0_i32_2 = arith.constant 0 : i32
    return %c0_i32, %c0_i32_0, %c0_i32_1 : i32, i32, i32
  }
  func.func @transform_17(%arg0: i32) -> (i32, i32, i32) {
    %c0_i32 = arith.constant 0 : i32
    %c0_i32_0 = arith.constant 0 : i32
    %c0_i32_1 = arith.constant 0 : i32
    %c0_i32_2 = arith.constant 0 : i32
    return %c0_i32, %c0_i32_0, %c0_i32_1 : i32, i32, i32
  }
  func.func @transform_18(%arg0: i32) -> (i32, i32, i32) {
    %c0_i32 = arith.constant 0 : i32
    %c0_i32_0 = arith.constant 0 : i32
    %c0_i32_1 = arith.constant 0 : i32
    %c0_i32_2 = arith.constant 0 : i32
    return %c0_i32, %c0_i32_0, %c0_i32_1 : i32, i32, i32
  }
  func.func @transform_19(%arg0: i32) -> (i32, i32, i32) {
    %c0_i32 = arith.constant 0 : i32
    %c0_i32_0 = arith.constant 0 : i32
    %c0_i32_1 = arith.constant 0 : i32
    return %arg0, %c0_i32, %c0_i32_0 : i32, i32, i32
  }
}

</mosaic_0001>

<bundles_post_ra>
// kernel: down_block_forward.1
= control target key start
LH: loop header
LB: loop body
LE: loop exit
PB: predicated region body
PF: predicated region fallthrough
CT: control target
= control target key end

     0   :  { %s5127_s0 = inlined_call_operand.vmem [shape: f32[2,4,256], index: 0, kind: input, shape index: {}]   ;;  %s5128_s1 = inlined_call_operand.vmem [shape: f32[256,576], index: 1, kind: input, shape index: {}]   ;;  %s5129_s2 = inlined_call_operand.hbm [shape: f32[64,576], index: 2, kind: input, shape index: {}]   ;;  %s5130_s3 = inlined_call_operand.vmem [shape: f32[576,64], index: 3, kind: input, shape index: {}]   ;;  %s5131_s4 = inlined_call_operand.vmem [shape: f32[24,24], index: 4, kind: input, shape index: {}]   ;;  %s5132_s5 = inlined_call_operand.vmem [shape: f32[4,576], index: 5, kind: input, shape index: {}]   ;;  %s5133_s6 = inlined_call_operand.vmem [shape: f32[4,1], index: 6, kind: input, shape index: {}]   ;;  %s5134_s7 = inlined_call_operand.vmem [shape: f32[8,4], index: 7, kind: input, shape index: {}]   ;;  %s5135_s8 = inlined_call_operand.vmem [shape: f32[8,1], index: 8, kind: input, shape index: {}]   ;;  %s5136_s9 = inlined_call_operand.vmem [shape: f32[2,24,8], index: 9, kind: input, shape index: {}]   ;;  %s5137_s10 = inlined_call_operand.vmem [shape: f32[2,24,1], index: 10, kind: input, shape index: {}]   ;;  %s5138_s11 = inlined_call_operand.vmem [shape: f32[2,24,1], index: 11, kind: input, shape index: {}]   ;;  %s5139_s12 = inlined_call_operand.vmem [shape: f32[2,24,1], index: 12, kind: input, shape index: {}]   ;;  %s5140_s13 = inlined_call_operand.vmem [shape: f32[2,24,576], index: 13, kind: input, shape index: {}]   ;;  %s5141_s14 = inlined_call_operand.vmem [shape: f32[2,24,1], index: 14, kind: input, shape index: {}]   ;;  %s5142_s15 = inlined_call_operand.vmem [shape: f32[2,24,1], index: 15, kind: input, shape index: {}]   ;;  %s5143_s16 = inlined_call_operand.vmem [shape: f32[2,24,1], index: 16, kind: input, shape index: {}]   ;;  %s5144_s17 = inlined_call_operand.vmem [shape: f32[2,8,24], index: 17, kind: input, shape index: {}]   ;;  %s5145_s18 = inlined_call_operand.vmem [shape: f32[2,8,1], index: 18, kind: input, shape index: {}]   ;;  %s5146_s19 = inlined_call_operand.vmem [shape: f32[2,8,64], index: 19, kind: output, shape index: {}]  }
   0x1   :  { %5195 = sst [smem:[#allocation51_spill]] %s5127_s0 }
   0x2   :  { %5196 = sst [smem:[#allocation52_spill]] %s5128_s1 }
   0x3   :  { %5197 = sst [smem:[#allocation53_spill]] %s5129_s2 }
   0x4   :  { %5198 = sst [smem:[#allocation54_spill]] %s5130_s3 }
   0x5   :  { %24 = vsyncpa [#allocation3], 0  ;;  %s3272_s0 = smov 0  }
   0x6 LB: > { %5199 = sst [smem:[#allocation5_spill]] %s3166_s0  ;;  %s3281_s22 = sadd.s32 4294967295, %s3166_s0   ;;  %s3166_s0 = sphi %s3272_s0, %s30_s0  }
   0x7   : > { %s5200_s21 = sld [smem:[#allocation53_spill]]  ;;  %p2872_p0 = scmp.ge.s32.totalorder %s3166_s0, 1 }
   0x8   : > { %p465_p1 = scmp.lt.s32.totalorder %s3166_s0, 3  ;;  %p3000_p2 = scmp.eq.s32.totalorder %s3281_s22, 0 }
   0x9   : > { %s3168_s2 = smov [#allocation2]   ;;  %s3169_s24 = smov 640  }
   0xa   : > { %p466_p3 = pnand %p2872_p0, %p465_p1  ;;  %s481_s23 = sshll.u32 %s3168_s2, 4  ;;  %s482_s23 = int_to_ptr.vmem [resolvable:$true] %s481_s23 }
   0xb   : > { %s3170_s25 = smov 40  }
   0xc   : > { %p2996_p4 = pneg %p466_p3  ;;  %553 = sbr.rel (%p466_p3) target bundleno = 3988 (0xf94), region = 96 }
   0xd   : > { %s479_s1 = sshll.u32 %s5200_s21, 4  ;;  %s480_s1 = int_to_ptr.hbm [resolvable:$true] %s479_s1 }
   0xe   : > { %p2997_p5 = pnand %p3000_p2, %p2996_p4 }
  0x10   : > { %2999 = dma.hbm_to_vmem [thread:$0]  (!%p2997_p5), %s480_s1, 5120, %s482_s23, [#allocation3], %s3169_s24, %s3169_s24, %s3170_s25  }
  0x11   : > { %3161 = dma.done.wait (%p3000_p2), [#allocation3], 5120  }
  0x12   : > { %3163 = vsyncadd (%p3000_p2), [#allocation3], 4294962176  ;;  %s5201_s27 = sld [smem:[#allocation52_spill]]  ;;  %p609_p6 = scmp.lt.s32.totalorder %s3281_s22, 1  ;;  %vm1092_vm0 = vcmask 523264   ;;  %vm1212_vm1 = vcmask 1043456  }
  0x13   : > { %s5202_s1 = sld [smem:[#allocation51_spill]]  ;;  %vm1208_vm2 = vcmask 31744   ;;  %vm1302_vm3 = vcmask 64512   ;;  %vm1344_vm4 = vcmask 195584  }
  0x14   : > { %s5297_s22 = smov (!%p609_p6, %s3281_s22), 1  ;;  %s5203_s0 = sld [smem:[#allocation54_spill]] }
  0x15   : > { %s2991_s30 = sshll.u32 %s5297_s22, 3 }
  0x16   : > { %s617_s3 = scalar_lea.vmem %s5146_s19, %s2991_s30 }
  0x18   : > { %v769_v0 = vld [vmem:[%s5201_s27 + $0x258] sm:$0xff]  ;;  %v764_v2 = vld [vmem:[%s5201_s27 + $0x230] sm:$0xff]  ;;  %v759_v4 = vld [vmem:[%s5201_s27 + $0x208] sm:$0xff] }
  0x19   : > { %v849_v1 = vld [vmem:[%s5201_s27 + $0x4d8] sm:$0xff]  ;;  %864 = vmatpush.msra.mxu0 %v769_v0  ;;  %v844_v3 = vld [vmem:[%s5201_s27 + $0x4b0] sm:$0xff]  ;;  %v839_v5 = vld [vmem:[%s5201_s27 + $0x488] sm:$0xff]  ;;  %s613_s23 = scalar_lea.vmem %s5202_s1, %s2991_s30 }
  0x1a   : > { %884 = vmatpush.msra.mxu1 %v849_v1  ;;  %v770_v6 = vld [vmem:[%s5201_s27 + $0x260] sm:$0xff]  ;;  %v765_v10 = vld [vmem:[%s5201_s27 + $0x238] sm:$0xff]  ;;  %v760_v12 = vld [vmem:[%s5201_s27 + $0x210] sm:$0xff]  ;;  %s5204_s25 = smov %s5203_s0 }
  0x1b   : > { %865 = vmatpush.msra.mxu0 %v764_v2  ;;  %v754_v7 = vld [vmem:[%s5201_s27 + $0x1e0] sm:$0xff]  ;;  %904 = vmatpush.msra.mxu2 %v770_v6  ;;  %v845_v11 = vld [vmem:[%s5201_s27 + $0x4b8] sm:$0xff]  ;;  %v840_v13 = vld [vmem:[%s5201_s27 + $0x490] sm:$0xff] }
  0x1c   : > { %885 = vmatpush.msra.mxu1 %v844_v3  ;;  %v850_v8 = vld [vmem:[%s5201_s27 + $0x4e0] sm:$0xff]  ;;  %v749_v14 = vld [vmem:[%s5201_s27 + $0x1b8] sm:$0xff]  ;;  %v755_v16 = vld [vmem:[%s5201_s27 + $0x1e8] sm:$0xff] }
  0x1d   : > { %v834_v9 = vld [vmem:[%s5201_s27 + $0x460] sm:$0xff]  ;;  %924 = vmatpush.msra.mxu3 %v850_v8  ;;  %866 = vmatpush.msra.mxu0 %v759_v4  ;;  %v829_v15 = vld [vmem:[%s5201_s27 + $0x438] sm:$0xff]  ;;  %v835_v17 = vld [vmem:[%s5201_s27 + $0x468] sm:$0xff] }
  0x1e   : > { %886 = vmatpush.msra.mxu1 %v839_v5  ;;  %905 = vmatpush.msra.mxu2 %v765_v10  ;;  %v744_v18 = vld [vmem:[%s5201_s27 + $0x190] sm:$0xff]  ;;  %v750_v20 = vld [vmem:[%s5201_s27 + $0x1c0] sm:$0xff]  ;;  %v739_v22 = vld [vmem:[%s5201_s27 + $0x168] sm:$0xff] }
  0x1f   : > { %925 = vmatpush.msra.mxu3 %v845_v11  ;;  %867 = vmatpush.msra.mxu0 %v754_v7  ;;  %v824_v19 = vld [vmem:[%s5201_s27 + $0x410] sm:$0xff]  ;;  %v830_v21 = vld [vmem:[%s5201_s27 + $0x440] sm:$0xff]  ;;  %v819_v23 = vld [vmem:[%s5201_s27 + $0x3e8] sm:$0xff] }
  0x20   : > { %887 = vmatpush.msra.mxu1 %v834_v9  ;;  %906 = vmatpush.msra.mxu2 %v760_v12  ;;  %v745_v24 = vld [vmem:[%s5201_s27 + $0x198] sm:$0xff]  ;;  %v734_v26 = vld [vmem:[%s5201_s27 + $0x140] sm:$0xff]  ;;  %v740_v28 = vld [vmem:[%s5201_s27 + $0x170] sm:$0xff] }
  0x21   : > { %926 = vmatpush.msra.mxu3 %v840_v13  ;;  %868 = vmatpush.msra.mxu0 %v749_v14  ;;  %v825_v25 = vld [vmem:[%s5201_s27 + $0x418] sm:$0xff]  ;;  %v814_v27 = vld [vmem:[%s5201_s27 + $0x3c0] sm:$0xff]  ;;  %v820_v29 = vld [vmem:[%s5201_s27 + $0x3f0] sm:$0xff] }
  0x22   : > { %888 = vmatpush.msra.mxu1 %v829_v15  ;;  %907 = vmatpush.msra.mxu2 %v755_v16  ;;  %v729_v30 = vld [vmem:[%s5201_s27 + $0x118] sm:$0xff]  ;;  %v735_v32 = vld [vmem:[%s5201_s27 + $0x148] sm:$0xff]  ;;  %v724_v34 = vld [vmem:[%s5201_s27 + $0xf0] sm:$0xff] }
  0x23   : > { %927 = vmatpush.msra.mxu3 %v835_v17  ;;  %869 = vmatpush.msra.mxu0 %v744_v18  ;;  %v809_v31 = vld [vmem:[%s5201_s27 + $0x398] sm:$0xff]  ;;  %v815_v33 = vld [vmem:[%s5201_s27 + $0x3c8] sm:$0xff]  ;;  %v804_v35 = vld [vmem:[%s5201_s27 + $0x370] sm:$0xff] }
  0x24   : > { %889 = vmatpush.msra.mxu1 %v824_v19  ;;  %908 = vmatpush.msra.mxu2 %v750_v20  ;;  %v730_v36 = vld [vmem:[%s5201_s27 + $0x120] sm:$0xff]  ;;  %v719_v38 = vld [vmem:[%s5201_s27 + $0xc8] sm:$0xff]  ;;  %v725_v40 = vld [vmem:[%s5201_s27 + $0xf8] sm:$0xff] }
  0x25   : > { %928 = vmatpush.msra.mxu3 %v830_v21  ;;  %870 = vmatpush.msra.mxu0 %v739_v22  ;;  %v810_v37 = vld [vmem:[%s5201_s27 + $0x3a0] sm:$0xff]  ;;  %v799_v39 = vld [vmem:[%s5201_s27 + $0x348] sm:$0xff]  ;;  %v805_v41 = vld [vmem:[%s5201_s27 + $0x378] sm:$0xff] }
  0x26   : > { %890 = vmatpush.msra.mxu1 %v819_v23  ;;  %909 = vmatpush.msra.mxu2 %v745_v24  ;;  %v714_v42 = vld [vmem:[%s5201_s27 + $0xa0] sm:$0xff]  ;;  %v720_v44 = vld [vmem:[%s5201_s27 + $0xd0] sm:$0xff]  ;;  %v709_v46 = vld [vmem:[%s5201_s27 + $0x78] sm:$0xff] }
  0x27   : > { %929 = vmatpush.msra.mxu3 %v825_v25  ;;  %871 = vmatpush.msra.mxu0 %v734_v26  ;;  %v794_v43 = vld [vmem:[%s5201_s27 + $0x320] sm:$0xff]  ;;  %v800_v45 = vld [vmem:[%s5201_s27 + $0x350] sm:$0xff]  ;;  %v789_v47 = vld [vmem:[%s5201_s27 + $0x2f8] sm:$0xff] }
  0x28   : > { %891 = vmatpush.msra.mxu1 %v814_v27  ;;  %910 = vmatpush.msra.mxu2 %v740_v28  ;;  %v715_v48 = vld [vmem:[%s5201_s27 + $0xa8] sm:$0xff]  ;;  %v704_v50 = vld [vmem:[%s5201_s27 + $0x50] sm:$0xff]  ;;  %v710_v52 = vld [vmem:[%s5201_s27 + $0x80] sm:$0xff] }
  0x29   : > { %930 = vmatpush.msra.mxu3 %v820_v29  ;;  %872 = vmatpush.msra.mxu0 %v729_v30  ;;  %v795_v49 = vld [vmem:[%s5201_s27 + $0x328] sm:$0xff]  ;;  %v784_v51 = vld [vmem:[%s5201_s27 + $0x2d0] sm:$0xff]  ;;  %v790_v53 = vld [vmem:[%s5201_s27 + $0x300] sm:$0xff] }
  0x2a   : > { %892 = vmatpush.msra.mxu1 %v809_v31  ;;  %911 = vmatpush.msra.mxu2 %v735_v32  ;;  %v699_v54 = vld [vmem:[%s5201_s27 + $0x28] sm:$0xff]  ;;  %v705_v56 = vld [vmem:[%s5201_s27 + $0x58] sm:$0xff]  ;;  %v694_v58 = vld [vmem:[%s5201_s27] sm:$0xff] }
  0x2b   : > { %931 = vmatpush.msra.mxu3 %v815_v33  ;;  %873 = vmatpush.msra.mxu0 %v724_v34  ;;  %v779_v55 = vld [vmem:[%s5201_s27 + $0x2a8] sm:$0xff]  ;;  %v785_v57 = vld [vmem:[%s5201_s27 + $0x2d8] sm:$0xff]  ;;  %v774_v59 = vld [vmem:[%s5201_s27 + $0x280] sm:$0xff] }
  0x2c   : > { %893 = vmatpush.msra.mxu1 %v804_v35  ;;  %912 = vmatpush.msra.mxu2 %v730_v36  ;;  %v771_v60 = vld [vmem:[%s5201_s27 + $0x268] sm:$0xff]  ;;  %v700_v62 = vld [vmem:[%s5201_s27 + $0x30] sm:$0xff]  ;;  %v766_v0 = vld [vmem:[%s5201_s27 + $0x240] sm:$0xff] }
  0x2d   : > { %932 = vmatpush.msra.mxu3 %v810_v37  ;;  %874 = vmatpush.msra.mxu0 %v719_v38  ;;  %v851_v61 = vld [vmem:[%s5201_s27 + $0x4e8] sm:$0xff]  ;;  %v780_v63 = vld [vmem:[%s5201_s27 + $0x2b0] sm:$0xff]  ;;  %v846_v1 = vld [vmem:[%s5201_s27 + $0x4c0] sm:$0xff] }
  0x2e   : > { %894 = vmatpush.msra.mxu1 %v799_v39  ;;  %913 = vmatpush.msra.mxu2 %v725_v40  ;;  %v695_v2 = vld [vmem:[%s5201_s27 + $0x8] sm:$0xff]  ;;  %v761_v4 = vld [vmem:[%s5201_s27 + $0x218] sm:$0xff]  ;;  %v772_v6 = vld [vmem:[%s5201_s27 + $0x270] sm:$0xff] }
  0x2f   : > { %933 = vmatpush.msra.mxu3 %v805_v41  ;;  %875 = vmatpush.msra.mxu0 %v714_v42  ;;  %v775_v3 = vld [vmem:[%s5201_s27 + $0x288] sm:$0xff]  ;;  %v841_v5 = vld [vmem:[%s5201_s27 + $0x498] sm:$0xff]  ;;  %v852_v7 = vld [vmem:[%s5201_s27 + $0x4f0] sm:$0xff] }
  0x30   : > { %895 = vmatpush.msra.mxu1 %v794_v43  ;;  %914 = vmatpush.msra.mxu2 %v720_v44  ;;  %v756_v8 = vld [vmem:[%s5201_s27 + $0x1f0] sm:$0xff]  ;;  %v767_v10 = vld [vmem:[%s5201_s27 + $0x248] sm:$0xff]  ;;  %v762_v14 = vld [vmem:[%s5201_s27 + $0x220] sm:$0xff] }
  0x31   : > { %934 = vmatpush.msra.mxu3 %v800_v45  ;;  %876 = vmatpush.msra.mxu0 %v709_v46  ;;  %v836_v9 = vld [vmem:[%s5201_s27 + $0x470] sm:$0xff]  ;;  %v847_v11 = vld [vmem:[%s5201_s27 + $0x4c8] sm:$0xff]  ;;  %v842_v15 = vld [vmem:[%s5201_s27 + $0x4a0] sm:$0xff] }
  0x32   : > { %896 = vmatpush.msra.mxu1 %v789_v47  ;;  %915 = vmatpush.msra.mxu2 %v715_v48  ;;  %v751_v12 = vld [vmem:[%s5201_s27 + $0x1c8] sm:$0xff]  ;;  %v693_v16 = vld [vmem:[%s613_s23] sm:$0xff]  ;;  %v757_v19 = vld [vmem:[%s5201_s27 + $0x1f8] sm:$0xff] }
  0x33   : > { %935 = vmatpush.msra.mxu3 %v795_v49  ;;  %877 = vmatpush.msra.mxu0 %v704_v50  ;;  %v831_v13 = vld [vmem:[%s5201_s27 + $0x448] sm:$0xff]  ;;  %v746_v17 = vld [vmem:[%s5201_s27 + $0x1a0] sm:$0xff]  ;;  %859 = vst [vmem:[#allocation1] ss:$2 sm:$0xff] %v693_v16  ;;  %v837_v20 = vld [vmem:[%s5201_s27 + $0x478] sm:$0xff] }
  0x34   : > { %897 = vmatpush.msra.mxu1 %v784_v51  ;;  %916 = vmatpush.msra.mxu2 %v710_v52  ;;  %v826_v18 = vld [vmem:[%s5201_s27 + $0x420] sm:$0xff]  ;;  %v741_v21 = vld [vmem:[%s5201_s27 + $0x178] sm:$0xff]  ;;  %v752_v23 = vld [vmem:[%s5201_s27 + $0x1d0] sm:$0xff] }
  0x35   : > { %936 = vmatpush.msra.mxu3 %v790_v53  ;;  %878 = vmatpush.msra.mxu0 %v699_v54  ;;  %v821_v22 = vld [vmem:[%s5201_s27 + $0x3f8] sm:$0xff]  ;;  %v832_v24 = vld [vmem:[%s5201_s27 + $0x450] sm:$0xff]  ;;  %v731_v27 = vld [vmem:[%s5201_s27 + $0x128] sm:$0xff] }
  0x36   : > { %898 = vmatpush.msra.mxu1 %v779_v55  ;;  %917 = vmatpush.msra.mxu2 %v705_v56  ;;  %v736_v25 = vld [vmem:[%s5201_s27 + $0x150] sm:$0xff]  ;;  %v747_v28 = vld [vmem:[%s5201_s27 + $0x1a8] sm:$0xff]  ;;  %v854_v30 = vld [vmem:[%s5132_s5] sm:$0xff] }
  0x37   : > { %937 = vmatpush.msra.mxu3 %v785_v57  ;;  %879 = vmatpush.msra.mxu0 %v694_v58  ;;  %v816_v26 = vld [vmem:[%s5201_s27 + $0x3d0] sm:$0xff]  ;;  %v827_v29 = vld [vmem:[%s5201_s27 + $0x428] sm:$0xff]  ;;  %v742_v32 = vld [vmem:[%s5201_s27 + $0x180] sm:$0xff] }
  0x38   : > { %899 = vmatpush.msra.mxu1 %v774_v59  ;;  %918 = vmatpush.msra.mxu2 %v700_v62  ;;  %v811_v31 = vld [vmem:[%s5201_s27 + $0x3a8] sm:$0xff]  ;;  %v822_v33 = vld [vmem:[%s5201_s27 + $0x400] sm:$0xff]  ;;  %v737_v38 = vld [vmem:[%s5201_s27 + $0x158] sm:$0xff] }
  0x39   : > { %944 = vmatpush.msrb.mxu0 %v771_v60  ;;  %938 = vmatpush.msra.mxu3 %v780_v63  ;;  %v726_v36 = vld [vmem:[%s5201_s27 + $0x100] sm:$0xff]  ;;  %v817_v39 = vld [vmem:[%s5201_s27 + $0x3d8] sm:$0xff]  ;;  %v732_v42 = vld [vmem:[%s5201_s27 + $0x130] sm:$0xff] }
  0x3a   : > { %964 = vmatpush.msrb.mxu1 %v851_v61  ;;  %919 = vmatpush.msra.mxu2 %v695_v2  ;;  %v3589_v34 = vld.sshfl [vmem:[#allocation1] sm:$0xff pattern:$0x75316420]  ;;  %v3591_v35 = vld.sshfl [vmem:[#allocation1 + $0x8] sm:$0xff pattern:$0x75316420] }
  0x3b   : > { %945 = vmatpush.msrb.mxu0 %v766_v0  ;;  %939 = vmatpush.msra.mxu3 %v775_v3  ;;  %v806_v37 = vld [vmem:[%s5201_s27 + $0x380] sm:$0xff]  ;;  %1067 = vst [vmem:[#allocation1] ss:$2 sm:$0xff] %v854_v30  ;;  %v721_v40 = vld [vmem:[%s5201_s27 + $0xd8] sm:$0xff]  ;;  %v812_v43 = vld [vmem:[%s5201_s27 + $0x3b0] sm:$0xff] }
  0x3c   : > { %965 = vmatpush.msrb.mxu1 %v846_v1  ;;  %984 = vmatpush.msrb.mxu2 %v772_v6  ;;  %v801_v41 = vld [vmem:[%s5201_s27 + $0x358] sm:$0xff]  ;;  %v716_v44 = vld [vmem:[%s5201_s27 + $0xb0] sm:$0xff]  ;;  %v727_v46 = vld [vmem:[%s5201_s27 + $0x108] sm:$0xff] }
  0x3d   : > { %946 = vmatpush.msrb.mxu0 %v761_v4  ;;  %1004 = vmatpush.msrb.mxu3 %v852_v7  ;;  %v796_v45 = vld [vmem:[%s5201_s27 + $0x330] sm:$0xff]  ;;  %v807_v47 = vld [vmem:[%s5201_s27 + $0x388] sm:$0xff]  ;;  %v722_v50 = vld [vmem:[%s5201_s27 + $0xe0] sm:$0xff] }
  0x3e   : > { %966 = vmatpush.msrb.mxu1 %v841_v5  ;;  %985 = vmatpush.msrb.mxu2 %v767_v10  ;;  %v711_v48 = vld [vmem:[%s5201_s27 + $0x88] sm:$0xff]  ;;  %v802_v51 = vld [vmem:[%s5201_s27 + $0x360] sm:$0xff]  ;;  %v701_v54 = vld [vmem:[%s5201_s27 + $0x38] sm:$0xff] }
  0x3f   : > { %947 = vmatpush.msrb.mxu0 %v756_v8  ;;  %1005 = vmatpush.msrb.mxu3 %v847_v11  ;;  %v791_v49 = vld [vmem:[%s5201_s27 + $0x308] sm:$0xff]  ;;  %v706_v52 = vld [vmem:[%s5201_s27 + $0x60] sm:$0xff]  ;;  %v781_v55 = vld [vmem:[%s5201_s27 + $0x2b8] sm:$0xff] }
  0x40   : > { %967 = vmatpush.msrb.mxu1 %v836_v9  ;;  %986 = vmatpush.msrb.mxu2 %v762_v14  ;;  %v786_v53 = vld [vmem:[%s5201_s27 + $0x2e0] sm:$0xff]  ;;  %v717_v56 = vld [vmem:[%s5201_s27 + $0xb8] sm:$0xff]  ;;  %v696_v58 = vld [vmem:[%s5201_s27 + $0x10] sm:$0xff] }
  0x41   : > { %948 = vmatpush.msrb.mxu0 %v751_v12  ;;  %1006 = vmatpush.msrb.mxu3 %v842_v15  ;;  %v797_v57 = vld [vmem:[%s5201_s27 + $0x338] sm:$0xff]  ;;  %v776_v59 = vld [vmem:[%s5201_s27 + $0x290] sm:$0xff]  ;;  %v707_v0 = vld [vmem:[%s5201_s27 + $0x68] sm:$0xff] }
  0x42   : > { %968 = vmatpush.msrb.mxu1 %v831_v13  ;;  %987 = vmatpush.msrb.mxu2 %v757_v19  ;;  %v712_v60 = vld [vmem:[%s5201_s27 + $0x90] sm:$0xff]  ;;  %v773_v62 = vld [vmem:[%s5201_s27 + $0x278] sm:$0xff]  ;;  %v787_v1 = vld [vmem:[%s5201_s27 + $0x2e8] sm:$0xff] }
  0x43   : > { %949 = vmatpush.msrb.mxu0 %v746_v17  ;;  %1007 = vmatpush.msrb.mxu3 %v837_v20  ;;  %v792_v61 = vld [vmem:[%s5201_s27 + $0x310] sm:$0xff]  ;;  %v853_v63 = vld [vmem:[%s5201_s27 + $0x4f8] sm:$0xff]  ;;  %v702_v4 = vld [vmem:[%s5201_s27 + $0x40] sm:$0xff] }
  0x44   : > { %969 = vmatpush.msrb.mxu1 %v826_v18  ;;  %988 = vmatpush.msrb.mxu2 %v752_v23  ;;  %v768_v2 = vld [vmem:[%s5201_s27 + $0x250] sm:$0xff]  ;;  %v782_v5 = vld [vmem:[%s5201_s27 + $0x2c0] sm:$0xff]  ;;  %v763_v6 = vld [vmem:[%s5201_s27 + $0x228] sm:$0xff] }
  0x45   : > { %950 = vmatpush.msrb.mxu0 %v741_v21  ;;  %1008 = vmatpush.msrb.mxu3 %v832_v24  ;;  %v848_v3 = vld [vmem:[%s5201_s27 + $0x4d0] sm:$0xff]  ;;  %v843_v7 = vld [vmem:[%s5201_s27 + $0x4a8] sm:$0xff]  ;;  %v697_v8 = vld [vmem:[%s5201_s27 + $0x18] sm:$0xff] }
  0x46   : > { %970 = vmatpush.msrb.mxu1 %v821_v22  ;;  %989 = vmatpush.msrb.mxu2 %v747_v28  ;;  %v777_v9 = vld [vmem:[%s5201_s27 + $0x298] sm:$0xff]  ;;  %v758_v10 = vld [vmem:[%s5201_s27 + $0x200] sm:$0xff]  ;;  %v748_v16 = vld [vmem:[%s5201_s27 + $0x1b0] sm:$0xff] }
  0x47   : > { %951 = vmatpush.msrb.mxu0 %v736_v25  ;;  %1009 = vmatpush.msrb.mxu3 %v827_v29  ;;  %v838_v11 = vld [vmem:[%s5201_s27 + $0x480] sm:$0xff]  ;;  %v753_v12 = vld [vmem:[%s5201_s27 + $0x1d8] sm:$0xff]  ;;  %v828_v17 = vld [vmem:[%s5201_s27 + $0x430] sm:$0xff] }
  0x48   : > { %971 = vmatpush.msrb.mxu1 %v816_v26  ;;  %990 = vmatpush.msrb.mxu2 %v742_v32  ;;  %v833_v13 = vld [vmem:[%s5201_s27 + $0x458] sm:$0xff]  ;;  %v3746_v18 = vld [vmem:[%s5204_s25 + $0x70] sm:$0xff]  ;;  %v743_v20 = vld [vmem:[%s5201_s27 + $0x188] sm:$0xff] }
  0x49   : > { %952 = vmatpush.msrb.mxu0 %v731_v27  ;;  %1010 = vmatpush.msrb.mxu3 %v822_v33  ;;  %v3728_v14 = vld [vmem:[%s5203_s0 + $0x78] sm:$0xff]  ;;  %v3751_v19 = vld [vmem:[%s5204_s25 + $0xf0] sm:$0xff]  ;;  %v823_v21 = vld [vmem:[%s5201_s27 + $0x408] sm:$0xff] }
  0x4a   : > { %972 = vmatpush.msrb.mxu1 %v811_v31  ;;  %991 = vmatpush.msrb.mxu2 %v737_v38  ;;  %v3733_v15 = vld [vmem:[%s5204_s25 + $0xf8] sm:$0xff]  ;;  %v3764_v22 = vld [vmem:[%s5204_s25 + $0x68] sm:$0xff]  ;;  %v738_v24 = vld [vmem:[%s5201_s27 + $0x160] sm:$0xff] }
  0x4b   : > { %953 = vmatpush.msrb.mxu0 %v726_v36  ;;  %1011 = vmatpush.msrb.mxu3 %v817_v39  ;;  %v3769_v23 = vld [vmem:[%s5204_s25 + $0xe8] sm:$0xff]  ;;  %v818_v25 = vld [vmem:[%s5201_s27 + $0x3e0] sm:$0xff]  ;;  %v733_v28 = vld [vmem:[%s5201_s27 + $0x138] sm:$0xff] }
  0x4c   : > { %973 = vmatpush.msrb.mxu1 %v806_v37  ;;  %992 = vmatpush.msrb.mxu2 %v732_v42  ;;  %v3782_v26 = vld [vmem:[%s5204_s25 + $0x60] sm:$0xff]  ;;  %v813_v29 = vld [vmem:[%s5201_s27 + $0x3b8] sm:$0xff]  ;;  %v728_v32 = vld [vmem:[%s5201_s27 + $0x110] sm:$0xff] }
  0x4d   : > { %954 = vmatpush.msrb.mxu0 %v721_v40  ;;  %1012 = vmatpush.msrb.mxu3 %v812_v43  ;;  %v3787_v27 = vld [vmem:[%s5204_s25 + $0xe0] sm:$0xff]  ;;  %v3800_v30 = vld [vmem:[%s5204_s25 + $0x58] sm:$0xff]  ;;  %v808_v33 = vld [vmem:[%s5201_s27 + $0x390] sm:$0xff] }
  0x4e   : > { %974 = vmatpush.msrb.mxu1 %v801_v41  ;;  %993 = vmatpush.msrb.mxu2 %v727_v46  ;;  %v3805_v31 = vld [vmem:[%s5204_s25 + $0xd8] sm:$0xff]  ;;  %v3818_v36 = vld [vmem:[%s5204_s25 + $0x50] sm:$0xff]  ;;  %v723_v38 = vld [vmem:[%s5201_s27 + $0xe8] sm:$0xff] }
  0x4f   : > { %955 = vmatpush.msrb.mxu0 %v716_v44  ;;  %1013 = vmatpush.msrb.mxu3 %v807_v47  ;;  %v3823_v37 = vld [vmem:[%s5204_s25 + $0xd0] sm:$0xff]  ;;  %v803_v39 = vld [vmem:[%s5201_s27 + $0x368] sm:$0xff]  ;;  %v718_v42 = vld [vmem:[%s5201_s27 + $0xc0] sm:$0xff] }
  0x50   : > { %975 = vmatpush.msrb.mxu1 %v796_v45  ;;  %994 = vmatpush.msrb.mxu2 %v722_v50  ;;  %v3836_v40 = vld [vmem:[%s5204_s25 + $0x48] sm:$0xff]  ;;  %v798_v43 = vld [vmem:[%s5201_s27 + $0x340] sm:$0xff]  ;;  %v713_v46 = vld [vmem:[%s5201_s27 + $0x98] sm:$0xff] }
  0x51   : > { %956 = vmatpush.msrb.mxu0 %v711_v48  ;;  %1014 = vmatpush.msrb.mxu3 %v802_v51  ;;  %v3841_v41 = vld [vmem:[%s5204_s25 + $0xc8] sm:$0xff]  ;;  %v3854_v44 = vld [vmem:[%s5204_s25 + $0x40] sm:$0xff]  ;;  %v793_v47 = vld [vmem:[%s5201_s27 + $0x318] sm:$0xff] }
  0x52   : > { %976 = vmatpush.msrb.mxu1 %v791_v49  ;;  %920 = vmatmul.f32.vlgmr.msra.gmra.mxu2 %v3589_v34  ;;  %v3859_v45 = vld [vmem:[%s5204_s25 + $0xc0] sm:$0xff]  ;;  %v3872_v48 = vld [vmem:[%s5204_s25 + $0x38] sm:$0xff]  ;;  %v708_v50 = vld [vmem:[%s5201_s27 + $0x70] sm:$0xff] }
  0x53   : > { %957 = vmatpush.msrb.mxu0 %v706_v52  ;;  %940 = vmatmul.f32.vlgmr.msra.gmra.mxu3 %v3591_v35  ;;  %v3877_v49 = vld [vmem:[%s5204_s25 + $0xb8] sm:$0xff]  ;;  %v788_v51 = vld [vmem:[%s5201_s27 + $0x2f0] sm:$0xff] }
  0x54   : > { %977 = vmatpush.msrb.mxu1 %v786_v53  ;;  %995 = vmatpush.msrb.mxu2 %v717_v56  ;;  %v3890_v52 = vld [vmem:[%s5204_s25 + $0x30] sm:$0xff]  ;;  %v3908_v56 = vld [vmem:[%s5204_s25 + $0x28] sm:$0xff] }
  0x55   : > { %958 = vmatpush.msrb.mxu0 %v701_v54  ;;  %1015 = vmatpush.msrb.mxu3 %v797_v57  ;;  %v3895_v53 = vld [vmem:[%s5204_s25 + $0xb0] sm:$0xff]  ;;  %v703_v54 = vld [vmem:[%s5201_s27 + $0x48] sm:$0xff] }
  0x56   : > { %978 = vmatpush.msrb.mxu1 %v781_v55  ;;  %996 = vmatpush.msrb.mxu2 %v712_v60  ;;  %v783_v55 = vld [vmem:[%s5201_s27 + $0x2c8] sm:$0xff]  ;;  %v3926_v60 = vld [vmem:[%s5204_s25 + $0x178] sm:$0xff] }
  0x57   : > { %959 = vmatpush.msrb.mxu0 %v696_v58  ;;  %1016 = vmatpush.msrb.mxu3 %v792_v61  ;;  %v3913_v57 = vld [vmem:[%s5204_s25 + $0xa8] sm:$0xff]  ;;  %v698_v58 = vld [vmem:[%s5201_s27 + $0x20] sm:$0xff]  ;;  %v3931_v61 = vld [vmem:[%s5204_s25 + $0x1f8] sm:$0xff] }
  0x58   : > { %979 = vmatpush.msrb.mxu1 %v776_v59  ;;  %880 = vmatmul.f32.vlgmr.msra.gmra.mxu0 %v3589_v34  ;;  %v778_v59 = vld [vmem:[%s5201_s27 + $0x2a0] sm:$0xff]  ;;  %5205 = vst [vmem:[#allocation6_spill] sm:$0xff] %v3931_v61 }
  0x59   : > { %900 = vmatmul.f32.vlgmr.msra.gmra.mxu1 %v3591_v35  ;;  %1024 = vmatpush.msra.mxu0 %v773_v62  ;;  %v3938_v62 = vld [vmem:[%s5204_s25 + $0x20] sm:$0xff] }
  0x5a   : > { %1044 = vmatpush.msra.mxu1 %v853_v63  ;;  %997 = vmatpush.msrb.mxu2 %v707_v0  ;;  %v3943_v63 = vld [vmem:[%s5204_s25 + $0xa0] sm:$0xff]  ;;  %v3950_v0 = vld [vmem:[%s5204_s25 + $0x170] sm:$0xff] }
  0x5b   : > { %1017 = vmatpush.msrb.mxu3 %v787_v1  ;;  %1025 = vmatpush.msra.mxu0 %v768_v2  ;;  %v3955_v1 = vld [vmem:[%s5204_s25 + $0x1f0] sm:$0xff]  ;;  %v3972_v2 = vld [vmem:[%s5204_s25 + $0x1e8] sm:$0xff] }
  0x5c   : > { %1045 = vmatpush.msra.mxu1 %v848_v3  ;;  %998 = vmatpush.msrb.mxu2 %v702_v4  ;;  %5206 = vst [vmem:[#allocation7_spill] sm:$0xff] %v3955_v1  ;;  %v3981_v3 = vld [vmem:[%s5204_s25 + $0x160] sm:$0xff] }
  0x5d   : > { %1018 = vmatpush.msrb.mxu3 %v782_v5  ;;  %1026 = vmatpush.msra.mxu0 %v763_v6  ;;  %5207 = vst [vmem:[#allocation8_spill] sm:$0xff] %v3972_v2  ;;  %v3986_v4 = vld [vmem:[%s5204_s25 + $0x1e0] sm:$0xff]  ;;  %v3994_v5 = vld [vmem:[%s5204_s25 + $0x158] sm:$0xff] }
  0x5e   : > { %1046 = vmatpush.msra.mxu1 %v843_v7  ;;  %999 = vmatpush.msrb.mxu2 %v697_v8  ;;  %5208 = vst [vmem:[#allocation9_spill] sm:$0xff] %v3986_v4  ;;  %v3999_v6 = vld [vmem:[%s5204_s25 + $0x1d8] sm:$0xff]  ;;  %v4006_v7 = vld [vmem:[%s5204_s25 + $0x150] sm:$0xff] }
  0x5f   : > { %1019 = vmatpush.msrb.mxu3 %v777_v9  ;;  %1000 = vmatmul.f32.vlgmr.msrb.gmra.mxu2 %v3589_v34  ;;  %5209 = vst [vmem:[#allocation10_spill] sm:$0xff] %v3999_v6  ;;  %v4011_v8 = vld [vmem:[%s5204_s25 + $0x1d0] sm:$0xff]  ;;  %v4018_v9 = vld [vmem:[%s5204_s25 + $0x148] sm:$0xff] }
  0x60   : > { %1020 = vmatmul.f32.vlgmr.msrb.gmra.mxu3 %v3591_v35  ;;  %1027 = vmatpush.msra.mxu0 %v758_v10  ;;  %5210 = vst [vmem:[#allocation11_spill] sm:$0xff] %v4011_v8  ;;  %v4023_v10 = vld [vmem:[%s5204_s25 + $0x1c8] sm:$0xff] }
  0x61   : > { %1047 = vmatpush.msra.mxu1 %v838_v11  ;;  %960 = vmatmul.f32.vlgmr.msrb.gmra.mxu0 %v3589_v34  ;;  %5211 = vst [vmem:[#allocation12_spill] sm:$0xff] %v4023_v10  ;;  %v4030_v11 = vld [vmem:[%s5204_s25 + $0x140] sm:$0xff] }
  0x62   : > { %980 = vmatmul.f32.vlgmr.msrb.gmra.mxu1 %v3591_v35  ;;  %1028 = vmatpush.msra.mxu0 %v753_v12  ;;  %v4038_v12 = vld [vmem:[%s5204_s25 + $0x10] sm:$0xff] }
  0x63   : > { %1048 = vmatpush.msra.mxu1 %v833_v13  ;;  %1096 = vmatpush.msra.mxu2 %v3728_v14  ;;  %v4043_v13 = vld [vmem:[%s5204_s25 + $0x98] sm:$0xff] }
  0x64   : > { %1116 = vmatpush.msra.mxu3 %v3733_v15  ;;  %1029 = vmatpush.msra.mxu0 %v748_v16  ;;  %v4050_v16 = vld [vmem:[%s5204_s25 + $0x138] sm:$0xff] }
  0x65   : > { %1049 = vmatpush.msra.mxu1 %v828_v17  ;;  %1097 = vmatpush.msra.mxu2 %v3746_v18  ;;  %v4055_v17 = vld [vmem:[%s5204_s25 + $0x1c0] sm:$0xff] }
  0x66   : > { %1117 = vmatpush.msra.mxu3 %v3751_v19  ;;  %1030 = vmatpush.msra.mxu0 %v743_v20  ;;  %5212 = vst [vmem:[#allocation13_spill] sm:$0xff] %v4055_v17  ;;  %v4062_v20 = vld [vmem:[%s5204_s25 + $0x8] sm:$0xff] }
  0x67   : > { %1050 = vmatpush.msra.mxu1 %v823_v21  ;;  %1098 = vmatpush.msra.mxu2 %v3764_v22  ;;  %v4067_v21 = vld [vmem:[%s5204_s25 + $0x90] sm:$0xff] }
  0x68   : > { %1118 = vmatpush.msra.mxu3 %v3769_v23  ;;  %1031 = vmatpush.msra.mxu0 %v738_v24  ;;  %v4074_v24 = vld [vmem:[%s5204_s25 + $0x130] sm:$0xff] }
  0x69   : > { %1051 = vmatpush.msra.mxu1 %v818_v25  ;;  %1099 = vmatpush.msra.mxu2 %v3782_v26  ;;  %v4079_v25 = vld [vmem:[%s5204_s25 + $0x1b8] sm:$0xff] }
  0x6a   : > { %1119 = vmatpush.msra.mxu3 %v3787_v27  ;;  %1032 = vmatpush.msra.mxu0 %v733_v28  ;;  %5213 = vst [vmem:[#allocation14_spill] sm:$0xff] %v4079_v25  ;;  %v4084_v28 = vld [vmem:[%s5204_s25] sm:$0xff] }
  0x6b   : > { %1052 = vmatpush.msra.mxu1 %v813_v29  ;;  %1100 = vmatpush.msra.mxu2 %v3800_v30  ;;  %5214 = vst [vmem:[#allocation15_spill] sm:$0xff] %v4084_v28  ;;  %v4091_v29 = vld [vmem:[%s5204_s25 + $0x88] sm:$0xff] }
  0x6c   : > { %1120 = vmatpush.msra.mxu3 %v3805_v31  ;;  %1033 = vmatpush.msra.mxu0 %v728_v32  ;;  %v4096_v32 = vld [vmem:[%s5204_s25 + $0x128] sm:$0xff] }
  0x6d   : > { %1053 = vmatpush.msra.mxu1 %v808_v33  ;;  %1101 = vmatpush.msra.mxu2 %v3818_v36  ;;  %v4101_v33 = vld [vmem:[%s5204_s25 + $0x1b0] sm:$0xff] }
  0x6e   : > { %1121 = vmatpush.msra.mxu3 %v3823_v37  ;;  %1034 = vmatpush.msra.mxu0 %v723_v38  ;;  %5215 = vst [vmem:[#allocation16_spill] sm:$0xff] %v4101_v33  ;;  %v4108_v38 = vld [vmem:[%s5204_s25 + $0x80] sm:$0xff] }
  0x6f   : > { %1054 = vmatpush.msra.mxu1 %v803_v39  ;;  %1102 = vmatpush.msra.mxu2 %v3836_v40  ;;  %5216 = vst [vmem:[#allocation17_spill] sm:$0xff] %v4108_v38  ;;  %v4113_v39 = vld [vmem:[%s5204_s25 + $0x120] sm:$0xff] }
  0x70   : > { %1122 = vmatpush.msra.mxu3 %v3841_v41  ;;  %1035 = vmatpush.msra.mxu0 %v718_v42  ;;  %v4118_v42 = vld [vmem:[%s5204_s25 + $0x1a8] sm:$0xff] }
  0x71   : > { %1055 = vmatpush.msra.mxu1 %v798_v43  ;;  %1103 = vmatpush.msra.mxu2 %v3854_v44  ;;  %5217 = vst [vmem:[#allocation18_spill] sm:$0xff] %v4118_v42  ;;  %v855_v43 = vld [vmem:[%s5132_s5 + $0x8] sm:$0xff] }
  0x72   : > { %1123 = vmatpush.msra.mxu3 %v3859_v45  ;;  %1036 = vmatpush.msra.mxu0 %v713_v46  ;;  %v4129_v46 = vld [vmem:[%s5204_s25 + $0x118] sm:$0xff]  ;;  %1069 = vst [vmem:[#allocation1 + $0x10] ss:$2 sm:$0xff] %v855_v43  ;;  %v4177_v43 = vld [vmem:[%s5204_s25 + $0x180] sm:$0xff] }
  0x73   : > { %1056 = vmatpush.msra.mxu1 %v793_v47  ;;  %1104 = vmatpush.msra.mxu2 %v3872_v48  ;;  %v4134_v47 = vld [vmem:[%s5204_s25 + $0x1a0] sm:$0xff]  ;;  %5224 = vst [vmem:[#allocation25_spill] sm:$0xff] %v4177_v43 }
  0x74   : > { %1124 = vmatpush.msra.mxu3 %v3877_v49  ;;  %1037 = vmatpush.msra.mxu0 %v708_v50  ;;  %5218 = vst [vmem:[#allocation19_spill] sm:$0xff] %v4134_v47  ;;  %v4143_v50 = vld [vmem:[%s5204_s25 + $0x110] sm:$0xff] }
  0x75   : > { %1057 = vmatpush.msra.mxu1 %v788_v51  ;;  %1105 = vmatpush.msra.mxu2 %v3890_v52  ;;  %v4148_v51 = vld [vmem:[%s5204_s25 + $0x198] sm:$0xff] }
  0x76   : > { %1125 = vmatpush.msra.mxu3 %v3895_v53  ;;  %1038 = vmatpush.msra.mxu0 %v703_v54  ;;  %5219 = vst [vmem:[#allocation20_spill] sm:$0xff] %v4148_v51  ;;  %v4155_v54 = vld [vmem:[%s5204_s25 + $0x108] sm:$0xff] }
  0x77   : > { %1058 = vmatpush.msra.mxu1 %v783_v55  ;;  %1106 = vmatpush.msra.mxu2 %v3908_v56  ;;  %5220 = vst [vmem:[#allocation21_spill] sm:$0xff] %v4155_v54  ;;  %v4160_v55 = vld [vmem:[%s5204_s25 + $0x190] sm:$0xff] }
  0x78   : > { %1126 = vmatpush.msra.mxu3 %v3913_v57  ;;  %1039 = vmatpush.msra.mxu0 %v698_v58  ;;  %5221 = vst [vmem:[#allocation22_spill] sm:$0xff] %v4160_v55  ;;  %v4167_v58 = vld [vmem:[%s5204_s25 + $0x100] sm:$0xff] }
  0x79   : > { %1059 = vmatpush.msra.mxu1 %v778_v59  ;;  %1040 = vmatmul.f32.vlgmr.msra.gmra.mxu0 %v3589_v34  ;;  %v3962_v34 = vld [vmem:[%s5204_s25 + $0x18] sm:$0xff]  ;;  %5222 = vst [vmem:[#allocation23_spill] sm:$0xff] %v4167_v58  ;;  %v4172_v59 = vld [vmem:[%s5204_s25 + $0x188] sm:$0xff] }
  0x7a   : > { %1060 = vmatmul.f32.vlgmr.msra.gmra.mxu1 %v3591_v35  ;;  %1136 = vmatpush.msrb.mxu0 %v3926_v60  ;;  %v3967_v35 = vld [vmem:[%s5204_s25 + $0x168] sm:$0xff]  ;;  %5223 = vst [vmem:[#allocation24_spill] sm:$0xff] %v4172_v59 }
  0x7b   : > { %1156 = vmatpush.msrb.mxu1 %v3931_v61  ;;  %1107 = vmatpush.msra.mxu2 %v3938_v62 }
  0x7c   : > { %1127 = vmatpush.msra.mxu3 %v3943_v63  ;;  %1137 = vmatpush.msrb.mxu0 %v3950_v0 }
  0x7d   : > { %1157 = vmatpush.msrb.mxu1 %v3955_v1  ;;  %1108 = vmatpush.msra.mxu2 %v3962_v34 }
  0x7e   : > { %1138 = vmatpush.msrb.mxu0 %v3967_v35  ;;  %1128 = vmatpush.msra.mxu3 %v4043_v13 }
  0x7f   : > { %1158 = vmatpush.msrb.mxu1 %v3972_v2  ;;  %1109 = vmatpush.msra.mxu2 %v4038_v12 }
  0x80   : > { %1139 = vmatpush.msrb.mxu0 %v3981_v3  ;;  %1129 = vmatpush.msra.mxu3 %v4067_v21 }
  0x81   : > { %1159 = vmatpush.msrb.mxu1 %v3986_v4  ;;  %1110 = vmatpush.msra.mxu2 %v4062_v20 }
  0x82   : > { %1140 = vmatpush.msrb.mxu0 %v3994_v5  ;;  %1130 = vmatpush.msra.mxu3 %v4091_v29 }
  0x83   : > { %1160 = vmatpush.msrb.mxu1 %v3999_v6  ;;  %1111 = vmatpush.msra.mxu2 %v4084_v28 }
  0x84   : > { %1141 = vmatpush.msrb.mxu0 %v4006_v7  ;;  %1131 = vmatpush.msra.mxu3 %v4108_v38 }
  0x85   : > { %1161 = vmatpush.msrb.mxu1 %v4011_v8 }
  0x86   : > { %1142 = vmatpush.msrb.mxu0 %v4018_v9 }
  0x87   : > { %1162 = vmatpush.msrb.mxu1 %v4023_v10  ;;  %v4221_v10 = vld [vmem:[%s5204_s25 + $0x210] sm:$0xff] }
  0x88   : > { %1143 = vmatpush.msrb.mxu0 %v4030_v11  ;;  %5230 = vst [vmem:[#allocation31_spill] sm:$0xff] %v4221_v10 }
  0x89   : > { %1163 = vmatpush.msrb.mxu1 %v4055_v17  ;;  %v1072_v17 = vld.sshfl [vmem:[#allocation1] sm:$0xff pattern:$0x75316420] }
  0x8a   : > { %1144 = vmatpush.msrb.mxu0 %v4050_v16 }
  0x8b   : > { %1164 = vmatpush.msrb.mxu1 %v4079_v25 }
  0x8c   : > { %1145 = vmatpush.msrb.mxu0 %v4074_v24 }
  0x8d   : > { %1165 = vmatpush.msrb.mxu1 %v4101_v33 }
  0x8e   : > { %1146 = vmatpush.msrb.mxu0 %v4096_v32 }
  0x8f   : > { %1166 = vmatpush.msrb.mxu1 %v4118_v42  ;;  %v4193_v42 = vld [vmem:[%s5204_s25 + $0x230] sm:$0xff] }
  0x90   : > { %1147 = vmatpush.msrb.mxu0 %v4113_v39  ;;  %5226 = vst [vmem:[#allocation27_spill] sm:$0xff] %v4193_v42 }
  0x91   : > { %1167 = vmatpush.msrb.mxu1 %v4134_v47  ;;  %v3171_v47 = vmov 0  }
  0x92   : > { %1148 = vmatpush.msrb.mxu0 %v4129_v46  ;;  %3014 = vset.pattern.permute.xlu0 %v3171_v47 }
  0x93   : > { %1168 = vmatpush.msrb.mxu1 %v4148_v51  ;;  %v857_v51 = vld [vmem:[%s5133_s6] sm:$0xf]  ;;  %3015 = vset.pattern.permute.xlu1 %v3171_v47 }
  0x94   : > { %1149 = vmatpush.msrb.mxu0 %v4143_v50  ;;  %1089 = vperm.xlu0 %3014, %v857_v51   ;;  %v4211_v51 = vld [vmem:[%s5204_s25 + $0x218] sm:$0xff] }
  0x95   : > { %1169 = vmatpush.msrb.mxu1 %v4160_v55  ;;  %v4184_v55 = vld [vmem:[%s5204_s25 + $0x238] sm:$0xff]  ;;  %3016 = vset.pattern.permute.xlu2 %v3171_v47  ;;  %5229 = vst [vmem:[#allocation30_spill] sm:$0xff] %v4211_v51  ;;  %v856_v47 = vld [vmem:[%s5132_s5 + $0x10] sm:$0xf] }
  0x96   : > { %1150 = vmatpush.msrb.mxu0 %v4155_v54  ;;  %5225 = vst [vmem:[#allocation26_spill] sm:$0xff] %v4184_v55  ;;  %1184 = vmatpush.msrb.mxu2 %v4184_v55 }
  0x97   : > { %1170 = vmatpush.msrb.mxu1 %v4172_v59  ;;  %v4199_v59 = vld [vmem:[%s5204_s25 + $0x228] sm:$0xff]  ;;  %1071 = vst [vmem:[#allocation1 + $0x20] ss:$2 sm:$0xff] %v856_v47 }
  0x98   : > { %1151 = vmatpush.msrb.mxu0 %v4167_v58  ;;  %5227 = vst [vmem:[#allocation28_spill] sm:$0xff] %v4199_v59  ;;  %1185 = vmatpush.msrb.mxu2 %v4193_v42  ;;  %v4233_v42 = vld [vmem:[%s5204_s25 + $0x200] sm:$0xff] }
  0x99   : > { %1171 = vmatpush.msrb.mxu1 %v4177_v43  ;;  %v4205_v43 = vld [vmem:[%s5204_s25 + $0x220] sm:$0xff]  ;;  %5232 = vst [vmem:[#allocation33_spill] sm:$0xff] %v4233_v42 }
  0x9a   : > { %5228 = vst [vmem:[#allocation29_spill] sm:$0xff] %v4205_v43  ;;  %1186 = vmatpush.msrb.mxu2 %v4199_v59  ;;  %v1073_v59 = vld.sshfl [vmem:[#allocation1 + $0x8] sm:$0xff pattern:$0x75316420] }
  0x9c   : > { %1187 = vmatpush.msrb.mxu2 %v4205_v43 }
  0x9e   : > { %1188 = vmatpush.msrb.mxu2 %v4211_v51  ;;  %v4227_v51 = vld [vmem:[%s5204_s25 + $0x208] sm:$0xff] }
  0x9f   : > { %5231 = vst [vmem:[#allocation32_spill] sm:$0xff] %v4227_v51 }
  0xa0   : > { %1189 = vmatpush.msrb.mxu2 %v4221_v10 }
  0xa2   : > { %1190 = vmatpush.msrb.mxu2 %v4227_v51  ;;  %v1075_v51 = vld.sshfl [vmem:[#allocation1 + $0x18] sm:$0xff pattern:$0x75316420] }
  0xa4   : > { %1191 = vmatpush.msrb.mxu2 %v4233_v42  ;;  %v1076_v42 = vld.sshfl [vmem:[#allocation1 + $0x20] sm:$0xff pattern:$0x75316420] }
  0xd5   : > { %v881_v33 = vpop.f32.mrf.mxu0  ;;  %v921_v6 = vpop.f32.mrf.mxu2 }
  0xd6   : > { %v901_v25 = vpop.f32.mrf.mxu1  ;;  %v941_v4 = vpop.f32.mrf.mxu3 }
  0xd7   : > { %v902_v8 = vadd.f32 %v901_v25, %v881_v33  ;;  %v942_v43 = vadd.f32 %v941_v4, %v921_v6  ;;  %v1202_v4 = vld [vmem:[%s5135_s8] sm:$0xff] }
  0xd8   : > { %1205 = vperm.xlu0 %3014, %v1202_v4  }
  0xd9   : > { %v1082_v47 = vmul.f32 %v1072_v17, %v902_v8  ;;  %v1083_v2 = vmul.f32 %v1073_v59, %v942_v43  ;;  %v1074_v8 = vld.sshfl [vmem:[#allocation1 + $0x10] sm:$0xff pattern:$0x75316420] }
  0xdb   : > { %1112 = vmatmul.f32.vlgmr.msra.gmra.mxu2 %v1082_v47  ;;  %1132 = vmatmul.f32.vlgmr.msra.gmra.mxu3 %v1083_v2 }
  0xde   : > { %v961_v6 = vpop.f32.mrf.mxu0 }
  0xdf   : > { %v981_v25 = vpop.f32.mrf.mxu1 }
  0xe0   : > { %v982_v17 = vadd.f32 %v981_v25, %v961_v6 }
  0xe2   : > { %v1084_v33 = vmul.f32 %v1074_v8, %v982_v17  ;;  %v1001_v59 = vpop.f32.mrf.mxu2 }
  0xe3   : > { %v1021_v43 = vpop.f32.mrf.mxu3 }
  0xe4   : > { %v1022_v10 = vadd.f32 %v1021_v43, %v1001_v59  ;;  %1152 = vmatmul.f32.vlgmr.msrb.gmra.mxu0 %v1084_v33 }
  0xe6   : > { %v1085_v1 = vmul.f32 %v1075_v51, %v1022_v10 }
  0xe8   : > { %1172 = vmatmul.f32.vlgmr.msrb.gmra.mxu1 %v1085_v1 }
  0xf6   : > { %v1041_v2 = vpop.f32.mrf.mxu0 }
  0xf7   : > { %v1061_v47 = vpop.f32.mrf.mxu1 }
  0xf8   : > { %v1062_v55 = vadd.f32 %v1061_v47, %v1041_v2  ;;  %v1285_v47 = vld [vmem:[%s5137_s10 + $0x8] sm:$0xff] }
  0xfa   : > { %v1086_v58 = vmul.f32 %v1076_v42, %v1062_v55  ;;  %v1201_v42 = vld [vmem:[%s5134_s7] sm:$0xff] }
  0xfc   : > { %2880 = vmatmul.msk.f32.vlgmr.msrb.gmra.mxu2 %vm1092_vm0, %v1086_v58 }
 0x106   : > { %v1090_v4 = vpop.permute.xlu0 %1089 }
 0x15e   : > { %v1113_v61 = vpop.f32.mrf.mxu2  ;;  %v1133_v6 = vpop.f32.mrf.mxu3 }
 0x15f   : > { %v1114_v28 = vadd.f32 %v1113_v61, %v1090_v4  ;;  %v1286_v61 = vld [vmem:[%s5137_s10 + $0x10] sm:$0xff] }
 0x160   : > { %1299 = vperm.xlu1 %3015, %v1286_v61  }
 0x161   : > { %v1134_v25 = vadd.f32 %v1133_v6, %v1114_v28  ;;  %v1153_v8 = vpop.f32.mrf.mxu0  ;;  %v1284_v28 = vld [vmem:[%s5137_s10] sm:$0xff] }
 0x162   : > { %1289 = vperm.xlu2 %3016, %v1284_v28  }
 0x163   : > { %v1154_v17 = vadd.f32 %v1153_v8, %v1134_v25 }
 0x165   : > { %v1173_v38 = vpop.f32.mrf.mxu1 }
 0x166   : > { %v1174_v59 = vadd.f32 %v1173_v38, %v1154_v17  ;;  %v1206_v38 = vpop.permute.xlu0 %1205  ;;  %v1281_v17 = vld [vmem:[%s5136_s9] sm:$0xff] }
 0x168   : > { %1294 = vperm.xlu1 %3015, %v1285_v47  }
 0x17f   : > { %v1193_v33 = vpop.f32.mrf.mxu2 }
 0x180   : > { %v1194_v10 = vadd.f32 %v1193_v33, %v1174_v59  ;;  %v1282_v59 = vld [vmem:[%s5136_s9 + $0x8] sm:$0xff]  ;;  %v1283_v33 = vld [vmem:[%s5136_s9 + $0x10] sm:$0xff] }
 0x182   : > { %v1196_v1 = vadd.f32 3.0, %v1194_v10 }
 0x184   : > { %v1197_v51 = vmax.f32 %v1196_v1, 0.0 }
 0x186   : > { %v1198_v43 = vmin.f32 %v1197_v51, 6.0 }
 0x188   : > { %v1199_v54 = vmul.f32 %v1198_v43, %v1194_v10 }
 0x18a   : > { %v1200_v2 = vmul.f32 0.16666667, %v1199_v54 }
 0x18c   : > { %2881 = vmatpush.msk.msrb.mxu3 %vm1212_vm1, %v1200_v2 }
 0x18d   : > { %2882 = vmatmul.msk.f32.vlgmr.msrb.gmra.mxu3 %vm1208_vm2, %v1201_v42 }
 0x1bc   : > { %v1290_v61 = vpop.permute.xlu2 %1289 }
 0x1d2   : > { %v1300_v1 = vpop.permute.xlu1 %1299 }
 0x1da   : > { %v1295_v43 = vpop.permute.xlu1 %1294 }
 0x210   : > { %v1233_v55 = vpop.f32.mrf.mxu3 }
 0x211   : > { %v1234_v54 = vadd.f32 %v1233_v55, %v1206_v38  ;;  %v4270_v55 = vld [vmem:[%s5131_s4] sm:$0xff] }
 0x213   : > { %v1236_v58 = vadd.f32 3.0, %v1234_v54 }
 0x215   : > { %v1237_v4 = vmax.f32 %v1236_v58, 0.0  ;;  %v4284_v58 = vld [vmem:[%s5131_s4 + $0x10] sm:$0xff] }
 0x217   : > { %v1238_v6 = vmin.f32 %v1237_v4, 6.0 }
 0x219   : > { %v1239_v25 = vmul.f32 %v1238_v6, %v1234_v54  ;;  %v4277_v54 = vld [vmem:[%s5131_s4 + $0x8] sm:$0xff] }
 0x21b   : > { %v4252_v8 = vmul.f32 0.16666667, %v1239_v25 }
 0x21d   : > { %5233 = vst [vmem:[#allocation34_spill] sm:$0xff] %v4252_v8  ;;  %1327 = vmatpush.msra.mxu3 %v4252_v8  ;;  %v1254_v8 = vld [vmem:[#allocation2 + $0x68] sm:$0xff] }
 0x21e   : > { %2883 = vmatmul.msk.f32.vlgmr.msra.gmra.mxu3 %vm1302_vm3, %v1281_v17 }
 0x226   : > { %2884 = vmatmul.msk.f32.gmra.mxu3 %vm1302_vm3, %v1282_v59 }
 0x22e   : > { %2885 = vmatmul.msk.f32.gmra.mxu3 %vm1302_vm3, %v1283_v33  ;;  %v1338_v33 = vld [vmem:[%s5138_s11] sm:$0xff] }
 0x2a1   : > { %v1329_v10 = vpop.f32.mrf.mxu3 }
 0x2a2   : > { %v1330_v38 = vadd.f32 %v1329_v10, %v1290_v61  ;;  %v1339_v10 = vld [vmem:[%s5138_s11 + $0x8] sm:$0xff] }
 0x2a9   : > { %v1332_v51 = vpop.f32.mrf.mxu3 }
 0x2aa   : > { %v1333_v28 = vadd.f32 %v1332_v51, %v1295_v43  ;;  %v1341_v51 = vld [vmem:[%s5139_s12] sm:$0xff]  ;;  %v1534_v43 = vld [vmem:[%s5141_s14 + $0x10] sm:$0xff] }
 0x2b1   : > { %v1335_v2 = vpop.f32.mrf.mxu3 }
 0x2b2   : > { %v1336_v42 = vadd.f32 %v1335_v2, %v1300_v1  ;;  %v1342_v1 = vld [vmem:[%s5139_s12 + $0x8] sm:$0xff] }
 0x2b4   : > { %1367 = vmatpush.msra.mxu2 %v1336_v42 }
 0x2b6   : > { %1368 = vmatpush.msra.mxu2 %v1333_v28 }
 0x2b8   : > { %1369 = vmatpush.msra.mxu2 %v1330_v38 }
 0x2b9   : > { %2886 = vmatmul.msk.f32.vlgmr.msra.gmra.mxu2 %vm1344_vm4, %v4270_v55 }
 0x2c1   : > { %2887 = vmatmul.msk.f32.gmra.mxu2 %vm1344_vm4, %v4277_v54 }
 0x2c9   : > { %2888 = vmatmul.msk.f32.gmra.mxu2 %vm1344_vm4, %v4284_v58 }
 0x33c   : > { %v1371_v47 = vpop.f32.mrf.mxu2 }
 0x33d   : > { %v1380_v4 = vsel %vm1092_vm0, %v1371_v47, 0.0 }
 0x33e   : > { %1381 = vadd.xlane.f32.xlu1 %v1380_v4 }
 0x344   : > { %v1374_v6 = vpop.f32.mrf.mxu2 }
 0x345   : > { %v1383_v25 = vsel %vm1092_vm0, %v1374_v6, 0.0 }
 0x346   : > { %1384 = vadd.xlane.f32.xlu0 %v1383_v25 }
 0x34c   : > { %v1377_v17 = vpop.f32.mrf.mxu2 }
 0x34d   : > { %v1386_v59 = vsel %vm1092_vm0, %v1377_v17, 0.0 }
 0x34e   : > { %1387 = vadd.xlane.f32.xlu2 %v1386_v59 }
 0x357   : > { %1468 = vperm.xlu1 %3015, %v1338_v33  }
 0x35a   : > { %1473 = vperm.xlu0 %3014, %v1339_v10  }
 0x35f   : > { %1491 = vperm.xlu1 %3015, %v1342_v1  }
 0x366   : > { %1486 = vperm.xlu2 %3016, %v1341_v51  }
 0x367   : > { %1701 = vperm.xlu1 %3015, %v1534_v43   ;;  %v1343_v43 = vld [vmem:[%s5139_s12 + $0x10] sm:$0xff] }
 0x3b1   : > { %v1382_v61 = vpop.xlane.xlu1 %1381 }
 0x3b2   : > { %v4310_v25 = vsub.f32 %v1330_v38, %v1382_v61  ;;  %v1532_v61 = vld [vmem:[%s5141_s14] sm:$0xff] }
 0x3b4   : > { %v1392_v33 = vmul.f32 %v4310_v25, %v4310_v25 }
 0x3b9   : > { %v1385_v2 = vpop.xlane.xlu0 %1384 }
 0x3ba   : > { %v4306_v4 = vsub.f32 %v1333_v28, %v1385_v2  ;;  %v1340_v2 = vld [vmem:[%s5138_s11 + $0x10] sm:$0xff] }
 0x3bc   : > { %v1393_v59 = vmul.f32 %v4306_v4, %v4306_v4 }
 0x3c1   : > { %v1388_v47 = vpop.xlane.xlu2 %1387 }
 0x3c2   : > { %v4308_v6 = vsub.f32 %v1336_v42, %v1388_v47  ;;  %v1533_v47 = vld [vmem:[%s5141_s14 + $0x8] sm:$0xff] }
 0x3c4   : > { %v1394_v17 = vmul.f32 %v4308_v6, %v4308_v6 }
 0x3c6   : > { %1408 = vmatpush.msra.mxu0 %v1394_v17  ;;  %v4339_v17 = vld [vmem:[#allocation2 + $0x118] sm:$0xff] }
 0x3c7   : > { %1552 = vmatpush.msrb.mxu3 %v4339_v17 }
 0x3c8   : > { %1409 = vmatpush.msra.mxu0 %v1393_v59  ;;  %v4341_v59 = vld [vmem:[#allocation2 + $0x120] sm:$0xff] }
 0x3c9   : > { %5234 = vst [vmem:[#allocation35_spill] sm:$0xff] %v4341_v59  ;;  %1578 = vmatpush.msra.mxu1 %v4341_v59  ;;  %v4380_v59 = vld [vmem:[#allocation2 + $0x50] sm:$0xff] }
 0x3ca   : > { %1410 = vmatpush.msra.mxu0 %v1392_v33  ;;  %v1278_v33 = vld [vmem:[#allocation2 + $0x128] sm:$0xff] }
 0x3cb   : > { %2889 = vmatmul.msk.f32.vlgmr.msra.gmra.mxu0 %vm1344_vm4, %v4270_v55  ;;  %1604 = vmatpush.msrb.mxu2 %v1278_v33  ;;  %v4362_v33 = vld [vmem:[#allocation2 + $0xa0] sm:$0xff] }
 0x3cc   : > { %5238 = vst [vmem:[#allocation39_spill] sm:$0xff] %v4362_v33 }
 0x3d3   : > { %2890 = vmatmul.msk.f32.gmra.mxu0 %vm1344_vm4, %v4277_v54 }
 0x3db   : > { %2891 = vmatmul.msk.f32.gmra.mxu0 %vm1344_vm4, %v4284_v58 }
 0x448   : > { %v1412_v42 = vpop.f32.mrf.mxu0 }
 0x449   : > { %v1421_v28 = vsel %vm1092_vm0, %v1412_v42, 0.0  ;;  %v1279_v42 = vld [vmem:[#allocation2 + $0x130] sm:$0xff] }
 0x44a   : > { %1422 = vadd.xlane.f32.xlu2 %v1421_v28  ;;  %1630 = vmatpush.msrb.mxu0 %v1279_v42  ;;  %v4345_v28 = vld [vmem:[#allocation2 + $0xf0] sm:$0xff]  ;;  %v4364_v42 = vld [vmem:[#allocation2 + $0xa8] sm:$0xff] }
 0x44b   : > { %1553 = vmatpush.msrb.mxu3 %v4345_v28  ;;  %5239 = vst [vmem:[#allocation40_spill] sm:$0xff] %v4364_v42 }
 0x450   : > { %v1415_v38 = vpop.f32.mrf.mxu0 }
 0x451   : > { %v1424_v10 = vsel %vm1092_vm0, %v1415_v38, 0.0  ;;  %v4347_v38 = vld [vmem:[#allocation2 + $0xf8] sm:$0xff] }
 0x452   : > { %1425 = vadd.xlane.f32.xlu2 %v1424_v10  ;;  %5235 = vst [vmem:[#allocation36_spill] sm:$0xff] %v4347_v38  ;;  %v1273_v10 = vld [vmem:[#allocation2 + $0x100] sm:$0xff]  ;;  %1579 = vmatpush.msra.mxu1 %v4347_v38  ;;  %v4371_v38 = vld [vmem:[#allocation2 + $0x78] sm:$0xff] }
 0x453   : > { %1605 = vmatpush.msrb.mxu2 %v1273_v10  ;;  %v4366_v10 = vld [vmem:[#allocation2 + $0xb0] sm:$0xff]  ;;  %5241 = vst [vmem:[#allocation42_spill] sm:$0xff] %v4371_v38 }
 0x454   : > { %5240 = vst [vmem:[#allocation41_spill] sm:$0xff] %v4366_v10 }
 0x458   : > { %v1418_v1 = vpop.f32.mrf.mxu0 }
 0x459   : > { %v1427_v51 = vsel %vm1092_vm0, %v1418_v1, 0.0  ;;  %v4349_v1 = vpop.permute.xlu2 %1486 }
 0x45a   : > { %1428 = vadd.xlane.f32.xlu0 %v1427_v51  ;;  %v1274_v51 = vld [vmem:[#allocation2 + $0x108] sm:$0xff] }
 0x45b   : > { %1631 = vmatpush.msrb.mxu0 %v1274_v51  ;;  %v1264_v51 = vld [vmem:[#allocation2 + $0xb8] sm:$0xff] }
 0x46a   : > { %1496 = vperm.xlu2 %3016, %v1343_v43   ;;  %v4353_v43 = vld [vmem:[#allocation2 + $0xc8] sm:$0xff] }
 0x46b   : > { %1554 = vmatpush.msrb.mxu3 %v4353_v43 }
 0x46d   : > { %1555 = vmatpush.msrb.mxu3 %v4362_v33 }
 0x46e   : > { %1478 = vperm.xlu0 %3014, %v1340_v2   ;;  %v4355_v2 = vld [vmem:[#allocation2 + $0xd0] sm:$0xff] }
 0x46f   : > { %5236 = vst [vmem:[#allocation37_spill] sm:$0xff] %v4355_v2  ;;  %1580 = vmatpush.msra.mxu1 %v4355_v2  ;;  %v4373_v2 = vld [vmem:[#allocation2 + $0x80] sm:$0xff]  ;;  %1556 = vmatpush.msrb.mxu3 %v4371_v38 }
 0x470   : > { %5242 = vst [vmem:[#allocation43_spill] sm:$0xff] %v4373_v2  ;;  %v1249_v38 = vld [vmem:[#allocation2 + $0x40] sm:$0xff] }
 0x471   : > { %1581 = vmatpush.msra.mxu1 %v4364_v42  ;;  %v4382_v42 = vld [vmem:[#allocation2 + $0x58] sm:$0xff]  ;;  %1557 = vmatpush.msrb.mxu3 %v4380_v59 }
 0x472   : > { %1691 = vperm.xlu2 %3016, %v1532_v61   ;;  %v4357_v61 = vld [vmem:[#allocation2 + $0xd8] sm:$0xff]  ;;  %5244 = vst [vmem:[#allocation45_spill] sm:$0xff] %v4382_v42 }
 0x473   : > { %5237 = vst [vmem:[#allocation38_spill] sm:$0xff] %v4357_v61  ;;  %1606 = vmatpush.msrb.mxu2 %v4357_v61  ;;  %v4375_v61 = vld [vmem:[#allocation2 + $0x88] sm:$0xff]  ;;  %1582 = vmatpush.msra.mxu1 %v4373_v2 }
 0x474   : > { %5243 = vst [vmem:[#allocation44_spill] sm:$0xff] %v4375_v61  ;;  %v4389_v2 = vld [vmem:[#allocation2 + $0x28] sm:$0xff] }
 0x475   : > { %1607 = vmatpush.msrb.mxu2 %v4366_v10  ;;  %v4384_v10 = vld [vmem:[#allocation2 + $0x60] sm:$0xff]  ;;  %1583 = vmatpush.msra.mxu1 %v4382_v42 }
 0x476   : > { %1696 = vperm.xlu0 %3014, %v1533_v47   ;;  %v1269_v47 = vld [vmem:[#allocation2 + $0xe0] sm:$0xff]  ;;  %5245 = vst [vmem:[#allocation46_spill] sm:$0xff] %v4384_v10  ;;  %1558 = vmatpush.msrb.mxu3 %v4389_v2 }
 0x477   : > { %1632 = vmatpush.msrb.mxu0 %v1269_v47  ;;  %v1259_v47 = vld [vmem:[#allocation2 + $0x90] sm:$0xff]  ;;  %1608 = vmatpush.msrb.mxu2 %v4375_v61  ;;  %v4398_v42 = vld [vmem:[#allocation2] sm:$0xff] }
 0x478   : > { %v4391_v61 = vld [vmem:[#allocation2 + $0x30] sm:$0xff]  ;;  %5248 = vst [vmem:[#allocation49_spill] sm:$0xff] %v4398_v42  ;;  %1559 = vmatpush.msrb.mxu3 %v4398_v42 }
 0x479   : > { %1633 = vmatpush.msrb.mxu0 %v1264_v51  ;;  %1609 = vmatpush.msrb.mxu2 %v4384_v10  ;;  %5246 = vst [vmem:[#allocation47_spill] sm:$0xff] %v4391_v61  ;;  %v1244_v10 = vld [vmem:[#allocation2 + $0x18] sm:$0xff] }
 0x47a   : > { %1584 = vmatpush.msra.mxu1 %v4391_v61 }
 0x47b   : > { %1634 = vmatpush.msrb.mxu0 %v1259_v47  ;;  %v4393_v47 = vld [vmem:[#allocation2 + $0x38] sm:$0xff] }
 0x47c   : > { %5247 = vst [vmem:[#allocation48_spill] sm:$0xff] %v4393_v47  ;;  %1610 = vmatpush.msrb.mxu2 %v4393_v47 }
 0x47d   : > { %1635 = vmatpush.msrb.mxu0 %v1254_v8  ;;  %v4402_v8 = vld [vmem:[#allocation2 + $0x10] sm:$0xff] }
 0x47e   : > { %5249 = vst [vmem:[#allocation50_spill] sm:$0xff] %v4402_v8  ;;  %1611 = vmatpush.msrb.mxu2 %v4402_v8 }
 0x47f   : > { %1636 = vmatpush.msrb.mxu0 %v1249_v38  ;;  %v4410_v38 = vpop.permute.xlu0 %1473 }
 0x480   : > { %1739 = vmatpush.msra.mxu2 %v3733_v15 }
 0x481   : > { %1637 = vmatpush.msrb.mxu0 %v1244_v10 }
 0x482   : > { %1740 = vmatpush.msra.mxu2 %v3751_v19 }
 0x483   : > { %1765 = vmatpush.msra.mxu0 %v3926_v60  ;;  %v4439_v60 = vld [vmem:[#allocation2 + $0xe8] sm:$0xff] }
 0x484   : > { %1741 = vmatpush.msra.mxu2 %v3769_v23  ;;  %v4430_v23 = vld [vmem:[#allocation2 + $0x110] sm:$0xff] }
 0x485   : > { %1766 = vmatpush.msra.mxu0 %v3950_v0 }
 0x486   : > { %1742 = vmatpush.msra.mxu2 %v3787_v27 }
 0x487   : > { %1767 = vmatpush.msra.mxu0 %v3967_v35 }
 0x488   : > { %1743 = vmatpush.msra.mxu2 %v3805_v31 }
 0x489   : > { %1768 = vmatpush.msra.mxu0 %v3981_v3  ;;  %v4454_v3 = vld [vmem:[#allocation2 + $0x98] sm:$0xff] }
 0x48a   : > { %1744 = vmatpush.msra.mxu2 %v3823_v37 }
 0x48b   : > { %1769 = vmatpush.msra.mxu0 %v3994_v5  ;;  %v4456_v5 = vld [vmem:[#allocation2 + $0x70] sm:$0xff] }
 0x48c   : > { %1745 = vmatpush.msra.mxu2 %v3841_v41 }
 0x48d   : > { %1770 = vmatpush.msra.mxu0 %v4006_v7 }
 0x48e   : > { %1746 = vmatpush.msra.mxu2 %v3859_v45  ;;  %v4462_v45 = vld [vmem:[#allocation2 + $0x48] sm:$0xff] }
 0x48f   : > { %1771 = vmatpush.msra.mxu0 %v4018_v9 }
 0x490   : > { %1747 = vmatpush.msra.mxu2 %v3877_v49 }
 0x491   : > { %1772 = vmatpush.msra.mxu0 %v4030_v11 }
 0x492   : > { %1748 = vmatpush.msra.mxu2 %v3895_v53 }
 0x493   : > { %1773 = vmatpush.msra.mxu0 %v4050_v16  ;;  %v4471_v16 = vld [vmem:[#allocation2 + $0x20] sm:$0xff] }
 0x494   : > { %1749 = vmatpush.msra.mxu2 %v3913_v57 }
 0x495   : > { %1774 = vmatpush.msra.mxu0 %v4074_v24 }
 0x496   : > { %1750 = vmatpush.msra.mxu2 %v3943_v63 }
 0x497   : > { %1775 = vmatpush.msra.mxu0 %v4096_v32 }
 0x498   : > { %1751 = vmatpush.msra.mxu2 %v4043_v13 }
 0x499   : > { %1776 = vmatpush.msra.mxu0 %v4113_v39 }
 0x49a   : > { %1752 = vmatpush.msra.mxu2 %v4067_v21  ;;  %v5251_v21 = vld [vmem:[#allocation17_spill] sm:$0xff] }
 0x49b   : > { %1777 = vmatpush.msra.mxu0 %v4129_v46  ;;  %v5250_v46 = vld [vmem:[#allocation21_spill] sm:$0xff] }
 0x49c   : > { %1753 = vmatpush.msra.mxu2 %v4091_v29 }
 0x49d   : > { %1778 = vmatpush.msra.mxu0 %v4143_v50 }
 0x49e   : > { %1754 = vmatpush.msra.mxu2 %v5251_v21  ;;  %v1517_v21 = vld [vmem:[%s5140_s13] sm:$0xff] }
 0x49f   : > { %1779 = vmatpush.msra.mxu0 %v5250_v46 }
 0x4bd   : > { %v1423_v51 = vpop.xlane.xlu2 %1422 }
 0x4be   : > { %v1430_v33 = vadd.f32 1e-05, %v1423_v51  ;;  %v4400_v51 = vld [vmem:[#allocation2 + $0x8] sm:$0xff] }
 0x4bf   : > { %1585 = vmatpush.msra.mxu1 %v4400_v51 }
 0x4c0   : > { %3017 = vrsqrt.f32 %v1430_v33  ;;  %vm1439_vm6 = vweird.f32 %v1430_v33 }
 0x4c1   : > { %1713 = vmatpush.msrb.mxu1 %v3728_v14 }
 0x4c3   : > { %1714 = vmatpush.msrb.mxu1 %v3746_v18  ;;  %v4424_v18 = vld [vmem:[#allocation2 + $0x138] sm:$0xff] }
 0x4c4   : > { %1656 = vmatpush.msra.mxu3 %v4424_v18 }
 0x4c5   : > { %v1426_v47 = vpop.xlane.xlu2 %1425  ;;  %1715 = vmatpush.msrb.mxu1 %v3764_v22 }
 0x4c6   : > { %v3018_v61 = vpop.eup %3017  ;;  %v4414_v42 = vadd.f32 1e-05, %v1426_v47  ;;  %1657 = vmatpush.msra.mxu3 %v4430_v23  ;;  %v5253_v47 = vld [vmem:[#allocation6_spill] sm:$0xff] }
 0x4c7   : > { %v1434_v8 = vmul.f32 %v3018_v61, %v1430_v33  ;;  %1716 = vmatpush.msrb.mxu1 %v3782_v26  ;;  %vm1440_vm5 = vweird.f32 %v3018_v61 }
 0x4c8   : > { %3019 = vrsqrt.f32 %v4414_v42  ;;  %vm1441_vm7 = vmor %vm1439_vm6, %vm1440_vm5  ;;  %1658 = vmatpush.msra.mxu3 %v4439_v60  ;;  %vm1449_vm9 = vweird.f32 %v4414_v42 }
 0x4c9   : > { %v1435_v14 = vmul.f32 %v3018_v61, %v1434_v8  ;;  %1717 = vmatpush.msrb.mxu1 %v3800_v30  ;;  %v5254_v8 = vld [vmem:[#allocation23_spill] sm:$0xff] }
 0x4ca   : > { %1780 = vmatpush.msra.mxu0 %v5254_v8 }
 0x4cb   : > { %v1436_v15 = vmul.f32 0.5, %v1435_v14  ;;  %1718 = vmatpush.msrb.mxu1 %v3818_v36  ;;  %v4446_v36 = vld [vmem:[#allocation2 + $0xc0] sm:$0xff] }
 0x4cc   : > { %1659 = vmatpush.msra.mxu3 %v4446_v36  ;;  %v5255_v14 = vld [vmem:[#allocation26_spill] sm:$0xff] }
 0x4cd   : > { %v1437_v19 = vsub.f32 1.5, %v1436_v15  ;;  %v1429_v22 = vpop.xlane.xlu0 %1428  ;;  %1719 = vmatpush.msrb.mxu1 %v3836_v40  ;;  %v1469_v40 = vpop.permute.xlu1 %1468 }
 0x4ce   : > { %v3020_v26 = vpop.eup %3019  ;;  %v4434_v27 = vadd.f32 1e-05, %v1429_v22  ;;  %1660 = vmatpush.msra.mxu3 %v4454_v3  ;;  %v5257_v22 = vld [vmem:[#allocation27_spill] sm:$0xff] }
 0x4cf   : > { %v1438_v30 = vmul.f32 %v3018_v61, %v1437_v19  ;;  %v1444_v31 = vmul.f32 %v3020_v26, %v4414_v42  ;;  %1720 = vmatpush.msrb.mxu1 %v3854_v44  ;;  %vm1450_vm8 = vweird.f32 %v3020_v26  ;;  %v5256_v19 = vld [vmem:[#allocation7_spill] sm:$0xff] }
 0x4d0   : > { %3021 = vrsqrt.f32 %v4434_v27  ;;  %1661 = vmatpush.msra.mxu3 %v4456_v5  ;;  %vm1451_vm10 = vmor %vm1449_vm9, %vm1450_vm8  ;;  %vm1459_vm12 = vweird.f32 %v4434_v27 }
 0x4d1   : > { %v1442_v37 = vsel %vm1441_vm7, %v3018_v61, %v1438_v30  ;;  %v1445_v0 = vmul.f32 %v3020_v26, %v1444_v31  ;;  %1721 = vmatpush.msrb.mxu1 %v3872_v48  ;;  %v5258_v30 = vld [vmem:[#allocation8_spill] sm:$0xff] }
 0x4d2   : > { %v1463_v41 = vmul.f32 %v1442_v37, %v4310_v25  ;;  %1662 = vmatpush.msra.mxu3 %v4462_v45  ;;  %v5259_v31 = vld [vmem:[#allocation28_spill] sm:$0xff] }
 0x4d3   : > { %v1446_v35 = vmul.f32 0.5, %v1445_v0  ;;  %1722 = vmatpush.msrb.mxu1 %v3890_v52 }
 0x4d4   : > { %v1481_v7 = vmul.f32 %v1469_v40, %v1463_v41  ;;  %1663 = vmatpush.msra.mxu3 %v4471_v16  ;;  %v5260_v41 = vld [vmem:[#allocation9_spill] sm:$0xff] }
 0x4d5   : > { %v1447_v44 = vsub.f32 1.5, %v1446_v35  ;;  %1723 = vmatpush.msrb.mxu1 %v3908_v56  ;;  %v1492_v63 = vpop.permute.xlu1 %1491  ;;  %v5261_v40 = vld [vmem:[#allocation29_spill] sm:$0xff] }
 0x4d6   : > { %v3022_v9 = vpop.eup %3021  ;;  %v1499_v11 = vadd.f32 %v4349_v1, %v1481_v7  ;;  %v5262_v7 = vld [vmem:[#allocation10_spill] sm:$0xff] }
 0x4d7   : > { %v1448_v48 = vmul.f32 %v3020_v26, %v1447_v44  ;;  %v1454_v49 = vmul.f32 %v3022_v9, %v4434_v27  ;;  %1724 = vmatpush.msrb.mxu1 %v3938_v62  ;;  %vm1460_vm11 = vweird.f32 %v3022_v9  ;;  %v5263_v44 = vld [vmem:[#allocation30_spill] sm:$0xff] }
 0x4d8   : > { %v1502_v53 = vadd.f32 3.0, %v1499_v11  ;;  %vm1461_vm13 = vmor %vm1459_vm12, %vm1460_vm11 }
 0x4d9   : > { %v1452_v52 = vsel %vm1451_vm10, %v3020_v26, %v1448_v48  ;;  %v1455_v24 = vmul.f32 %v3022_v9, %v1454_v49  ;;  %1725 = vmatpush.msrb.mxu1 %v3962_v34  ;;  %v5265_v48 = vld [vmem:[#allocation31_spill] sm:$0xff]  ;;  %v5266_v49 = vld [vmem:[#allocation12_spill] sm:$0xff] }
 0x4da   : > { %v1464_v25 = vmul.f32 %v1452_v52, %v4306_v4  ;;  %v1505_v1 = vmax.f32 %v1502_v53, 0.0  ;;  %v5267_v53 = vld [vmem:[#allocation32_spill] sm:$0xff]  ;;  %v5268_v52 = vld [vmem:[#allocation13_spill] sm:$0xff] }
 0x4db   : > { %v1456_v56 = vmul.f32 0.5, %v1455_v24  ;;  %1726 = vmatpush.msrb.mxu1 %v4038_v12  ;;  %v5252_v12 = vld [vmem:[#allocation15_spill] sm:$0xff]  ;;  %v5269_v24 = vld [vmem:[#allocation33_spill] sm:$0xff] }
 0x4dc   : > { %v1482_v57 = vmul.f32 %v4410_v38, %v1464_v25  ;;  %v1508_v32 = vmin.f32 %v1505_v1, 6.0  ;;  %v1497_v38 = vpop.permute.xlu2 %1496  ;;  %v5270_v25 = vld [vmem:[#allocation14_spill] sm:$0xff]  ;;  %v5271_v1 = vld [vmem:[#allocation16_spill] sm:$0xff] }
 0x4dd   : > { %v1457_v61 = vsub.f32 1.5, %v1456_v56  ;;  %1727 = vmatpush.msrb.mxu1 %v4062_v20  ;;  %v5272_v56 = vld [vmem:[#allocation18_spill] sm:$0xff] }
 0x4de   : > { %v1500_v62 = vadd.f32 %v1492_v63, %v1482_v57  ;;  %v1511_v4 = vmul.f32 %v1508_v32, %v1499_v11  ;;  %v5264_v11 = vld [vmem:[#allocation11_spill] sm:$0xff]  ;;  %v5274_v32 = vld [vmem:[#allocation20_spill] sm:$0xff]  ;;  %v5275_v63 = vld [vmem:[#allocation22_spill] sm:$0xff] }
 0x4df   : > { %v1458_v13 = vmul.f32 %v3022_v9, %v1457_v61  ;;  %1728 = vmatpush.msrb.mxu1 %v5252_v12  ;;  %v5273_v57 = vld [vmem:[#allocation19_spill] sm:$0xff]  ;;  %v5276_v61 = vld [vmem:[#allocation24_spill] sm:$0xff] }
 0x4e0   : > { %v1503_v34 = vadd.f32 3.0, %v1500_v62  ;;  %v1514_v39 = vmul.f32 0.16666667, %v1511_v4  ;;  %v1479_v29 = vpop.permute.xlu0 %1478  ;;  %v1518_v4 = vld [vmem:[%s5140_s13 + $0x8] sm:$0xff]  ;;  %v1519_v12 = vld [vmem:[%s5140_s13 + $0x10] sm:$0xff] }
 0x4e1   : > { %v1462_v33 = vsel %vm1461_vm13, %v3022_v9, %v1458_v13  ;;  %v1520_v13 = vld [vmem:[%s5140_s13 + $0x18] sm:$0xff] }
 0x4e2   : > { %v1465_v42 = vmul.f32 %v1462_v33, %v4308_v6  ;;  %2892 = vmatmul.msk.f32.vlgmr.msrb.gmra.mxu3 %vm1092_vm0, %v1514_v39  ;;  %2895 = vmatmul.msk.f32.vlgmr.msra.gmra.mxu1 %vm1092_vm0, %v1514_v39  ;;  %v1506_v50 = vmax.f32 %v1503_v34, 0.0 }
 0x4e3   : > { %2898 = vmatmul.msk.f32.vlgmr.msrb.gmra.mxu2 %vm1092_vm0, %v1514_v39  ;;  %2901 = vmatmul.msk.f32.vlgmr.msrb.gmra.mxu0 %vm1092_vm0, %v1514_v39 }
 0x4e4   : > { %v1483_v20 = vmul.f32 %v1479_v29, %v1465_v42  ;;  %v1509_v10 = vmin.f32 %v1506_v50, 6.0  ;;  %1791 = vmatpush.msrb.mxu3 %v5253_v47  ;;  %1825 = vmatpush.msra.mxu1 %v5255_v14  ;;  %v1523_v50 = vld [vmem:[%s5140_s13 + $0x30] sm:$0xff] }
 0x4e6   : > { %v1501_v6 = vadd.f32 %v1497_v38, %v1483_v20  ;;  %v1512_v15 = vmul.f32 %v1509_v10, %v1500_v62  ;;  %1792 = vmatpush.msrb.mxu3 %v5256_v19  ;;  %1826 = vmatpush.msra.mxu1 %v5257_v22  ;;  %v5277_v62 = vld [vmem:[#allocation25_spill] sm:$0xff]  ;;  %v1524_v19 = vld [vmem:[%s5140_s13 + $0x38] sm:$0xff] }
 0x4e7   : > { %v1525_v10 = vld [vmem:[%s5140_s13 + $0x40] sm:$0xff] }
 0x4e8   : > { %v1504_v26 = vadd.f32 3.0, %v1501_v6  ;;  %v1515_v27 = vmul.f32 0.16666667, %v1512_v15  ;;  %1793 = vmatpush.msrb.mxu3 %v5258_v30  ;;  %1827 = vmatpush.msra.mxu1 %v5259_v31  ;;  %v1522_v15 = vld [vmem:[%s5140_s13 + $0x28] sm:$0xff] }
 0x4e9   : > { %v1530_v31 = vld [vmem:[%s5140_s13 + $0x68] sm:$0xff] }
 0x4ea   : > { %v1507_v37 = vmax.f32 %v1504_v26, 0.0  ;;  %2893 = vmatmul.msk.f32.gmra.mxu3 %vm1092_vm0, %v1515_v27  ;;  %2896 = vmatmul.msk.f32.gmra.mxu1 %vm1092_vm0, %v1515_v27  ;;  %v1528_v26 = vld [vmem:[%s5140_s13 + $0x58] sm:$0xff] }
 0x4eb   : > { %2899 = vmatmul.msk.f32.gmra.mxu2 %vm1092_vm0, %v1515_v27  ;;  %2902 = vmatmul.msk.f32.gmra.mxu0 %vm1092_vm0, %v1515_v27 }
 0x4ec   : > { %v1510_v0 = vmin.f32 %v1507_v37, 6.0  ;;  %1794 = vmatpush.msrb.mxu3 %v5260_v41  ;;  %1828 = vmatpush.msra.mxu1 %v5261_v40 }
 0x4ee   : > { %v1513_v35 = vmul.f32 %v1510_v0, %v1501_v6  ;;  %1795 = vmatpush.msrb.mxu3 %v5262_v7  ;;  %1829 = vmatpush.msra.mxu1 %v5263_v44  ;;  %v1527_v7 = vld [vmem:[%s5140_s13 + $0x50] sm:$0xff]  ;;  %v1529_v44 = vld [vmem:[%s5140_s13 + $0x60] sm:$0xff] }
 0x4f0   : > { %v1516_v9 = vmul.f32 0.16666667, %v1513_v35  ;;  %1796 = vmatpush.msrb.mxu3 %v5264_v11  ;;  %1830 = vmatpush.msra.mxu1 %v5265_v48 }
 0x4f2   : > { %2894 = vmatmul.msk.f32.gmra.mxu3 %vm1092_vm0, %v1516_v9  ;;  %2897 = vmatmul.msk.f32.gmra.mxu1 %vm1092_vm0, %v1516_v9 }
 0x4f3   : > { %2900 = vmatmul.msk.f32.gmra.mxu2 %vm1092_vm0, %v1516_v9  ;;  %2903 = vmatmul.msk.f32.gmra.mxu0 %vm1092_vm0, %v1516_v9 }
 0x4f4   : > { %1797 = vmatpush.msrb.mxu3 %v5266_v49  ;;  %1831 = vmatpush.msra.mxu1 %v5267_v53  ;;  %v1521_v53 = vld [vmem:[%s5140_s13 + $0x20] sm:$0xff] }
 0x4f6   : > { %1798 = vmatpush.msrb.mxu3 %v5268_v52  ;;  %1832 = vmatpush.msra.mxu1 %v5269_v24 }
 0x4f8   : > { %1799 = vmatpush.msrb.mxu3 %v5270_v25  ;;  %v1526_v25 = vld [vmem:[%s5140_s13 + $0x48] sm:$0xff] }
 0x4fa   : > { %2904 = vmatmul.msk.f32.vlgmr.msra.gmra.mxu3 %vm1092_vm0, %v1514_v39 }
 0x4fb   : > { %1800 = vmatpush.msrb.mxu3 %v5271_v1 }
 0x4fd   : > { %1801 = vmatpush.msrb.mxu3 %v5272_v56 }
 0x4ff   : > { %1802 = vmatpush.msrb.mxu3 %v5273_v57  ;;  %v1531_v57 = vld [vmem:[%s5140_s13 + $0x70] sm:$0xff] }
 0x501   : > { %1803 = vmatpush.msrb.mxu3 %v5274_v32 }
 0x502   : > { %2905 = vmatmul.msk.f32.gmra.mxu3 %vm1092_vm0, %v1515_v27 }
 0x503   : > { %1804 = vmatpush.msrb.mxu3 %v5275_v63 }
 0x505   : > { %1805 = vmatpush.msrb.mxu3 %v5276_v61 }
 0x507   : > { %1806 = vmatpush.msrb.mxu3 %v5277_v62 }
 0x50a   : > { %2906 = vmatmul.msk.f32.gmra.mxu3 %vm1092_vm0, %v1516_v9 }
 0x55f   : > { %v1587_v34 = vpop.f32.mrf.mxu1 }
 0x560   : > { %v1675_v39 = vmul.f32 %v1587_v34, %v1518_v4  ;;  %v1639_v46 = vpop.f32.mrf.mxu0 }
 0x561   : > { %v1677_v33 = vmul.f32 %v1639_v46, %v1520_v13 }
 0x562   : > { %1755 = vmatmul.f32.vlgmr.msra.gmra.mxu2 %v1675_v39 }
 0x563   : > { %1807 = vmatmul.f32.vlgmr.msrb.gmra.mxu3 %v1677_v33 }
 0x565   : > { %v1561_v42 = vpop.f32.mrf.mxu3 }
 0x566   : > { %v1674_v29 = vmul.f32 %v1561_v42, %v1517_v21  ;;  %v1613_v20 = vpop.f32.mrf.mxu2 }
 0x567   : > { %v1676_v47 = vmul.f32 %v1613_v20, %v1519_v12  ;;  %v1590_v8 = vpop.f32.mrf.mxu1  ;;  %v1702_v12 = vpop.permute.xlu1 %1701 }
 0x568   : > { %v1680_v38 = vmul.f32 %v1590_v8, %v1523_v50  ;;  %v1642_v14 = vpop.f32.mrf.mxu0  ;;  %1729 = vmatmul.f32.vlgmr.msrb.gmra.mxu1 %v1674_v29  ;;  %v1697_v50 = vpop.permute.xlu0 %1696 }
 0x569   : > { %v1682_v6 = vmul.f32 %v1642_v14, %v1525_v10  ;;  %1781 = vmatmul.f32.vlgmr.msra.gmra.mxu0 %v1676_v47  ;;  %v1692_v10 = vpop.permute.xlu2 %1691 }
 0x56a   : > { %1758 = vmatmul.f32.gmra.mxu2 %v1680_v38 }
 0x56b   : > { %1810 = vmatmul.f32.gmra.mxu3 %v1682_v6 }
 0x56d   : > { %v1564_v22 = vpop.f32.mrf.mxu3 }
 0x56e   : > { %v1679_v27 = vmul.f32 %v1564_v22, %v1522_v15  ;;  %v1616_v30 = vpop.f32.mrf.mxu2 }
 0x56f   : > { %v1681_v37 = vmul.f32 %v1616_v30, %v1524_v19  ;;  %v1593_v0 = vpop.f32.mrf.mxu1 }
 0x570   : > { %v1685_v41 = vmul.f32 %v1593_v0, %v1528_v26  ;;  %v1645_v40 = vpop.f32.mrf.mxu0  ;;  %1732 = vmatmul.f32.gmra.mxu1 %v1679_v27 }
 0x571   : > { %v1687_v35 = vmul.f32 %v1645_v40, %v1530_v31  ;;  %1784 = vmatmul.f32.gmra.mxu0 %v1681_v37 }
 0x572   : > { %1761 = vmatmul.f32.gmra.mxu2 %v1685_v41 }
 0x573   : > { %1813 = vmatmul.f32.gmra.mxu3 %v1687_v35 }
 0x575   : > { %v1567_v9 = vpop.f32.mrf.mxu3 }
 0x576   : > { %v1684_v11 = vmul.f32 %v1567_v9, %v1527_v7  ;;  %v1619_v48 = vpop.f32.mrf.mxu2 }
 0x577   : > { %v1686_v49 = vmul.f32 %v1619_v48, %v1529_v44 }
 0x578   : > { %1735 = vmatmul.f32.gmra.mxu1 %v1684_v11 }
 0x579   : > { %1787 = vmatmul.f32.gmra.mxu0 %v1686_v49 }
 0x57d   : > { %v1665_v52 = vpop.f32.mrf.mxu3 }
 0x57e   : > { %v1678_v24 = vmul.f32 %v1665_v52, %v1521_v53  ;;  %v1848_v52 = vld [vmem:[%s5143_s16 + $0x10] sm:$0xff] }
 0x580   : > { %2907 = vmatmul.msk.f32.vlgmr.msra.gmra.mxu1 %vm1092_vm0, %v1678_v24  ;;  %v1844_v24 = vld [vmem:[%s5142_s15 + $0x8] sm:$0xff] }
 0x585   : > { %v1668_v1 = vpop.f32.mrf.mxu3 }
 0x586   : > { %v1683_v56 = vmul.f32 %v1668_v1, %v1526_v25  ;;  %v1845_v25 = vld [vmem:[%s5142_s15 + $0x10] sm:$0xff] }
 0x588   : > { %2908 = vmatmul.msk.f32.gmra.mxu1 %vm1092_vm0, %v1683_v56 }
 0x58d   : > { %v1671_v32 = vpop.f32.mrf.mxu3 }
 0x58e   : > { %v1688_v63 = vmul.f32 %v1671_v32, %v1531_v57 }
 0x590   : > { %2909 = vmatmul.msk.f32.gmra.mxu1 %vm1092_vm0, %v1688_v63 }
 0x5e5   : > { %v1730_v61 = vpop.f32.mrf.mxu1  ;;  %v1756_v4 = vpop.f32.mrf.mxu2 }
 0x5e6   : > { %v1782_v13 = vpop.f32.mrf.mxu0  ;;  %v1808_v39 = vpop.f32.mrf.mxu3  ;;  %v1731_v8 = vadd.f32 %v1730_v61, %v1692_v10 }
 0x5e8   : > { %v1757_v19 = vadd.f32 %v1756_v4, %v1731_v8 }
 0x5ea   : > { %v1783_v30 = vadd.f32 %v1782_v13, %v1757_v19 }
 0x5ec   : > { %v1809_v40 = vadd.f32 %v1808_v39, %v1783_v30  ;;  %v5279_v39 = vld [vmem:[#allocation42_spill] sm:$0xff] }
 0x5ed   : > { %v1733_v62 = vpop.f32.mrf.mxu1  ;;  %v1759_v46 = vpop.f32.mrf.mxu2 }
 0x5ee   : > { %v1785_v33 = vpop.f32.mrf.mxu0  ;;  %v1811_v29 = vpop.f32.mrf.mxu3  ;;  %v1734_v20 = vadd.f32 %v1733_v62, %v1697_v50 }
 0x5f0   : > { %v1760_v6 = vadd.f32 %v1759_v46, %v1734_v20  ;;  %v5280_v46 = vld [vmem:[#allocation49_spill] sm:$0xff] }
 0x5f2   : > { %v1786_v26 = vadd.f32 %v1785_v33, %v1760_v6 }
 0x5f4   : > { %v1812_v0 = vadd.f32 %v1811_v29, %v1786_v26 }
 0x5f5   : > { %v1736_v34 = vpop.f32.mrf.mxu1  ;;  %v1762_v47 = vpop.f32.mrf.mxu2 }
 0x5f6   : > { %v1737_v42 = vadd.f32 %v1736_v34, %v1702_v12  ;;  %v1788_v15 = vpop.f32.mrf.mxu0  ;;  %v1814_v27 = vpop.f32.mrf.mxu3  ;;  %v5278_v34 = vld [vmem:[#allocation39_spill] sm:$0xff] }
 0x5f8   : > { %v1763_v38 = vadd.f32 %v1762_v47, %v1737_v42 }
 0x5fa   : > { %v1789_v22 = vadd.f32 %v1788_v15, %v1763_v38 }
 0x5fc   : > { %v1815_v31 = vadd.f32 %v1814_v27, %v1789_v22 }
 0x5fd   : > { %v1834_v21 = vpop.f32.mrf.mxu1 }
 0x5fe   : > { %v1835_v7 = vadd.f32 %v1834_v21, %v1809_v40 }
 0x605   : > { %v1837_v14 = vpop.f32.mrf.mxu1 }
 0x606   : > { %v1838_v35 = vadd.f32 %v1837_v14, %v1812_v0 }
 0x60d   : > { %v1840_v37 = vpop.f32.mrf.mxu1 }
 0x60e   : > { %v1841_v41 = vadd.f32 %v1840_v37, %v1815_v31 }
 0x610   : > { %1862 = vmatpush.msrb.mxu2 %v1841_v41 }
 0x612   : > { %1863 = vmatpush.msrb.mxu2 %v1838_v35 }
 0x614   : > { %1864 = vmatpush.msrb.mxu2 %v1835_v7 }
 0x615   : > { %2910 = vmatmul.msk.f32.vlgmr.msrb.gmra.mxu2 %vm1344_vm4, %v4270_v55 }
 0x61d   : > { %2911 = vmatmul.msk.f32.gmra.mxu2 %vm1344_vm4, %v4277_v54 }
 0x625   : > { %2912 = vmatmul.msk.f32.gmra.mxu2 %vm1344_vm4, %v4284_v58 }
 0x698   : > { %v1866_v44 = vpop.f32.mrf.mxu2 }
 0x699   : > { %v1875_v9 = vsel %vm1092_vm0, %v1866_v44, 0.0 }
 0x69a   : > { %1876 = vadd.xlane.f32.xlu2 %v1875_v9 }
 0x6a0   : > { %v1869_v11 = vpop.f32.mrf.mxu2 }
 0x6a1   : > { %v1878_v48 = vsel %vm1092_vm0, %v1869_v11, 0.0 }
 0x6a2   : > { %1879 = vadd.xlane.f32.xlu0 %v1878_v48 }
 0x6a8   : > { %v1872_v49 = vpop.f32.mrf.mxu2 }
 0x6a9   : > { %v1881_v53 = vsel %vm1092_vm0, %v1872_v49, 0.0 }
 0x6aa   : > { %1882 = vadd.xlane.f32.xlu1 %v1881_v53 }
 0x6b2   : > { %1991 = vperm.xlu2 %3016, %v1848_v52  }
 0x6b6   : > { %1968 = vperm.xlu0 %3014, %v1844_v24  }
 0x6c3   : > { %1973 = vperm.xlu1 %3015, %v1845_v25  }
 0x70d   : > { %v1877_v56 = vpop.xlane.xlu2 %1876 }
 0x70e   : > { %v4607_v61 = vsub.f32 %v1835_v7, %v1877_v56 }
 0x710   : > { %v1887_v13 = vmul.f32 %v4607_v61, %v4607_v61 }
 0x715   : > { %v1880_v1 = vpop.xlane.xlu0 %1879 }
 0x716   : > { %v4603_v32 = vsub.f32 %v1838_v35, %v1880_v1 }
 0x718   : > { %v1888_v4 = vmul.f32 %v4603_v32, %v4603_v32 }
 0x71d   : > { %v1883_v57 = vpop.xlane.xlu1 %1882 }
 0x71e   : > { %v4605_v63 = vsub.f32 %v1841_v41, %v1883_v57 }
 0x720   : > { %v1889_v62 = vmul.f32 %v4605_v63, %v4605_v63 }
 0x722   : > { %1903 = vmatpush.msrb.mxu0 %v1889_v62 }
 0x724   : > { %1904 = vmatpush.msrb.mxu0 %v1888_v4 }
 0x726   : > { %1905 = vmatpush.msrb.mxu0 %v1887_v13 }
 0x727   : > { %2913 = vmatmul.msk.f32.vlgmr.msrb.gmra.mxu0 %vm1344_vm4, %v4270_v55 }
 0x728   : > { %2309 = vmatpush.msra.mxu0 %v4339_v17 }
 0x72a   : > { %2310 = vmatpush.msra.mxu0 %v4345_v28 }
 0x72c   : > { %2311 = vmatpush.msra.mxu0 %v4353_v43  ;;  %v1846_v43 = vld [vmem:[%s5143_s16] sm:$0xff] }
 0x72e   : > { %2312 = vmatpush.msra.mxu0 %v5278_v34 }
 0x72f   : > { %2914 = vmatmul.msk.f32.gmra.mxu0 %vm1344_vm4, %v4277_v54 }
 0x730   : > { %2313 = vmatpush.msra.mxu0 %v5279_v39 }
 0x732   : > { %2314 = vmatpush.msra.mxu0 %v4380_v59 }
 0x734   : > { %2315 = vmatpush.msra.mxu0 %v4389_v2  ;;  %v1843_v2 = vld [vmem:[%s5142_s15] sm:$0xff] }
 0x735   : > { %v1974_v21 = vpop.permute.xlu1 %1973 }
 0x736   : > { %2316 = vmatpush.msra.mxu0 %v5280_v46 }
 0x737   : > { %2915 = vmatmul.msk.f32.gmra.mxu0 %vm1344_vm4, %v4284_v58 }
 0x738   : > { %2413 = vmatpush.msrb.mxu0 %v4424_v18  ;;  %v2921_v18 = vld [vmem:[%s5137_s10 + $0x20] sm:$0xff] }
 0x73a   : > { %2414 = vmatpush.msrb.mxu0 %v4430_v23  ;;  %v2013_v23 = vld [vmem:[%s5145_s18] sm:$0xff] }
 0x73c   : > { %2415 = vmatpush.msrb.mxu0 %v4439_v60  ;;  %v1847_v60 = vld [vmem:[%s5143_s16 + $0x8] sm:$0xff] }
 0x73e   : > { %2416 = vmatpush.msrb.mxu0 %v4446_v36  ;;  %v2920_v36 = vld [vmem:[%s5137_s10 + $0x18] sm:$0xff] }
 0x740   : > { %2417 = vmatpush.msrb.mxu0 %v4454_v3  ;;  %v2922_v3 = vld [vmem:[%s5137_s10 + $0x28] sm:$0xff] }
 0x742   : > { %2418 = vmatpush.msrb.mxu0 %v4456_v5  ;;  %v1992_v5 = vpop.permute.xlu2 %1991 }
 0x744   : > { %2419 = vmatpush.msrb.mxu0 %v4462_v45  ;;  %v1969_v45 = vpop.permute.xlu0 %1968 }
 0x746   : > { %2420 = vmatpush.msrb.mxu0 %v4471_v16 }
 0x7a4   : > { %v1907_v55 = vpop.f32.mrf.mxu0 }
 0x7a5   : > { %v1916_v54 = vsel %vm1092_vm0, %v1907_v55, 0.0 }
 0x7a6   : > { %1917 = vadd.xlane.f32.xlu2 %v1916_v54 }
 0x7ac   : > { %v1910_v58 = vpop.f32.mrf.mxu0 }
 0x7ad   : > { %v1919_v17 = vsel %vm1092_vm0, %v1910_v58, 0.0 }
 0x7ae   : > { %1920 = vadd.xlane.f32.xlu0 %v1919_v17 }
 0x7b4   : > { %v1913_v59 = vpop.f32.mrf.mxu0 }
 0x7b5   : > { %v1922_v28 = vsel %vm1092_vm0, %v1913_v59, 0.0 }
 0x7b6   : > { %1923 = vadd.xlane.f32.xlu1 %v1922_v28 }
 0x7be   : > { %1981 = vperm.xlu2 %3016, %v1846_v43  }
 0x7c2   : > { %1963 = vperm.xlu0 %3014, %v1843_v2   ;;  %v2012_v2 = vld [vmem:[%s5144_s17] sm:$0xff] }
 0x7c6   : > { %2058 = vperm.xlu2 %3016, %v2921_v18  }
 0x7ca   : > { %2016 = vperm.xlu0 %3014, %v2013_v23  }
 0x7cf   : > { %1986 = vperm.xlu1 %3015, %v1847_v60  }
 0x7d2   : > { %2053 = vperm.xlu0 %3014, %v2920_v36   ;;  %v5281_v36 = vld [vmem:[#allocation34_spill] sm:$0xff] }
 0x7d7   : > { %2063 = vperm.xlu1 %3015, %v2922_v3  }
 0x819   : > { %v1918_v16 = vpop.xlane.xlu2 %1917 }
 0x81a   : > { %v1925_v33 = vadd.f32 1e-05, %v1918_v16  ;;  %v5283_v16 = vld [vmem:[#allocation36_spill] sm:$0xff] }
 0x81c   : > { %3023 = vrsqrt.f32 %v1925_v33  ;;  %vm1934_vm15 = vweird.f32 %v1925_v33 }
 0x821   : > { %v1921_v12 = vpop.xlane.xlu0 %1920  ;;  %v1982_v11 = vpop.permute.xlu2 %1981 }
 0x822   : > { %v3024_v42 = vpop.eup %3023  ;;  %v1926_v50 = vadd.f32 1e-05, %v1921_v12  ;;  %v5285_v12 = vld [vmem:[#allocation40_spill] sm:$0xff] }
 0x823   : > { %v1929_v29 = vmul.f32 %v3024_v42, %v1925_v33  ;;  %vm1935_vm14 = vweird.f32 %v3024_v42  ;;  %v2918_v33 = vld [vmem:[%s5136_s9 + $0x20] sm:$0xff] }
 0x824   : > { %3025 = vrsqrt.f32 %v1926_v50  ;;  %vm1936_vm1 = vmor %vm1934_vm15, %vm1935_vm14  ;;  %vm1944_vm5 = vweird.f32 %v1926_v50 }
 0x825   : > { %v1930_v20 = vmul.f32 %v3024_v42, %v1929_v29  ;;  %v2919_v29 = vld [vmem:[%s5136_s9 + $0x28] sm:$0xff] }
 0x827   : > { %v1931_v10 = vmul.f32 0.5, %v1930_v20  ;;  %v5288_v20 = vld [vmem:[#allocation47_spill] sm:$0xff] }
 0x829   : > { %v1924_v47 = vpop.xlane.xlu1 %1923  ;;  %v1932_v14 = vsub.f32 1.5, %v1931_v10  ;;  %v3041_v10 = vld [vmem:[%s5204_s25 + $0x78] sm:$0xff] }
 0x82a   : > { %v3026_v8 = vpop.eup %3025  ;;  %v1927_v38 = vadd.f32 1e-05, %v1924_v47  ;;  %v3042_v47 = vld [vmem:[%s5204_s25 + $0x70] sm:$0xff] }
 0x82b   : > { %v1939_v6 = vmul.f32 %v3026_v8, %v1926_v50  ;;  %v1933_v22 = vmul.f32 %v3024_v42, %v1932_v14  ;;  %vm1945_vm2 = vweird.f32 %v3026_v8  ;;  %v5287_v50 = vld [vmem:[#allocation45_spill] sm:$0xff]  ;;  %v3046_v14 = vld [vmem:[%s5204_s25 + $0x50] sm:$0xff] }
 0x82c   : > { %3027 = vrsqrt.f32 %v1927_v38  ;;  %vm1946_vm6 = vmor %vm1944_vm5, %vm1945_vm2  ;;  %vm1954_vm8 = vweird.f32 %v1927_v38 }
 0x82d   : > { %v1940_v15 = vmul.f32 %v3026_v8, %v1939_v6  ;;  %v1937_v31 = vsel %vm1936_vm1, %v3024_v42, %v1933_v22  ;;  %v5286_v42 = vld [vmem:[#allocation43_spill] sm:$0xff]  ;;  %v3047_v6 = vld [vmem:[%s5204_s25 + $0x48] sm:$0xff] }
 0x82e   : > { %v1958_v40 = vmul.f32 %v1937_v31, %v4607_v61  ;;  %v3050_v22 = vld [vmem:[%s5204_s25 + $0x30] sm:$0xff] }
 0x82f   : > { %v1941_v19 = vmul.f32 0.5, %v1940_v15  ;;  %v3048_v15 = vld [vmem:[%s5204_s25 + $0x40] sm:$0xff]  ;;  %v3054_v31 = vld [vmem:[%s5204_s25 + $0x10] sm:$0xff] }
 0x831   : > { %v1942_v26 = vsub.f32 1.5, %v1941_v19  ;;  %v3049_v19 = vld [vmem:[%s5204_s25 + $0x38] sm:$0xff] }
 0x832   : > { %v3028_v27 = vpop.eup %3027 }
 0x833   : > { %v1949_v30 = vmul.f32 %v3028_v27, %v1927_v38  ;;  %v1943_v41 = vmul.f32 %v3026_v8, %v1942_v26  ;;  %vm1955_vm7 = vweird.f32 %v3028_v27  ;;  %v3045_v38 = vld [vmem:[%s5204_s25 + $0x58] sm:$0xff]  ;;  %v3051_v26 = vld [vmem:[%s5204_s25 + $0x28] sm:$0xff] }
 0x834   : > { %v1964_v0 = vpop.permute.xlu0 %1963  ;;  %vm1956_vm9 = vmor %vm1954_vm8, %vm1955_vm7 }
 0x835   : > { %v1950_v37 = vmul.f32 %v3028_v27, %v1949_v30  ;;  %v1976_v7 = vmul.f32 %v1964_v0, %v1958_v40  ;;  %v1947_v9 = vsel %vm1946_vm6, %v3026_v8, %v1943_v41  ;;  %v3043_v8 = vld [vmem:[%s5204_s25 + $0x68] sm:$0xff]  ;;  %v3053_v30 = vld [vmem:[%s5204_s25 + $0x18] sm:$0xff]  ;;  %v3056_v0 = vld [vmem:[%s5204_s25] sm:$0xff] }
 0x836   : > { %v1959_v53 = vmul.f32 %v1947_v9, %v4603_v32  ;;  %v2059_v9 = vpop.permute.xlu2 %2058 }
 0x837   : > { %v1951_v35 = vmul.f32 0.5, %v1950_v37  ;;  %v1994_v49 = vadd.f32 %v1982_v11, %v1976_v7  ;;  %v3055_v37 = vld [vmem:[%s5204_s25 + $0x8] sm:$0xff] }
 0x838   : > { %v1977_v56 = vmul.f32 %v1969_v45, %v1959_v53  ;;  %v5282_v45 = vld [vmem:[#allocation35_spill] sm:$0xff]  ;;  %v4752_v53 = vld [vmem:[%s5131_s4] sm:$0xff] }
 0x839   : > { %v1952_v44 = vsub.f32 1.5, %v1951_v35  ;;  %v1997_v1 = vadd.f32 3.0, %v1994_v49 }
 0x83b   : > { %v1953_v48 = vmul.f32 %v3028_v27, %v1952_v44  ;;  %v2000_v4 = vmax.f32 %v1997_v1, 0.0  ;;  %v5290_v1 = vld [vmem:[#allocation41_spill] sm:$0xff] }
 0x83c   : > { %v2017_v18 = vpop.permute.xlu0 %2016 }
 0x83d   : > { %v1957_v52 = vsel %vm1956_vm9, %v3028_v27, %v1953_v48  ;;  %v2003_v55 = vmin.f32 %v2000_v4, 6.0  ;;  %v3052_v27 = vld [vmem:[%s5204_s25 + $0x20] sm:$0xff]  ;;  %v5294_v4 = vld [vmem:[#allocation50_spill] sm:$0xff] }
 0x83e   : > { %v1960_v24 = vmul.f32 %v1957_v52, %v4605_v63  ;;  %v3058_v52 = vld [vmem:[#allocation2 + $0x128] sm:$0xff] }
 0x83f   : > { %v2006_v28 = vmul.f32 %v2003_v55, %v1994_v49  ;;  %v3065_v55 = vld [vmem:[%s5204_s25 + $0xe0] sm:$0xff] }
 0x840   : > { %v1978_v25 = vmul.f32 %v1974_v21, %v1960_v24  ;;  %v5284_v21 = vld [vmem:[#allocation37_spill] sm:$0xff]  ;;  %v3059_v24 = vld [vmem:[#allocation2 + $0x100] sm:$0xff] }
 0x841   : > { %v1987_v57 = vpop.permute.xlu1 %1986  ;;  %v2009_v63 = vmul.f32 0.16666667, %v2006_v28  ;;  %v3071_v28 = vld [vmem:[%s5204_s25 + $0xb0] sm:$0xff] }
 0x842   : > { %v1995_v61 = vadd.f32 %v1987_v57, %v1977_v56  ;;  %v1996_v62 = vadd.f32 %v1992_v5, %v1978_v25  ;;  %v2917_v5 = vld [vmem:[%s5136_s9 + $0x18] sm:$0xff]  ;;  %v5289_v25 = vld [vmem:[#allocation38_spill] sm:$0xff] }
 0x843   : > { %v4761_v56 = vld [vmem:[%s5131_s4 + $0x8] sm:$0xff]  ;;  %v5291_v57 = vld [vmem:[#allocation44_spill] sm:$0xff] }
 0x844   : > { %v1998_v13 = vadd.f32 3.0, %v1995_v61  ;;  %v1999_v34 = vadd.f32 3.0, %v1996_v62  ;;  %v2054_v48 = vpop.permute.xlu0 %2053 }
 0x846   : > { %v2001_v39 = vmax.f32 %v1998_v13, 0.0  ;;  %v2002_v46 = vmax.f32 %v1999_v34, 0.0  ;;  %v4772_v13 = vld [vmem:[%s5131_s4 + $0x10] sm:$0xff]  ;;  %v3062_v34 = vld [vmem:[%s5204_s25 + $0xf8] sm:$0xff] }
 0x848   : > { %v2004_v54 = vmin.f32 %v2001_v39, 6.0  ;;  %v2005_v58 = vmin.f32 %v2002_v46, 6.0  ;;  %v3063_v39 = vld [vmem:[%s5204_s25 + $0xf0] sm:$0xff]  ;;  %v3064_v46 = vld [vmem:[%s5204_s25 + $0xe8] sm:$0xff] }
 0x849   : > { %v2064_v35 = vpop.permute.xlu1 %2063 }
 0x84a   : > { %v2007_v17 = vmul.f32 %v2004_v54, %v1995_v61  ;;  %v2008_v59 = vmul.f32 %v2005_v58, %v1996_v62  ;;  %v5292_v61 = vld [vmem:[#allocation46_spill] sm:$0xff]  ;;  %v5293_v62 = vld [vmem:[#allocation48_spill] sm:$0xff]  ;;  %v3067_v58 = vld [vmem:[%s5204_s25 + $0xd0] sm:$0xff] }
 0x84b   : > { %v3066_v54 = vld [vmem:[%s5204_s25 + $0xd8] sm:$0xff] }
 0x84c   : > { %v2011_v32 = vmul.f32 0.16666667, %v2008_v59  ;;  %v2010_v43 = vmul.f32 0.16666667, %v2007_v17  ;;  %v3068_v17 = vld [vmem:[%s5204_s25 + $0xc8] sm:$0xff]  ;;  %v3069_v59 = vld [vmem:[%s5204_s25 + $0xc0] sm:$0xff] }
 0x84e   : > { %2035 = vmatpush.msra.mxu3 %v2011_v32  ;;  %v3070_v32 = vld [vmem:[%s5204_s25 + $0xb8] sm:$0xff] }
 0x850   : > { %2036 = vmatpush.msra.mxu3 %v2010_v43  ;;  %v3072_v43 = vld [vmem:[%s5204_s25 + $0xa8] sm:$0xff] }
 0x852   : > { %2037 = vmatpush.msra.mxu3 %v2009_v63  ;;  %v3073_v63 = vld [vmem:[%s5204_s25 + $0xa0] sm:$0xff] }
 0x853   : > { %2916 = vmatmul.msk.f32.vlgmr.msra.gmra.mxu3 %vm1344_vm4, %v2012_v2  ;;  %v3074_v2 = vld [vmem:[%s5204_s25 + $0x98] sm:$0xff] }
 0x8d6   : > { %v2039_v23 = vpop.f32.mrf.mxu3 }
 0x8d7   : > { %v2040_v60 = vadd.f32 %v2039_v23, %v2017_v18  ;;  %v3075_v18 = vld [vmem:[%s5204_s25 + $0x90] sm:$0xff]  ;;  %v3076_v23 = vld [vmem:[%s5204_s25 + $0x88] sm:$0xff] }
 0x8d9   : > { %v4669_v3 = vadd.f32 %v2040_v60, %v5281_v36  ;;  %v3077_v60 = vld [vmem:[%s5204_s25 + $0x80] sm:$0xff] }
 0x8db   : > { %2090 = vmatpush.msrb.mxu1 %v4669_v3 }
 0x8dc   : > { %2923 = vmatmul.msk.f32.vlgmr.msrb.gmra.mxu1 %vm1302_vm3, %v2917_v5 }
 0x8dd   : > { %2335 = vmatpush.msra.mxu1 %v5282_v45 }
 0x8df   : > { %2336 = vmatpush.msra.mxu1 %v5283_v16 }
 0x8e1   : > { %2337 = vmatpush.msra.mxu1 %v5284_v21 }
 0x8e3   : > { %2338 = vmatpush.msra.mxu1 %v5285_v12  ;;  %v2927_v12 = vld [vmem:[%s5138_s11 + $0x20] sm:$0xff] }
 0x8e4   : > { %2924 = vmatmul.msk.f32.gmra.mxu1 %vm1302_vm3, %v2918_v33 }
 0x8e5   : > { %2339 = vmatpush.msra.mxu1 %v5286_v42  ;;  %v2929_v42 = vld [vmem:[%s5139_s12 + $0x18] sm:$0xff] }
 0x8e7   : > { %2340 = vmatpush.msra.mxu1 %v5287_v50  ;;  %v2926_v50 = vld [vmem:[%s5138_s11 + $0x18] sm:$0xff] }
 0x8e9   : > { %2341 = vmatpush.msra.mxu1 %v5288_v20 }
 0x8eb   : > { %2342 = vmatpush.msra.mxu1 %v4400_v51  ;;  %v3044_v51 = vld [vmem:[%s5204_s25 + $0x60] sm:$0xff] }
 0x8ec   : > { %2925 = vmatmul.msk.f32.gmra.mxu1 %vm1302_vm3, %v2919_v29 }
 0x8ed   : > { %2470 = vmatpush.msrb.mxu1 %v3041_v10 }
 0x8ef   : > { %2471 = vmatpush.msrb.mxu1 %v3042_v47 }
 0x8f1   : > { %2472 = vmatpush.msrb.mxu1 %v3043_v8 }
 0x8f3   : > { %2473 = vmatpush.msrb.mxu1 %v3044_v51 }
 0x8f5   : > { %2474 = vmatpush.msrb.mxu1 %v3045_v38 }
 0x8f7   : > { %2475 = vmatpush.msrb.mxu1 %v3046_v14 }
 0x8f9   : > { %2476 = vmatpush.msrb.mxu1 %v3047_v6 }
 0x8fb   : > { %2477 = vmatpush.msrb.mxu1 %v3048_v15  ;;  %v3078_v15 = vld [vmem:[#allocation2 + $0x130] sm:$0xff] }
 0x8fd   : > { %2478 = vmatpush.msrb.mxu1 %v3049_v19  ;;  %v3079_v19 = vld [vmem:[#allocation2 + $0x108] sm:$0xff] }
 0x8ff   : > { %2479 = vmatpush.msrb.mxu1 %v3050_v22  ;;  %v3080_v22 = vld [vmem:[#allocation2 + $0xe0] sm:$0xff] }
 0x901   : > { %2480 = vmatpush.msrb.mxu1 %v3051_v26  ;;  %v3081_v26 = vld [vmem:[#allocation2 + $0xb8] sm:$0xff] }
 0x903   : > { %2481 = vmatpush.msrb.mxu1 %v3052_v27  ;;  %v3082_v27 = vld [vmem:[#allocation2 + $0x90] sm:$0xff] }
 0x905   : > { %2482 = vmatpush.msrb.mxu1 %v3053_v30  ;;  %v3083_v30 = vld [vmem:[#allocation2 + $0x68] sm:$0xff] }
 0x907   : > { %2483 = vmatpush.msrb.mxu1 %v3054_v31  ;;  %v3084_v31 = vld [vmem:[#allocation2 + $0x40] sm:$0xff] }
 0x909   : > { %2484 = vmatpush.msrb.mxu1 %v3055_v37  ;;  %v3085_v37 = vld [vmem:[#allocation2 + $0x18] sm:$0xff] }
 0x90b   : > { %2485 = vmatpush.msrb.mxu1 %v3056_v0  ;;  %v3086_v0 = vld [vmem:[%s5204_s25 + $0x178] sm:$0xff] }
 0x959   : > { %v2092_v41 = vpop.f32.mrf.mxu1 }
 0x95a   : > { %v4745_v49 = vadd.f32 %v2092_v41, %v2054_v48  ;;  %v3087_v41 = vld [vmem:[%s5204_s25 + $0x170] sm:$0xff]  ;;  %v3094_v48 = vld [vmem:[%s5204_s25 + $0x138] sm:$0xff] }
 0x961   : > { %v2095_v40 = vpop.f32.mrf.mxu1 }
 0x962   : > { %v4742_v11 = vadd.f32 %v2095_v40, %v2059_v9  ;;  %v3088_v40 = vld [vmem:[%s5204_s25 + $0x168] sm:$0xff] }
 0x963   : > { %v3092_v9 = vld [vmem:[%s5204_s25 + $0x148] sm:$0xff] }
 0x969   : > { %v2098_v7 = vpop.f32.mrf.mxu1 }
 0x96a   : > { %v4740_v44 = vadd.f32 %v2098_v7, %v2064_v35  ;;  %v3089_v35 = vld [vmem:[%s5204_s25 + $0x160] sm:$0xff]  ;;  %v3090_v7 = vld [vmem:[%s5204_s25 + $0x158] sm:$0xff] }
 0x96c   : > { %2122 = vmatpush.msra.mxu2 %v4740_v44 }
 0x96e   : > { %2123 = vmatpush.msra.mxu2 %v4742_v11 }
 0x970   : > { %2124 = vmatpush.msra.mxu2 %v4745_v49 }
 0x971   : > { %2932 = vmatmul.msk.f32.vlgmr.msra.gmra.mxu2 %vm1344_vm4, %v4752_v53 }
 0x972   : > { %2361 = vmatpush.msrb.mxu2 %v3058_v52  ;;  %v3096_v52 = vld [vmem:[%s5204_s25 + $0x128] sm:$0xff] }
 0x974   : > { %2362 = vmatpush.msrb.mxu2 %v3059_v24  ;;  %v3097_v24 = vld [vmem:[%s5204_s25 + $0x120] sm:$0xff] }
 0x976   : > { %2363 = vmatpush.msrb.mxu2 %v5289_v25  ;;  %v3098_v25 = vld [vmem:[%s5204_s25 + $0x118] sm:$0xff] }
 0x978   : > { %2364 = vmatpush.msrb.mxu2 %v5290_v1  ;;  %v3099_v1 = vld [vmem:[%s5204_s25 + $0x110] sm:$0xff] }
 0x979   : > { %2933 = vmatmul.msk.f32.gmra.mxu2 %vm1344_vm4, %v4761_v56 }
 0x97a   : > { %2365 = vmatpush.msrb.mxu2 %v5291_v57  ;;  %v3100_v57 = vld [vmem:[%s5204_s25 + $0x108] sm:$0xff] }
 0x97c   : > { %2366 = vmatpush.msrb.mxu2 %v5292_v61  ;;  %v3101_v61 = vld [vmem:[%s5204_s25 + $0x100] sm:$0xff] }
 0x97e   : > { %2367 = vmatpush.msrb.mxu2 %v5293_v62 }
 0x980   : > { %2368 = vmatpush.msrb.mxu2 %v5294_v4 }
 0x981   : > { %2934 = vmatmul.msk.f32.gmra.mxu2 %vm1344_vm4, %v4772_v13 }
 0x982   : > { %2496 = vmatpush.msra.mxu2 %v3062_v34 }
 0x984   : > { %2497 = vmatpush.msra.mxu2 %v3063_v39 }
 0x986   : > { %2498 = vmatpush.msra.mxu2 %v3064_v46 }
 0x988   : > { %2499 = vmatpush.msra.mxu2 %v3065_v55 }
 0x98a   : > { %2500 = vmatpush.msra.mxu2 %v3066_v54  ;;  %v2930_v54 = vld [vmem:[%s5139_s12 + $0x20] sm:$0xff] }
 0x98c   : > { %2501 = vmatpush.msra.mxu2 %v3067_v58  ;;  %v2931_v58 = vld [vmem:[%s5139_s12 + $0x28] sm:$0xff] }
 0x98e   : > { %2502 = vmatpush.msra.mxu2 %v3068_v17  ;;  %v2955_v17 = vld [vmem:[%s5141_s14 + $0x28] sm:$0xff] }
 0x990   : > { %2503 = vmatpush.msra.mxu2 %v3069_v59  ;;  %v2928_v59 = vld [vmem:[%s5138_s11 + $0x28] sm:$0xff] }
 0x992   : > { %2504 = vmatpush.msra.mxu2 %v3070_v32  ;;  %v2953_v32 = vld [vmem:[%s5141_s14 + $0x18] sm:$0xff] }
 0x994   : > { %2505 = vmatpush.msra.mxu2 %v3071_v28  ;;  %v2954_v28 = vld [vmem:[%s5141_s14 + $0x20] sm:$0xff] }
 0x996   : > { %2506 = vmatpush.msra.mxu2 %v3072_v43 }
 0x998   : > { %2507 = vmatpush.msra.mxu2 %v3073_v63 }
 0x99a   : > { %2508 = vmatpush.msra.mxu2 %v3074_v2 }
 0x99c   : > { %2509 = vmatpush.msra.mxu2 %v3075_v18 }
 0x99e   : > { %2510 = vmatpush.msra.mxu2 %v3076_v23 }
 0x9a0   : > { %2511 = vmatpush.msra.mxu2 %v3077_v60 }
 0x9f4   : > { %v2126_v36 = vpop.f32.mrf.mxu2 }
 0x9f5   : > { %v2135_v5 = vsel %vm1092_vm0, %v2126_v36, 0.0 }
 0x9f6   : > { %2136 = vadd.xlane.f32.xlu0 %v2135_v5 }
 0x9fc   : > { %v2129_v45 = vpop.f32.mrf.mxu2 }
 0x9fd   : > { %v2138_v16 = vsel %vm1092_vm0, %v2129_v45, 0.0 }
 0x9fe   : > { %2139 = vadd.xlane.f32.xlu2 %v2138_v16 }
 0xa04   : > { %v2132_v33 = vpop.f32.mrf.mxu2 }
 0xa05   : > { %v2141_v21 = vsel %vm1092_vm0, %v2132_v33, 0.0 }
 0xa06   : > { %2142 = vadd.xlane.f32.xlu1 %v2141_v21 }
 0xa0a   : > { %2228 = vperm.xlu0 %3014, %v2927_v12  }
 0xa16   : > { %2241 = vperm.xlu2 %3016, %v2929_v42  }
 0xa1f   : > { %2223 = vperm.xlu1 %3015, %v2926_v50  }
 0xa69   : > { %v2137_v20 = vpop.xlane.xlu0 %2136 }
 0xa6a   : > { %v4843_v51 = vsub.f32 %v4745_v49, %v2137_v20  ;;  %v3095_v49 = vld [vmem:[%s5204_s25 + $0x130] sm:$0xff] }
 0xa6c   : > { %v2147_v6 = vmul.f32 %v4843_v51, %v4843_v51 }
 0xa71   : > { %v2140_v29 = vpop.xlane.xlu2 %2139 }
 0xa72   : > { %v4837_v47 = vsub.f32 %v4742_v11, %v2140_v29  ;;  %v3093_v11 = vld [vmem:[%s5204_s25 + $0x140] sm:$0xff] }
 0xa74   : > { %v2148_v14 = vmul.f32 %v4837_v47, %v4837_v47 }
 0xa79   : > { %v2143_v10 = vpop.xlane.xlu1 %2142  ;;  %v2242_v63 = vpop.permute.xlu2 %2241 }
 0xa7a   : > { %v4840_v8 = vsub.f32 %v4740_v44, %v2143_v10  ;;  %v3091_v44 = vld [vmem:[%s5204_s25 + $0x150] sm:$0xff] }
 0xa7c   : > { %v2149_v38 = vmul.f32 %v4840_v8, %v4840_v8  ;;  %v2229_v23 = vpop.permute.xlu0 %2228 }
 0xa7e   : > { %2163 = vmatpush.msrb.mxu3 %v2149_v38 }
 0xa80   : > { %2164 = vmatpush.msrb.mxu3 %v2148_v14 }
 0xa82   : > { %2165 = vmatpush.msrb.mxu3 %v2147_v6 }
 0xa83   : > { %2935 = vmatmul.msk.f32.vlgmr.msrb.gmra.mxu3 %vm1344_vm4, %v4752_v53 }
 0xa84   : > { %2387 = vmatpush.msra.mxu3 %v3078_v15 }
 0xa86   : > { %2388 = vmatpush.msra.mxu3 %v3079_v19 }
 0xa88   : > { %2389 = vmatpush.msra.mxu3 %v3080_v22 }
 0xa8a   : > { %2390 = vmatpush.msra.mxu3 %v3081_v26 }
 0xa8b   : > { %2936 = vmatmul.msk.f32.gmra.mxu3 %vm1344_vm4, %v4761_v56 }
 0xa8c   : > { %2391 = vmatpush.msra.mxu3 %v3082_v27 }
 0xa8e   : > { %2392 = vmatpush.msra.mxu3 %v3083_v30 }
 0xa90   : > { %2393 = vmatpush.msra.mxu3 %v3084_v31 }
 0xa91   : > { %v2224_v43 = vpop.permute.xlu1 %2223 }
 0xa92   : > { %2394 = vmatpush.msra.mxu3 %v3085_v37 }
 0xa93   : > { %2937 = vmatmul.msk.f32.gmra.mxu3 %vm1344_vm4, %v4772_v13 }
 0xa94   : > { %2522 = vmatpush.msrb.mxu3 %v3086_v0 }
 0xa96   : > { %2523 = vmatpush.msrb.mxu3 %v3087_v41 }
 0xa98   : > { %2524 = vmatpush.msrb.mxu3 %v3088_v40 }
 0xa9a   : > { %2525 = vmatpush.msrb.mxu3 %v3089_v35 }
 0xa9c   : > { %2526 = vmatpush.msrb.mxu3 %v3090_v7 }
 0xa9e   : > { %2527 = vmatpush.msrb.mxu3 %v3091_v44 }
 0xaa0   : > { %2528 = vmatpush.msrb.mxu3 %v3092_v9 }
 0xaa2   : > { %2529 = vmatpush.msrb.mxu3 %v3093_v11 }
 0xaa4   : > { %2530 = vmatpush.msrb.mxu3 %v3094_v48 }
 0xaa6   : > { %2531 = vmatpush.msrb.mxu3 %v3095_v49 }
 0xaa8   : > { %2532 = vmatpush.msrb.mxu3 %v3096_v52 }
 0xaaa   : > { %2533 = vmatpush.msrb.mxu3 %v3097_v24 }
 0xaac   : > { %2534 = vmatpush.msrb.mxu3 %v3098_v25 }
 0xaae   : > { %2535 = vmatpush.msrb.mxu3 %v3099_v1 }
 0xab0   : > { %2536 = vmatpush.msrb.mxu3 %v3100_v57 }
 0xab2   : > { %2537 = vmatpush.msrb.mxu3 %v3101_v61 }
 0xb06   : > { %v2167_v62 = vpop.f32.mrf.mxu3 }
 0xb07   : > { %v2176_v4 = vsel %vm1092_vm0, %v2167_v62, 0.0 }
 0xb08   : > { %2177 = vadd.xlane.f32.xlu1 %v2176_v4  ;;  %v3102_v4 = vld [vmem:[%s5204_s25 + $0x1f8] sm:$0xff] }
 0xb0e   : > { %v2170_v34 = vpop.f32.mrf.mxu3 }
 0xb0f   : > { %v2179_v39 = vsel %vm1092_vm0, %v2170_v34, 0.0 }
 0xb10   : > { %2180 = vadd.xlane.f32.xlu2 %v2179_v39 }
 0xb16   : > { %v2173_v46 = vpop.f32.mrf.mxu3 }
 0xb17   : > { %v2182_v55 = vsel %vm1092_vm0, %v2173_v46, 0.0 }
 0xb18   : > { %2183 = vadd.xlane.f32.xlu0 %v2182_v55  ;;  %v3104_v55 = vld [vmem:[%s5204_s25 + $0x1f0] sm:$0xff] }
 0xb21   : > { %2246 = vperm.xlu1 %3015, %v2930_v54   ;;  %v3105_v54 = vld [vmem:[%s5204_s25 + $0x230] sm:$0xff] }
 0xb28   : > { %2251 = vperm.xlu2 %3016, %v2931_v58  }
 0xb29   : > { %2458 = vperm.xlu1 %3015, %v2955_v17  }
 0xb2c   : > { %2233 = vperm.xlu0 %3014, %v2928_v59   ;;  %v3106_v59 = vld [vmem:[%s5204_s25 + $0x1e8] sm:$0xff] }
 0xb30   : > { %2448 = vperm.xlu2 %3016, %v2953_v32   ;;  %v3107_v32 = vld [vmem:[%s5204_s25 + $0x228] sm:$0xff] }
 0xb34   : > { %2453 = vperm.xlu0 %3014, %v2954_v28  }
 0xb7b   : > { %v2178_v2 = vpop.xlane.xlu1 %2177 }
 0xb7c   : > { %v2185_v18 = vadd.f32 1e-05, %v2178_v2  ;;  %v3109_v2 = vld [vmem:[%s5204_s25 + $0x220] sm:$0xff] }
 0xb7e   : > { %3029 = vrsqrt.f32 %v2185_v18  ;;  %vm2194_vm10 = vweird.f32 %v2185_v18 }
 0xb83   : > { %v2181_v60 = vpop.xlane.xlu2 %2180 }
 0xb84   : > { %v3030_v36 = vpop.eup %3029  ;;  %v2186_v5 = vadd.f32 1e-05, %v2181_v60  ;;  %v3111_v60 = vld [vmem:[%s5204_s25 + $0x218] sm:$0xff] }
 0xb85   : > { %v2189_v45 = vmul.f32 %v3030_v36, %v2185_v18  ;;  %vm2195_vm3 = vweird.f32 %v3030_v36 }
 0xb86   : > { %3031 = vrsqrt.f32 %v2186_v5  ;;  %vm2196_vm11 = vmor %vm2194_vm10, %vm2195_vm3  ;;  %vm2204_vm13 = vweird.f32 %v2186_v5 }
 0xb87   : > { %v2190_v16 = vmul.f32 %v3030_v36, %v2189_v45  ;;  %v3113_v45 = vld [vmem:[%s5204_s25 + $0x210] sm:$0xff] }
 0xb89   : > { %v2191_v33 = vmul.f32 0.5, %v2190_v16  ;;  %v3114_v16 = vld [vmem:[%s5204_s25 + $0x1c8] sm:$0xff] }
 0xb8b   : > { %v2192_v21 = vsub.f32 1.5, %v2191_v33  ;;  %v2184_v12 = vpop.xlane.xlu0 %2183  ;;  %v2252_v34 = vpop.permute.xlu2 %2251  ;;  %v3115_v33 = vld [vmem:[%s5204_s25 + $0x208] sm:$0xff] }
 0xb8c   : > { %v3032_v42 = vpop.eup %3031  ;;  %v2187_v50 = vadd.f32 1e-05, %v2184_v12  ;;  %v3117_v12 = vld [vmem:[%s5204_s25 + $0x200] sm:$0xff] }
 0xb8d   : > { %v2193_v29 = vmul.f32 %v3030_v36, %v2192_v21  ;;  %v2199_v20 = vmul.f32 %v3032_v42, %v2186_v5  ;;  %vm2205_vm12 = vweird.f32 %v3032_v42  ;;  %v3112_v5 = vld [vmem:[%s5204_s25 + $0x1d0] sm:$0xff]  ;;  %v3116_v21 = vld [vmem:[%s5204_s25 + $0x1c0] sm:$0xff] }
 0xb8e   : > { %3033 = vrsqrt.f32 %v2187_v50  ;;  %vm2206_vm14 = vmor %vm2204_vm13, %vm2205_vm12  ;;  %vm2214_vm1 = vweird.f32 %v2187_v50 }
 0xb8f   : > { %v2197_v10 = vsel %vm2196_vm11, %v3030_v36, %v2193_v29  ;;  %v2200_v38 = vmul.f32 %v3032_v42, %v2199_v20  ;;  %v3120_v29 = vld [vmem:[%s5204_s25 + $0x1a8] sm:$0xff]  ;;  %v3121_v20 = vld [vmem:[%s5204_s25 + $0x1a0] sm:$0xff] }
 0xb90   : > { %v2218_v14 = vmul.f32 %v2197_v10, %v4843_v51  ;;  %v3122_v10 = vld [vmem:[%s5204_s25 + $0x198] sm:$0xff] }
 0xb91   : > { %v2201_v6 = vmul.f32 0.5, %v2200_v38  ;;  %v3123_v38 = vld [vmem:[%s5204_s25 + $0x190] sm:$0xff] }
 0xb92   : > { %v2236_v15 = vmul.f32 %v2224_v43, %v2218_v14  ;;  %v3124_v14 = vld [vmem:[%s5204_s25 + $0x188] sm:$0xff] }
 0xb93   : > { %v2202_v19 = vsub.f32 1.5, %v2201_v6  ;;  %v2247_v9 = vpop.permute.xlu1 %2246  ;;  %v3125_v6 = vld [vmem:[%s5204_s25 + $0x180] sm:$0xff] }
 0xb94   : > { %v3034_v22 = vpop.eup %3033  ;;  %v2254_v26 = vadd.f32 %v2242_v63, %v2236_v15  ;;  %v3108_v63 = vld [vmem:[%s5204_s25 + $0x1e0] sm:$0xff]  ;;  %v2938_v15 = vld [vmem:[%s5140_s13 + $0x78] sm:$0xff] }
 0xb95   : > { %v2209_v27 = vmul.f32 %v3034_v22, %v2187_v50  ;;  %v2203_v30 = vmul.f32 %v3032_v42, %v2202_v19  ;;  %vm2215_vm15 = vweird.f32 %v3034_v22  ;;  %v3119_v50 = vld [vmem:[%s5204_s25 + $0x1b0] sm:$0xff]  ;;  %v2939_v19 = vld [vmem:[%s5140_s13 + $0x80] sm:$0xff] }
 0xb96   : > { %v2257_v31 = vadd.f32 3.0, %v2254_v26  ;;  %vm2216_vm2 = vmor %vm2214_vm1, %vm2215_vm15 }
 0xb97   : > { %v2210_v37 = vmul.f32 %v3034_v22, %v2209_v27  ;;  %v2207_v0 = vsel %vm2206_vm14, %v3032_v42, %v2203_v30  ;;  %v3118_v42 = vld [vmem:[%s5204_s25 + $0x1b8] sm:$0xff] }
 0xb98   : > { %v2219_v41 = vmul.f32 %v2207_v0, %v4837_v47  ;;  %v2260_v40 = vmax.f32 %v2257_v31, 0.0  ;;  %v2940_v31 = vld [vmem:[%s5140_s13 + $0x88] sm:$0xff]  ;;  %v2943_v0 = vld [vmem:[%s5140_s13 + $0xa0] sm:$0xff] }
 0xb99   : > { %v2211_v35 = vmul.f32 0.5, %v2210_v37  ;;  %v2941_v37 = vld [vmem:[%s5140_s13 + $0x90] sm:$0xff] }
 0xb9a   : > { %v2237_v7 = vmul.f32 %v2229_v23, %v2219_v41  ;;  %v2263_v44 = vmin.f32 %v2260_v40, 6.0  ;;  %v3110_v23 = vld [vmem:[%s5204_s25 + $0x1d8] sm:$0xff]  ;;  %v2944_v41 = vld [vmem:[%s5140_s13 + $0xa8] sm:$0xff] }
 0xb9b   : > { %v2212_v51 = vsub.f32 1.5, %v2211_v35 }
 0xb9c   : > { %v2255_v11 = vadd.f32 %v2247_v9, %v2237_v7  ;;  %v2266_v48 = vmul.f32 %v2263_v44, %v2254_v26 }
 0xb9d   : > { %v2213_v49 = vmul.f32 %v3034_v22, %v2212_v51 }
 0xb9e   : > { %v2258_v52 = vadd.f32 3.0, %v2255_v11  ;;  %v2269_v24 = vmul.f32 0.16666667, %v2266_v48  ;;  %v2234_v47 = vpop.permute.xlu0 %2233 }
 0xb9f   : > { %v2217_v25 = vsel %vm2216_vm2, %v3034_v22, %v2213_v49  ;;  %v2945_v49 = vld [vmem:[%s5140_s13 + $0xb0] sm:$0xff] }
 0xba0   : > { %v2261_v1 = vmax.f32 %v2258_v52, 0.0  ;;  %v2220_v57 = vmul.f32 %v2217_v25, %v4840_v8  ;;  %2956 = vmatmul.msk.f32.vlgmr.msra.gmra.mxu0 %vm1092_vm0, %v2269_v24  ;;  %2959 = vmatmul.msk.f32.vlgmr.msra.gmra.mxu1 %vm1092_vm0, %v2269_v24  ;;  %v3103_v8 = vld [vmem:[%s5204_s25 + $0x238] sm:$0xff]  ;;  %v2949_v25 = vld [vmem:[%s5140_s13 + $0xd0] sm:$0xff] }
 0xba1   : > { %2962 = vmatmul.msk.f32.vlgmr.msrb.gmra.mxu2 %vm1092_vm0, %v2269_v24  ;;  %2965 = vmatmul.msk.f32.vlgmr.msra.gmra.mxu3 %vm1092_vm0, %v2269_v24  ;;  %v2946_v52 = vld [vmem:[%s5140_s13 + $0xb8] sm:$0xff] }
 0xba2   : > { %v2264_v61 = vmin.f32 %v2261_v1, 6.0  ;;  %v2238_v62 = vmul.f32 %v2234_v47, %v2220_v57  ;;  %2548 = vmatpush.msra.mxu0 %v3102_v4  ;;  %2582 = vmatpush.msra.mxu1 %v3103_v8 }
 0xba4   : > { %v2267_v39 = vmul.f32 %v2264_v61, %v2255_v11  ;;  %v2256_v46 = vadd.f32 %v2252_v34, %v2238_v62  ;;  %2549 = vmatpush.msra.mxu0 %v3104_v55  ;;  %2583 = vmatpush.msra.mxu1 %v3105_v54  ;;  %v2942_v55 = vld [vmem:[%s5140_s13 + $0x98] sm:$0xff] }
 0xba6   : > { %v2270_v58 = vmul.f32 0.16666667, %v2267_v39  ;;  %v2259_v17 = vadd.f32 3.0, %v2256_v46  ;;  %2550 = vmatpush.msra.mxu0 %v3106_v59  ;;  %2584 = vmatpush.msra.mxu1 %v3107_v32  ;;  %v2950_v39 = vld [vmem:[%s5140_s13 + $0xd8] sm:$0xff] }
 0xba8   : > { %v2262_v28 = vmax.f32 %v2259_v17, 0.0  ;;  %2957 = vmatmul.msk.f32.gmra.mxu0 %vm1092_vm0, %v2270_v58  ;;  %2960 = vmatmul.msk.f32.gmra.mxu1 %vm1092_vm0, %v2270_v58 }
 0xba9   : > { %2963 = vmatmul.msk.f32.gmra.mxu2 %vm1092_vm0, %v2270_v58  ;;  %2966 = vmatmul.msk.f32.gmra.mxu3 %vm1092_vm0, %v2270_v58 }
 0xbaa   : > { %v2265_v43 = vmin.f32 %v2262_v28, 6.0  ;;  %2551 = vmatpush.msra.mxu0 %v3108_v63  ;;  %2585 = vmatpush.msra.mxu1 %v3109_v2 }
 0xbac   : > { %v2268_v18 = vmul.f32 %v2265_v43, %v2256_v46  ;;  %2552 = vmatpush.msra.mxu0 %v3110_v23  ;;  %2586 = vmatpush.msra.mxu1 %v3111_v60  ;;  %v2951_v46 = vld [vmem:[%s5140_s13 + $0xe0] sm:$0xff] }
 0xbad   : > { %v2947_v43 = vld [vmem:[%s5140_s13 + $0xc0] sm:$0xff] }
 0xbae   : > { %v2271_v36 = vmul.f32 0.16666667, %v2268_v18  ;;  %2553 = vmatpush.msra.mxu0 %v3112_v5  ;;  %2587 = vmatpush.msra.mxu1 %v3113_v45  ;;  %v2952_v18 = vld [vmem:[%s5140_s13 + $0xe8] sm:$0xff] }
 0xbb0   : > { %2958 = vmatmul.msk.f32.gmra.mxu0 %vm1092_vm0, %v2271_v36  ;;  %2961 = vmatmul.msk.f32.gmra.mxu1 %vm1092_vm0, %v2271_v36 }
 0xbb1   : > { %2964 = vmatmul.msk.f32.gmra.mxu2 %vm1092_vm0, %v2271_v36  ;;  %2967 = vmatmul.msk.f32.gmra.mxu3 %vm1092_vm0, %v2271_v36 }
 0xbb2   : > { %2554 = vmatpush.msra.mxu0 %v3114_v16  ;;  %2588 = vmatpush.msra.mxu1 %v3115_v33 }
 0xbb4   : > { %2555 = vmatpush.msra.mxu0 %v3116_v21  ;;  %2589 = vmatpush.msra.mxu1 %v3117_v12 }
 0xbb6   : > { %2556 = vmatpush.msra.mxu0 %v3118_v42 }
 0xbb8   : > { %2968 = vmatmul.msk.f32.vlgmr.msrb.gmra.mxu0 %vm1092_vm0, %v2269_v24  ;;  %v2948_v24 = vld [vmem:[%s5140_s13 + $0xc8] sm:$0xff] }
 0xbb9   : > { %2557 = vmatpush.msra.mxu0 %v3119_v50 }
 0xbbb   : > { %2558 = vmatpush.msra.mxu0 %v3120_v29 }
 0xbbd   : > { %2559 = vmatpush.msra.mxu0 %v3121_v20  ;;  %v2459_v20 = vpop.permute.xlu1 %2458 }
 0xbbf   : > { %2560 = vmatpush.msra.mxu0 %v3122_v10 }
 0xbc0   : > { %2969 = vmatmul.msk.f32.gmra.mxu0 %vm1092_vm0, %v2270_v58 }
 0xbc1   : > { %2561 = vmatpush.msra.mxu0 %v3123_v38  ;;  %v2454_v38 = vpop.permute.xlu0 %2453 }
 0xbc3   : > { %2562 = vmatpush.msra.mxu0 %v3124_v14 }
 0xbc5   : > { %2563 = vmatpush.msra.mxu0 %v3125_v6 }
 0xbc8   : > { %2970 = vmatmul.msk.f32.gmra.mxu0 %vm1092_vm0, %v2271_v36 }
 0xc1d   : > { %v2318_v22 = vpop.f32.mrf.mxu0  ;;  %v2344_v26 = vpop.f32.mrf.mxu1 }
 0xc1e   : > { %v2431_v27 = vmul.f32 %v2938_v15, %v2318_v22  ;;  %v2432_v30 = vmul.f32 %v2939_v19, %v2344_v26  ;;  %v2449_v26 = vpop.permute.xlu2 %2448 }
 0xc20   : > { %2486 = vmatmul.f32.vlgmr.msrb.gmra.mxu1 %v2431_v27  ;;  %2512 = vmatmul.f32.vlgmr.msra.gmra.mxu2 %v2432_v30 }
 0xc24   : > { %v2370_v40 = vpop.f32.mrf.mxu2  ;;  %v2396_v35 = vpop.f32.mrf.mxu3 }
 0xc25   : > { %v2433_v7 = vmul.f32 %v2940_v31, %v2370_v40  ;;  %v2434_v44 = vmul.f32 %v2941_v37, %v2396_v35  ;;  %v2321_v51 = vpop.f32.mrf.mxu0  ;;  %v2347_v9 = vpop.f32.mrf.mxu1 }
 0xc26   : > { %v2436_v11 = vmul.f32 %v2943_v0, %v2321_v51  ;;  %v2437_v48 = vmul.f32 %v2944_v41, %v2347_v9 }
 0xc27   : > { %2538 = vmatmul.f32.vlgmr.msrb.gmra.mxu3 %v2433_v7  ;;  %2564 = vmatmul.f32.vlgmr.msra.gmra.mxu0 %v2434_v44 }
 0xc28   : > { %2489 = vmatmul.f32.gmra.mxu1 %v2436_v11  ;;  %2515 = vmatmul.f32.gmra.mxu2 %v2437_v48 }
 0xc2c   : > { %v2373_v1 = vpop.f32.mrf.mxu2  ;;  %v2399_v57 = vpop.f32.mrf.mxu3 }
 0xc2d   : > { %v2438_v47 = vmul.f32 %v2945_v49, %v2373_v1  ;;  %v2439_v61 = vmul.f32 %v2946_v52, %v2399_v57  ;;  %v2324_v62 = vpop.f32.mrf.mxu0  ;;  %v2350_v4 = vpop.f32.mrf.mxu1 }
 0xc2e   : > { %v2441_v8 = vmul.f32 %v2948_v24, %v2324_v62  ;;  %v2442_v34 = vmul.f32 %v2949_v25, %v2350_v4  ;;  %v2976_v62 = vld [vmem:[%s5142_s15 + $0x28] sm:$0xff] }
 0xc2f   : > { %2541 = vmatmul.f32.gmra.mxu3 %v2438_v47  ;;  %2567 = vmatmul.f32.gmra.mxu0 %v2439_v61  ;;  %v2979_v47 = vld [vmem:[%s5143_s16 + $0x28] sm:$0xff]  ;;  %v2975_v61 = vld [vmem:[%s5142_s15 + $0x20] sm:$0xff] }
 0xc30   : > { %2492 = vmatmul.f32.gmra.mxu1 %v2441_v8  ;;  %2518 = vmatmul.f32.gmra.mxu2 %v2442_v34 }
 0xc34   : > { %v2376_v54 = vpop.f32.mrf.mxu2  ;;  %v2402_v58 = vpop.f32.mrf.mxu3 }
 0xc35   : > { %v2443_v17 = vmul.f32 %v2950_v39, %v2376_v54  ;;  %v2444_v59 = vmul.f32 %v2951_v46, %v2402_v58  ;;  %v2422_v32 = vpop.f32.mrf.mxu0 }
 0xc36   : > { %v2435_v28 = vmul.f32 %v2942_v55, %v2422_v32 }
 0xc37   : > { %2544 = vmatmul.f32.gmra.mxu3 %v2443_v17  ;;  %2570 = vmatmul.f32.gmra.mxu0 %v2444_v59 }
 0xc38   : > { %2971 = vmatmul.msk.f32.vlgmr.msra.gmra.mxu1 %vm1092_vm0, %v2435_v28 }
 0xc3d   : > { %v2425_v63 = vpop.f32.mrf.mxu0 }
 0xc3e   : > { %v2440_v2 = vmul.f32 %v2947_v43, %v2425_v63 }
 0xc40   : > { %2972 = vmatmul.msk.f32.gmra.mxu1 %vm1092_vm0, %v2440_v2 }
 0xc45   : > { %v2428_v23 = vpop.f32.mrf.mxu0 }
 0xc46   : > { %v2445_v60 = vmul.f32 %v2952_v18, %v2428_v23  ;;  %v2978_v18 = vld [vmem:[%s5143_s16 + $0x20] sm:$0xff] }
 0xc48   : > { %2973 = vmatmul.msk.f32.gmra.mxu1 %vm1092_vm0, %v2445_v60 }
 0xc9d   : > { %v2487_v36 = vpop.f32.mrf.mxu1 }
 0xc9e   : > { %v2488_v27 = vadd.f32 %v2487_v36, %v2449_v26 }
 0xca3   : > { %v2513_v45 = vpop.f32.mrf.mxu2 }
 0xca4   : > { %v2565_v21 = vpop.f32.mrf.mxu0  ;;  %v2514_v37 = vadd.f32 %v2513_v45, %v2488_v27 }
 0xca5   : > { %v2490_v5 = vpop.f32.mrf.mxu1 }
 0xca6   : > { %v2491_v19 = vadd.f32 %v2490_v5, %v2454_v38 }
 0xcaa   : > { %v2539_v16 = vpop.f32.mrf.mxu3 }
 0xcab   : > { %v2516_v12 = vpop.f32.mrf.mxu2  ;;  %v2540_v40 = vadd.f32 %v2539_v16, %v2514_v37 }
 0xcac   : > { %v2568_v29 = vpop.f32.mrf.mxu0  ;;  %v2517_v30 = vadd.f32 %v2516_v12, %v2491_v19 }
 0xcad   : > { %v2493_v33 = vpop.f32.mrf.mxu1  ;;  %v2566_v9 = vadd.f32 %v2565_v21, %v2540_v40 }
 0xcae   : > { %v2494_v14 = vadd.f32 %v2493_v33, %v2459_v20 }
 0xcb2   : > { %v2542_v42 = vpop.f32.mrf.mxu3 }
 0xcb3   : > { %v2519_v10 = vpop.f32.mrf.mxu2  ;;  %v2543_v0 = vadd.f32 %v2542_v42, %v2517_v30 }
 0xcb4   : > { %v2520_v22 = vadd.f32 %v2519_v10, %v2494_v14  ;;  %v2571_v41 = vpop.f32.mrf.mxu0 }
 0xcb5   : > { %v2591_v50 = vpop.f32.mrf.mxu1  ;;  %v2569_v44 = vadd.f32 %v2568_v29, %v2543_v0 }
 0xcb6   : > { %v2592_v48 = vadd.f32 %v2591_v50, %v2566_v9 }
 0xcba   : > { %v2545_v6 = vpop.f32.mrf.mxu3 }
 0xcbb   : > { %v2546_v31 = vadd.f32 %v2545_v6, %v2520_v22 }
 0xcbd   : > { %v2594_v15 = vpop.f32.mrf.mxu1  ;;  %v2572_v35 = vadd.f32 %v2571_v41, %v2546_v31 }
 0xcbe   : > { %v2595_v11 = vadd.f32 %v2594_v15, %v2569_v44 }
 0xcc5   : > { %v2597_v7 = vpop.f32.mrf.mxu1 }
 0xcc6   : > { %v2598_v51 = vadd.f32 %v2597_v7, %v2572_v35 }
 0xcc8   : > { %2621 = vmatpush.msrb.mxu2 %v2598_v51 }
 0xcca   : > { %2622 = vmatpush.msrb.mxu2 %v2595_v11 }
 0xccc   : > { %2623 = vmatpush.msrb.mxu2 %v2592_v48 }
 0xccd   : > { %2980 = vmatmul.msk.f32.vlgmr.msrb.gmra.mxu2 %vm1344_vm4, %v4752_v53 }
 0xcd5   : > { %2981 = vmatmul.msk.f32.gmra.mxu2 %vm1344_vm4, %v4761_v56 }
 0xcdd   : > { %2982 = vmatmul.msk.f32.gmra.mxu2 %vm1344_vm4, %v4772_v13 }
 0xd50   : > { %v2625_v49 = vpop.f32.mrf.mxu2 }
 0xd51   : > { %v2634_v52 = vsel %vm1092_vm0, %v2625_v49, 0.0 }
 0xd52   : > { %2635 = vadd.xlane.f32.xlu2 %v2634_v52 }
 0xd58   : > { %v2628_v24 = vpop.f32.mrf.mxu2 }
 0xd59   : > { %v2637_v25 = vsel %vm1092_vm0, %v2628_v24, 0.0 }
 0xd5a   : > { %2638 = vadd.xlane.f32.xlu0 %v2637_v25 }
 0xd60   : > { %v2631_v1 = vpop.f32.mrf.mxu2 }
 0xd61   : > { %v2640_v57 = vsel %vm1092_vm0, %v2631_v1, 0.0 }
 0xd62   : > { %2641 = vadd.xlane.f32.xlu1 %v2640_v57 }
 0xd6a   : > { %2750 = vperm.xlu2 %3016, %v2979_v47  }
 0xd6e   : > { %2727 = vperm.xlu0 %3014, %v2975_v61  }
 0xd7b   : > { %2732 = vperm.xlu1 %3015, %v2976_v62  }
 0xdc5   : > { %v2636_v8 = vpop.xlane.xlu2 %2635 }
 0xdc6   : > { %v2643_v55 = vsub.f32 %v2592_v48, %v2636_v8 }
 0xdc8   : > { %v2646_v17 = vmul.f32 %v2643_v55, %v2643_v55 }
 0xdcd   : > { %v2639_v4 = vpop.xlane.xlu0 %2638  ;;  %v2751_v23 = vpop.permute.xlu2 %2750 }
 0xdce   : > { %v5082_v39 = vsub.f32 %v2595_v11, %v2639_v4 }
 0xdd0   : > { %v2647_v58 = vmul.f32 %v5082_v39, %v5082_v39 }
 0xdd5   : > { %v2642_v34 = vpop.xlane.xlu1 %2641 }
 0xdd6   : > { %v5084_v46 = vsub.f32 %v2598_v51, %v2642_v34 }
 0xdd8   : > { %v2648_v54 = vmul.f32 %v5084_v46, %v5084_v46 }
 0xdda   : > { %2662 = vmatpush.msra.mxu3 %v2648_v54 }
 0xddc   : > { %2663 = vmatpush.msra.mxu3 %v2647_v58 }
 0xdde   : > { %2664 = vmatpush.msra.mxu3 %v2646_v17 }
 0xddf   : > { %2983 = vmatmul.msk.f32.vlgmr.msra.gmra.mxu3 %vm1344_vm4, %v4752_v53  ;;  %v2977_v53 = vld [vmem:[%s5143_s16 + $0x18] sm:$0xff] }
 0xde0   : > { %v2728_v60 = vpop.permute.xlu0 %2727 }
 0xde7   : > { %2984 = vmatmul.msk.f32.gmra.mxu3 %vm1344_vm4, %v4761_v56  ;;  %v2974_v56 = vld [vmem:[%s5142_s15 + $0x18] sm:$0xff] }
 0xded   : > { %v2733_v45 = vpop.permute.xlu1 %2732 }
 0xdef   : > { %2985 = vmatmul.msk.f32.gmra.mxu3 %vm1344_vm4, %v4772_v13  ;;  %v2987_v13 = vld [vmem:[%s5145_s18 + $0x8] sm:$0xff] }
 0xe62   : > { %v2666_v59 = vpop.f32.mrf.mxu3 }
 0xe63   : > { %v2675_v32 = vsel %vm1092_vm0, %v2666_v59, 0.0 }
 0xe64   : > { %2676 = vadd.xlane.f32.xlu2 %v2675_v32 }
 0xe6a   : > { %v2669_v28 = vpop.f32.mrf.mxu3 }
 0xe6b   : > { %v2678_v43 = vsel %vm1092_vm0, %v2669_v28, 0.0 }
 0xe6c   : > { %2679 = vadd.xlane.f32.xlu0 %v2678_v43 }
 0xe72   : > { %v2672_v63 = vpop.f32.mrf.mxu3 }
 0xe73   : > { %v2681_v2 = vsel %vm1092_vm0, %v2672_v63, 0.0  ;;  %v2986_v63 = vld [vmem:[%s5144_s17 + $0x8] sm:$0xff] }
 0xe74   : > { %2682 = vadd.xlane.f32.xlu1 %v2681_v2 }
 0xe7c   : > { %2740 = vperm.xlu2 %3016, %v2977_v53  }
 0xe80   : > { %2722 = vperm.xlu0 %3014, %v2974_v56  }
 0xe88   : > { %2777 = vperm.xlu0 %3014, %v2987_v13  }
 0xe8d   : > { %2745 = vperm.xlu1 %3015, %v2978_v18  }
 0xed7   : > { %v2677_v36 = vpop.xlane.xlu2 %2676 }
 0xed8   : > { %v2684_v5 = vadd.f32 1e-05, %v2677_v36 }
 0xeda   : > { %3035 = vrsqrt.f32 %v2684_v5  ;;  %vm2693_vm6 = vweird.f32 %v2684_v5 }
 0xedf   : > { %v2680_v16 = vpop.xlane.xlu0 %2679  ;;  %v2741_v51 = vpop.permute.xlu2 %2740 }
 0xee0   : > { %v3036_v33 = vpop.eup %3035  ;;  %v2685_v21 = vadd.f32 1e-05, %v2680_v16 }
 0xee1   : > { %v2688_v12 = vmul.f32 %v3036_v33, %v2684_v5  ;;  %vm2694_vm5 = vweird.f32 %v3036_v33 }
 0xee2   : > { %3037 = vrsqrt.f32 %v2685_v21  ;;  %vm2695_vm7 = vmor %vm2693_vm6, %vm2694_vm5  ;;  %vm2703_vm9 = vweird.f32 %v2685_v21 }
 0xee3   : > { %v2689_v42 = vmul.f32 %v3036_v33, %v2688_v12 }
 0xee5   : > { %v2690_v50 = vmul.f32 0.5, %v2689_v42 }
 0xee7   : > { %v2683_v29 = vpop.xlane.xlu1 %2682  ;;  %v2691_v38 = vsub.f32 1.5, %v2690_v50 }
 0xee8   : > { %v3038_v20 = vpop.eup %3037  ;;  %v2686_v10 = vadd.f32 1e-05, %v2683_v29 }
 0xee9   : > { %v2698_v14 = vmul.f32 %v3038_v20, %v2685_v21  ;;  %v2692_v19 = vmul.f32 %v3036_v33, %v2691_v38  ;;  %vm2704_vm8 = vweird.f32 %v3038_v20 }
 0xeea   : > { %3039 = vrsqrt.f32 %v2686_v10  ;;  %vm2705_vm3 = vmor %vm2703_vm9, %vm2704_vm8  ;;  %vm2713_vm11 = vweird.f32 %v2686_v10 }
 0xeeb   : > { %v2699_v6 = vmul.f32 %v3038_v20, %v2698_v14  ;;  %v2696_v30 = vsel %vm2695_vm7, %v3036_v33, %v2692_v19 }
 0xeec   : > { %v2717_v41 = vmul.f32 %v2696_v30, %v2643_v55 }
 0xeed   : > { %v2700_v15 = vmul.f32 0.5, %v2699_v6 }
 0xeef   : > { %v2701_v22 = vsub.f32 1.5, %v2700_v15 }
 0xef0   : > { %v3040_v26 = vpop.eup %3039 }
 0xef1   : > { %v2708_v27 = vmul.f32 %v3040_v26, %v2686_v10  ;;  %v2702_v0 = vmul.f32 %v3038_v20, %v2701_v22  ;;  %vm2714_vm10 = vweird.f32 %v3040_v26 }
 0xef2   : > { %v2723_v37 = vpop.permute.xlu0 %2722  ;;  %vm2715_vm12 = vmor %vm2713_vm11, %vm2714_vm10 }
 0xef3   : > { %v2709_v31 = vmul.f32 %v3040_v26, %v2708_v27  ;;  %v2735_v35 = vmul.f32 %v2723_v37, %v2717_v41  ;;  %v2706_v44 = vsel %vm2705_vm3, %v3038_v20, %v2702_v0 }
 0xef4   : > { %v2718_v48 = vmul.f32 %v2706_v44, %v5082_v39 }
 0xef5   : > { %v2710_v40 = vmul.f32 0.5, %v2709_v31  ;;  %v2753_v11 = vadd.f32 %v2741_v51, %v2735_v35 }
 0xef6   : > { %v2736_v1 = vmul.f32 %v2728_v60, %v2718_v48 }
 0xef7   : > { %v2711_v7 = vsub.f32 1.5, %v2710_v40  ;;  %v2756_v25 = vadd.f32 3.0, %v2753_v11 }
 0xef9   : > { %v2712_v9 = vmul.f32 %v3040_v26, %v2711_v7  ;;  %v2759_v62 = vmax.f32 %v2756_v25, 0.0 }
 0xefa   : > { %v2778_v2 = vpop.permute.xlu0 %2777 }
 0xefb   : > { %v2716_v49 = vsel %vm2715_vm12, %v3040_v26, %v2712_v9  ;;  %v2762_v54 = vmin.f32 %v2759_v62, 6.0 }
 0xefc   : > { %v2719_v52 = vmul.f32 %v2716_v49, %v5084_v46 }
 0xefd   : > { %v2765_v28 = vmul.f32 %v2762_v54, %v2753_v11 }
 0xefe   : > { %v2737_v24 = vmul.f32 %v2733_v45, %v2719_v52 }
 0xeff   : > { %v2746_v57 = vpop.permute.xlu1 %2745  ;;  %v2768_v43 = vmul.f32 0.16666667, %v2765_v28 }
 0xf00   : > { %v2754_v47 = vadd.f32 %v2746_v57, %v2736_v1  ;;  %v2755_v61 = vadd.f32 %v2751_v23, %v2737_v24 }
 0xf02   : > { %v2757_v4 = vadd.f32 3.0, %v2754_v47  ;;  %v2758_v8 = vadd.f32 3.0, %v2755_v61 }
 0xf04   : > { %v2760_v34 = vmax.f32 %v2757_v4, 0.0  ;;  %v2761_v55 = vmax.f32 %v2758_v8, 0.0 }
 0xf06   : > { %v2763_v58 = vmin.f32 %v2760_v34, 6.0  ;;  %v2764_v17 = vmin.f32 %v2761_v55, 6.0 }
 0xf08   : > { %v2766_v59 = vmul.f32 %v2763_v58, %v2754_v47  ;;  %v2767_v39 = vmul.f32 %v2764_v17, %v2755_v61 }
 0xf0a   : > { %v2770_v32 = vmul.f32 0.16666667, %v2767_v39  ;;  %v2769_v46 = vmul.f32 0.16666667, %v2766_v59 }
 0xf0c   : > { %2796 = vmatpush.msrb.mxu0 %v2770_v32 }
 0xf0e   : > { %2797 = vmatpush.msrb.mxu0 %v2769_v46 }
 0xf10   : > { %2798 = vmatpush.msrb.mxu0 %v2768_v43 }
 0xf11   : > { %2988 = vmatmul.msk.f32.vlgmr.msrb.gmra.mxu0 %vm1344_vm4, %v2986_v63 }
 0xf8e   : > { %v2800_v53 = vpop.f32.mrf.mxu0 }
 0xf8f   : > { %v2801_v56 = vadd.f32 %v2800_v53, %v2778_v2 }
 0xf91   : > { %v2803_v13 = vadd.f32 %v2801_v56, %v4669_v3 }
 0xf93   : > { %2804 = vst.msk [vmem:[%s617_s3] sm:$0xff] %vm1092_vm0, %v2803_v13 }
 0xf94 PF: > { %s5295_s26 = sld [smem:[#allocation5_spill]] }
 0xf9a   : > { %s30_s0 = sadd.s32 1, %s5295_s26  }
 0xf9b   : > { %p27_p7 = scmp.ge.s32.totalorder %s30_s0, 4  }
 0xf9d   :  { %29 = sbr.rel (!%p27_p7) target bundleno = 6 (0x6), region = 143 }
 0xfa2   :  { %2824 = vsyncpa [#allocation3], 1 }
 0xfa3   :  { %2826 = vsyncpa [#allocation3 + $0x1], 1 }

</bundles_post_ra>
